<compile_context>
chip_gen: v7x
topology: tpu7x:2x2x1
jax: 0.10.0
libtpu: 0.0.40
codegen_flags: <defaults>
</compile_context>

<pallas_src>
import functools

import jax
import jax.numpy as jnp
from jax import lax
from jax.experimental import pallas as pl
from jax.experimental.pallas import tpu as pltpu


def _round_up(x, m):
    return ((x + m - 1) // m) * m


# -----------------------------------------------------------------------------
# Pallas kernel: one grid step per (batch-chunk, time-chunk).
#   inputs : x (TT,BB,NIp), h0 (BB,2Hp), W_ih^T (NIp,2Hp), W_big^T (2Hp,2Hp bf16),
#            b_h (1,Hp), W_ho^T (2Hp,NOp), b_o (1,NOp)
#   output : (TT,BB,NOp) final outputs for the chunk
#   scratch: xu chunk, hidden chunk, recurrent state (carried across time chunks)
# -----------------------------------------------------------------------------
def tfrnn_fused_kernel(x_ref, h0_ref, wih_ref, wbig_ref, bh_ref, who_ref, bo_ref,
                       out_ref, xu_scr, h_scr, state_ref, *, unroll):
    TT, BB, NIp = x_ref.shape
    Hp = bh_ref.shape[1]

    # Reset the recurrent state at the first time-chunk of each batch-chunk.
    @pl.when(pl.program_id(1) == 0)
    def _():
        state_ref[...] = h0_ref[...]          # uniform(-C, C) initial URNN state

    # Input projection for the whole chunk: one MXU call, off the serial path.
    xu_scr[...] = jnp.dot(x_ref[...].reshape(TT * BB, NIp), wih_ref[...],
                          preferred_element_type=jnp.float32)

    wbig = wbig_ref[...]                                  # (2Hp, 2Hp) bf16, VMEM resident
    bh_b = jnp.broadcast_to(bh_ref[...], (BB, Hp))        # hoisted (JAX won't CSE this)

    def step(i, s):
        off = pl.multiple_of(i * BB, BB)
        xu_i = xu_scr[pl.ds(off, BB), :]
        # Fused complex recurrence: ONE bf16 MXU matmul, f32 accumulation.
        pre = xu_i + jnp.dot(s.astype(jnp.bfloat16), wbig,
                             preferred_element_type=jnp.float32)
        pre_re = pre[:, :Hp]                  # lane-tile aligned slices (Hp % 128 == 0)
        pre_im = pre[:, Hp:]

        # modReLU via a single EUP rsqrt (sqrt + divide collapsed).
        sq = pre_re * pre_re + pre_im * pre_im
        inv = lax.rsqrt(sq + 1e-12)
        mag = sq * inv
        scale = jnp.maximum(mag + bh_b, 0.0) * inv

        new_re = pre_re * scale
        new_im = pre_im * scale
        # Write straight into the per-chunk hidden buffer; the state itself is
        # carried through the loop carry (no store->load on the serial path).
        h_scr[pl.ds(off, BB), :Hp] = new_re
        h_scr[pl.ds(off, BB), Hp:] = new_im
        return jnp.concatenate([new_re, new_im], axis=-1)   # 128-lane-aligned concat

    s_final = lax.fori_loop(0, TT, step, state_ref[...], unroll=unroll)
    state_ref[...] = s_final                  # commit once per chunk

    # Fused output head: one per-chunk matmul; only NOp lanes leave the kernel.
    out = jnp.dot(h_scr[...], who_ref[...], preferred_element_type=jnp.float32)
    out = out + bo_ref[...]                   # + b_o^T, activation_out = identity
    out_ref[...] = out.reshape(TT, BB, out_ref.shape[2])


# -----------------------------------------------------------------------------
# Wrapper
# -----------------------------------------------------------------------------
def tfrnn_forward(x, h0, params, *, time_block=32, batch_block=None):
    """x: (B, T, num_in) f32 ; h0: (B, 2H) f32 ; returns (B, T, num_out) f32."""
    B, T, num_in = x.shape
    H = params["w_re"].shape[0]
    num_out = params["w_ho"].shape[0]

    # ---- tile-aligned padded sizes ------------------------------------------
    Hp = _round_up(H, 128)
    NIp = _round_up(num_in, 128)
    NOp = _round_up(num_out, 128)
    if batch_block is None:
        # Fill the MXU M dimension when the batch allows (256 rows on v6e/v7x,
        # 128 on v5e); keep >= 2 batch chunks for v7x megacore when possible.
        if B >= 512:
            BB = 256
        elif B >= 128:
            BB = 128
        else:
            BB = _round_up(B, 8)
    else:
        BB = _round_up(batch_block, 8)
    Bp = _round_up(_round_up(B, 8), BB)
    TT = max(1, min(time_block, T))
    T_pad = _round_up(T, TT)
    n_b = Bp // BB
    n_t = T_pad // TT
    unroll = max(1, min(TT, 8))               # partial unroll for LLO visibility

    # ---- pad weights into lane-aligned [re | im] layout ----------------------
    def pad_h(m):                              # (H, H) -> (Hp, Hp)
        return jnp.pad(m.astype(jnp.float32), ((0, Hp - H), (0, Hp - H)))

    w_re_p = pad_h(params["w_re"])
    w_im_p = pad_h(params["w_im"])
    # [s_re | s_im] @ W_big^T = [s_re@Re^T - s_im@Im^T | s_re@Im^T + s_im@Re^T]
    w_big_k = jnp.block([[w_re_p.T, w_im_p.T],
                         [-w_im_p.T, w_re_p.T]]).astype(jnp.bfloat16)  # (2Hp, 2Hp)

    b_h_k = jnp.zeros((1, Hp), jnp.float32).at[0, :H].set(params["b_h"])

    w_ih = params["w_ih"].astype(jnp.float32)                          # (2H, num_in)
    w_ih_k = jnp.zeros((NIp, 2 * Hp), jnp.float32)
    w_ih_k = w_ih_k.at[:num_in, :H].set(w_ih[:H].T)
    w_ih_k = w_ih_k.at[:num_in, Hp:Hp + H].set(w_ih[H:].T)

    w_ho = params["w_ho"].astype(jnp.float32)                          # (num_out, 2H)
    w_ho_k = jnp.zeros((2 * Hp, NOp), jnp.float32)
    w_ho_k = w_ho_k.at[:H, :num_out].set(w_ho[:, :H].T)
    w_ho_k = w_ho_k.at[Hp:Hp + H, :num_out].set(w_ho[:, H:].T)
    b_o_k = jnp.zeros((1, NOp), jnp.float32).at[0, :num_out].set(
        params["b_o"].reshape(-1))

    h0_p = jnp.zeros((Bp, 2 * Hp), jnp.float32)
    h0_p = h0_p.at[:B, :H].set(h0[:, :H]).at[:B, Hp:Hp + H].set(h0[:, H:])

    # x streamed time-major with NIp lanes (num_in << H, so tiny vs 2Hp lanes).
    x_tm = jnp.transpose(x.astype(jnp.float32), (1, 0, 2))             # (T, B, num_in)
    x_tm = jnp.pad(x_tm, ((0, T_pad - T), (0, Bp - B), (0, NIp - num_in)))

    # ---- explicit VMEM budget -------------------------------------------------
    est = (2 * TT * BB * NIp * 4            # x block, double-buffered
           + 2 * TT * BB * NOp * 4          # out block, double-buffered
           + 2 * BB * 2 * Hp * 4            # h0
           + NIp * 2 * Hp * 4               # W_ih^T (single-buffered)
           + (2 * Hp) * (2 * Hp) * 2        # W_big^T bf16 (single-buffered)
           + Hp * 4 + 2 * Hp * NOp * 4 + NOp * 4
           + 2 * TT * BB * 2 * Hp * 4       # xu + hidden scratch
           + BB * 2 * Hp * 4)               # recurrent state scratch
    vmem_limit = int(min(max(est * 3 // 2, 32 * 2 ** 20), 96 * 2 ** 20))

    def _in_specs(single_buffer_const):
        const = dict(pipeline_mode=pl.Buffered(1)) if single_buffer_const else {}
        return [
            pl.BlockSpec((TT, BB, NIp), lambda b, c: (c, b, 0)),          # x (time-major)
            pl.BlockSpec((BB, 2 * Hp), lambda b, c: (b, 0)),              # h0
            pl.BlockSpec((NIp, 2 * Hp), lambda b, c: (0, 0), **const),    # W_ih^T
            pl.BlockSpec((2 * Hp, 2 * Hp), lambda b, c: (0, 0), **const), # W_big^T (bf16)
            pl.BlockSpec((1, Hp), lambda b, c: (0, 0), **const),          # b_h
            pl.BlockSpec((2 * Hp, NOp), lambda b, c: (0, 0), **const),    # W_ho^T
            pl.BlockSpec((1, NOp), lambda b, c: (0, 0), **const),         # b_o^T
        ]

    def _run(single_buffer_const):
        grid_spec = pltpu.PrefetchScalarGridSpec(
            num_scalar_prefetch=0,
            grid=(n_b, n_t),                  # (batch-chunks, time-chunks)
            in_specs=_in_specs(single_buffer_const),
            out_specs=pl.BlockSpec((TT, BB, NOp), lambda b, c: (c, b, 0)),
            scratch_shapes=[
                pltpu.VMEM((TT * BB, 2 * Hp), jnp.float32),   # xu for the chunk
                pltpu.VMEM((TT * BB, 2 * Hp), jnp.float32),   # hidden states for the chunk
                pltpu.VMEM((BB, 2 * Hp), jnp.float32),        # recurrent state
            ],
        )
        return pl.pallas_call(
            functools.partial(tfrnn_fused_kernel, unroll=unroll),
            out_shape=jax.ShapeDtypeStruct((T_pad, Bp, NOp), jnp.float32),
            grid_spec=grid_spec,
            compiler_params=pltpu.CompilerParams(
                dimension_semantics=("parallel", "arbitrary"),  # time is serial
                vmem_limit_bytes=vmem_limit),
        )(x_tm, h0_p, w_ih_k, w_big_k, b_h_k, w_ho_k, b_o_k)

    try:
        out_all = _run(True)
    except Exception:  # noqa: BLE001 — pl.Buffered(1) unsupported on this jax build
        out_all = _run(False)

    # single_output=False path: per-timestep projection (done in-kernel),
    # activation_out = identity. Crop padding and go back to batch-major.
    out = out_all[:T, :B, :num_out]                                    # (T, B, num_out)
    return jnp.transpose(out, (1, 0, 2))                               # (B, T, num_out)


# -----------------------------------------------------------------------------
# Pure-JAX reference (f32, faithful to the PyTorch forward)
# -----------------------------------------------------------------------------
def tfrnn_reference(x, h0, params):
    H = params["w_re"].shape[0]

    def step(h, x_t):
        xu = x_t @ params["w_ih"].T
        s_re, s_im = h[:, :H], h[:, H:]
        xu_re, xu_im = xu[:, :H], xu[:, H:]
        sm_re = s_re @ params["w_re"].T - s_im @ params["w_im"].T
        sm_im = s_re @ params["w_im"].T + s_im @ params["w_re"].T
        pre_re = xu_re + sm_re
        pre_im = xu_im + sm_im
        mag = jnp.sqrt(pre_re ** 2 + pre_im ** 2)
        scale = jnp.maximum(mag + params["b_h"][None, :], 0.0) / (mag + 1e-7)
        new_h = jnp.concatenate([pre_re * scale, pre_im * scale], axis=-1)
        out = new_h @ params["w_ho"].T + params["b_o"].T
        return new_h, out

    _, outs = lax.scan(step, h0, jnp.transpose(x, (1, 0, 2)))
    return jnp.transpose(outs, (1, 0, 2))


# -----------------------------------------------------------------------------
# Deterministic parameter construction (synthetic, no checkpoints)
# -----------------------------------------------------------------------------
def init_params(key, num_in, num_hidden, num_out):
    H = num_hidden
    ks = jax.random.split(key, 8)

    # Input-to-hidden (real input -> [re | im] of complex hidden), xavier-uniform.
    b_ih = (6.0 / (2 * H + num_in)) ** 0.5
    w_ih = jax.random.uniform(ks[0], (2 * H, num_in), jnp.float32, -b_ih, b_ih)

    # Unitary recurrence W = D3 R2 F^-1 D2 Pi R1 F D1, collapsed to dense complex.
    def diag_u(k):
        theta = jax.random.uniform(k, (H,), jnp.float32, -jnp.pi, jnp.pi)
        return jnp.diag(jnp.exp(1j * theta.astype(jnp.complex64)))

    def reflection(k):
        kr, ki = jax.random.split(k)
        v = (jax.random.normal(kr, (H,)) + 1j * jax.random.normal(ki, (H,)))
        v = v / jnp.sqrt(jnp.sum(jnp.abs(v) ** 2))
        return jnp.eye(H, dtype=jnp.complex64) - 2.0 * jnp.outer(v, jnp.conj(v))

    n = jnp.arange(H)
    F = (jnp.exp(-2j * jnp.pi * jnp.outer(n, n) / H) / jnp.sqrt(float(H))
         ).astype(jnp.complex64)
    Pi = jnp.eye(H, dtype=jnp.complex64)[jax.random.permutation(ks[1], H)]
    W = (diag_u(ks[2]) @ reflection(ks[3]) @ jnp.conj(F).T @ diag_u(ks[4]) @ Pi
         @ reflection(ks[5]) @ F @ diag_u(ks[6]))

    # Output head: w_ho (num_out, 2H) xavier-uniform, b_o (num_out, 1) zeros.
    b_ho = (6.0 / (num_out + 2 * H)) ** 0.5
    w_ho = jax.random.uniform(ks[7], (num_out, 2 * H), jnp.float32, -b_ho, b_ho)

    return dict(
        w_ih=w_ih,
        w_re=jnp.real(W).astype(jnp.float32),
        w_im=jnp.imag(W).astype(jnp.float32),
        b_h=jnp.zeros((H,), jnp.float32),
        w_ho=w_ho,
        b_o=jnp.zeros((num_out, 1), jnp.float32),
    )


if __name__ == "__main__":
    B, T, num_in, num_hidden, num_out = 2, 8, 4, 32, 4

    key = jax.random.PRNGKey(0)
    k_x, k_h, k_p = jax.random.split(key, 3)

    x = jax.random.normal(k_x, (B, T, num_in), jnp.float32)
    init_state_C = (3.0 / (2 * num_hidden)) ** 0.5
    h0 = jax.random.uniform(k_h, (B, 2 * num_hidden), jnp.float32,
                            -init_state_C, init_state_C)
    params = init_params(k_p, num_in, num_hidden, num_out)

    out = jax.block_until_ready(tfrnn_forward(x, h0, params))
    ref = jax.block_until_ready(tfrnn_reference(x, h0, params))

    assert out.shape == (B, T, num_out), out.shape
    # Tolerance loosened vs. the pure-f32 version: the recurrence matmul now uses
    # bf16 operands (f32 accumulation) and modReLU uses rsqrt(sq + eps).
    assert jnp.allclose(out, ref, atol=5e-2, rtol=5e-2), \
        float(jnp.max(jnp.abs(out - ref)))
    print("KERNEL_OK")
</pallas_src>

<mosaic_0001>
module attributes {stable_mosaic.version = 11 : i64} {
  func.func @tfrnn_fused_kernel(%arg0: i32, %arg1: i32, %arg2: memref<8x8x128xf32, #tpu.memory_space<vmem>>, %arg3: memref<8x256xf32, #tpu.memory_space<vmem>>, %arg4: memref<128x256xf32, #tpu.memory_space<vmem>>, %arg5: memref<256x256xbf16, #tpu.memory_space<vmem>>, %arg6: memref<1x128xf32, #tpu.memory_space<vmem>>, %arg7: memref<256x128xf32, #tpu.memory_space<vmem>>, %arg8: memref<1x128xf32, #tpu.memory_space<vmem>>, %arg9: memref<8x8x128xf32, #tpu.memory_space<vmem>>, %arg10: memref<64x256xf32, #tpu.memory_space<vmem>>, %arg11: memref<64x256xf32, #tpu.memory_space<vmem>>, %arg12: memref<8x256xf32, #tpu.memory_space<vmem>>) attributes {dimension_semantics = [#tpu.dimension_semantics<parallel>, #tpu.dimension_semantics<arbitrary>], iteration_bounds = array<i64: 1, 1>, scalar_prefetch = 0 : i64, scratch_operands = 3 : i64, tpu.core_type = #tpu.core_type<tc>, window_params = [{transform_indices = @transform_0, window_bounds = array<i64: 8, 8, 128>}, {transform_indices = @transform_1, window_bounds = array<i64: 8, 256>}, {pipeline_mode = #tpu.pipeline_mode<synchronous>, transform_indices = @transform_2, window_bounds = array<i64: 128, 256>}, {pipeline_mode = #tpu.pipeline_mode<synchronous>, transform_indices = @transform_3, window_bounds = array<i64: 256, 256>}, {pipeline_mode = #tpu.pipeline_mode<synchronous>, transform_indices = @transform_4, window_bounds = array<i64: 1, 128>}, {pipeline_mode = #tpu.pipeline_mode<synchronous>, transform_indices = @transform_5, window_bounds = array<i64: 256, 128>}, {pipeline_mode = #tpu.pipeline_mode<synchronous>, transform_indices = @transform_6, window_bounds = array<i64: 1, 128>}, {transform_indices = @transform_7, window_bounds = array<i64: 8, 8, 128>}]} {
    %c0_i32 = arith.constant 0 : i32
    %0 = arith.cmpi eq, %arg1, %c0_i32 : i32
    %1 = arith.extui %0 : i1 to i32
    %c0_i32_0 = arith.constant 0 : i32
    %2 = arith.cmpi ne, %1, %c0_i32_0 : i32
    scf.if %2 {
      %c0_81 = arith.constant 0 : index
      %c0_82 = arith.constant 0 : index
      %238 = vector.load %arg3[%c0_81, %c0_82] : memref<8x256xf32, #tpu.memory_space<vmem>>, vector<8x256xf32>
      %c0_83 = arith.constant 0 : index
      %c0_84 = arith.constant 0 : index
      %239 = vector.load %arg12[%c0_83, %c0_84] : memref<8x256xf32, #tpu.memory_space<vmem>>, vector<8x256xf32>
      tpu.vector_store %arg12[%c0_83, %c0_84], %238 {strides = array<i32>} : memref<8x256xf32, #tpu.memory_space<vmem>>, vector<8x256xf32>,
    } else {
    }
    %c0 = arith.constant 0 : index
    %c0_1 = arith.constant 0 : index
    %c0_2 = arith.constant 0 : index
    %3 = vector.load %arg2[%c0, %c0_1, %c0_2] : memref<8x8x128xf32, #tpu.memory_space<vmem>>, vector<8x8x128xf32>
    %4 = vector.shape_cast %3 : vector<8x8x128xf32> to vector<64x128xf32>
    %c0_3 = arith.constant 0 : index
    %c0_4 = arith.constant 0 : index
    %5 = vector.load %arg4[%c0_3, %c0_4] : memref<128x256xf32, #tpu.memory_space<vmem>>, vector<128x256xf32>
    %cst = arith.constant dense<0.000000e+00> : vector<64x256xf32>
    %6 = tpu.matmul %4, %5, %cst {dimension_numbers = #tpu.dot_dimension_numbers<[1], [0], [0], [1], [0, 0, 1, 1], [], []>} : vector<64x128xf32>, vector<128x256xf32>, vector<64x256xf32> -> vector<64x256xf32>
    %c0_5 = arith.constant 0 : index
    %c0_6 = arith.constant 0 : index
    %7 = vector.load %arg10[%c0_5, %c0_6] : memref<64x256xf32, #tpu.memory_space<vmem>>, vector<64x256xf32>
    tpu.vector_store %arg10[%c0_5, %c0_6], %6 {strides = array<i32>} : memref<64x256xf32, #tpu.memory_space<vmem>>, vector<64x256xf32>,
    %c0_7 = arith.constant 0 : index
    %c0_8 = arith.constant 0 : index
    %8 = vector.load %arg5[%c0_7, %c0_8] : memref<256x256xbf16, #tpu.memory_space<vmem>>, vector<256x256xbf16>
    %c0_9 = arith.constant 0 : index
    %c0_10 = arith.constant 0 : index
    %9 = vector.load %arg6[%c0_9, %c0_10] : memref<1x128xf32, #tpu.memory_space<vmem>>, vector<1x128xf32>
    %10 = vector.shape_cast %9 : vector<1x128xf32> to vector<1x128xf32>
    %11 = vector.broadcast %10 : vector<1x128xf32> to vector<8x128xf32>
    %c0_11 = arith.constant 0 : index
    %c0_12 = arith.constant 0 : index
    %12 = vector.load %arg12[%c0_11, %c0_12] : memref<8x256xf32, #tpu.memory_space<vmem>>, vector<8x256xf32>
    %c0_i32_13 = arith.constant 0 : i32
    %c8_i32 = arith.constant 8 : i32
    %13 = arith.muli %c0_i32_13, %c8_i32 : i32
    %14 = tpu.assume_multiple %13, 8 : i32
    %15 = arith.index_cast %14 : i32 to index
    %c0_14 = arith.constant 0 : index
    %16 = vector.load %arg10[%15, %c0_14] : memref<64x256xf32, #tpu.memory_space<vmem>>, vector<8x256xf32>
    %17 = arith.truncf %12 : vector<8x256xf32> to vector<8x256xbf16>
    %cst_15 = arith.constant dense<0.000000e+00> : vector<8x256xf32>
    %18 = tpu.matmul %17, %8, %cst_15 {dimension_numbers = #tpu.dot_dimension_numbers<[1], [0], [0], [1], [0, 0, 1, 1], [], []>} : vector<8x256xbf16>, vector<256x256xbf16>, vector<8x256xf32> -> vector<8x256xf32>
    %19 = arith.addf %16, %18 : vector<8x256xf32>
    %20 = vector.extract_strided_slice %19 {offsets = [0, 0], sizes = [8, 128], strides = [1, 1]} : vector<8x256xf32> to vector<8x128xf32>
    %21 = vector.extract_strided_slice %19 {offsets = [0, 128], sizes = [8, 128], strides = [1, 1]} : vector<8x256xf32> to vector<8x128xf32>
    %22 = arith.mulf %20, %20 : vector<8x128xf32>
    %23 = arith.mulf %21, %21 : vector<8x128xf32>
    %24 = arith.addf %22, %23 : vector<8x128xf32>
    %cst_16 = arith.constant 9.99999996E-13 : f32
    %25 = vector.broadcast %cst_16 : f32 to vector<8x128xf32>
    %26 = arith.addf %24, %25 : vector<8x128xf32>
    %27 = math.rsqrt %26 : vector<8x128xf32>
    %28 = arith.mulf %24, %27 : vector<8x128xf32>
    %29 = arith.addf %28, %11 : vector<8x128xf32>
    %cst_17 = arith.constant 0.000000e+00 : f32
    %30 = vector.broadcast %cst_17 : f32 to vector<8x128xf32>
    %31 = arith.maximumf %29, %30 : vector<8x128xf32>
    %32 = arith.mulf %31, %27 : vector<8x128xf32>
    %33 = arith.mulf %20, %32 : vector<8x128xf32>
    %34 = arith.mulf %21, %32 : vector<8x128xf32>
    %35 = arith.index_cast %14 : i32 to index
    %c0_18 = arith.constant 0 : index
    %36 = vector.load %arg11[%35, %c0_18] : memref<64x256xf32, #tpu.memory_space<vmem>>, vector<8x128xf32>
    tpu.vector_store %arg11[%35, %c0_18], %33 {strides = array<i32>} : memref<64x256xf32, #tpu.memory_space<vmem>>, vector<8x128xf32>,
    %37 = arith.index_cast %14 : i32 to index
    %c128 = arith.constant 128 : index
    %38 = vector.load %arg11[%37, %c128] : memref<64x256xf32, #tpu.memory_space<vmem>>, vector<8x128xf32>
    tpu.vector_store %arg11[%37, %c128], %34 {strides = array<i32>} : memref<64x256xf32, #tpu.memory_space<vmem>>, vector<8x128xf32>,
    %39 = tpu.concatenate %33, %34 in 1 : vector<8x128xf32>, vector<8x128xf32> -> vector<8x256xf32>
    %c1_i32 = arith.constant 1 : i32
    %c8_i32_19 = arith.constant 8 : i32
    %40 = arith.muli %c1_i32, %c8_i32_19 : i32
    %41 = tpu.assume_multiple %40, 8 : i32
    %42 = arith.index_cast %41 : i32 to index
    %c0_20 = arith.constant 0 : index
    %43 = vector.load %arg10[%42, %c0_20] : memref<64x256xf32, #tpu.memory_space<vmem>>, vector<8x256xf32>
    %44 = arith.truncf %39 : vector<8x256xf32> to vector<8x256xbf16>
    %cst_21 = arith.constant dense<0.000000e+00> : vector<8x256xf32>
    %45 = tpu.matmul %44, %8, %cst_21 {dimension_numbers = #tpu.dot_dimension_numbers<[1], [0], [0], [1], [0, 0, 1, 1], [], []>} : vector<8x256xbf16>, vector<256x256xbf16>, vector<8x256xf32> -> vector<8x256xf32>
    %46 = arith.addf %43, %45 : vector<8x256xf32>
    %47 = vector.extract_strided_slice %46 {offsets = [0, 0], sizes = [8, 128], strides = [1, 1]} : vector<8x256xf32> to vector<8x128xf32>
    %48 = vector.extract_strided_slice %46 {offsets = [0, 128], sizes = [8, 128], strides = [1, 1]} : vector<8x256xf32> to vector<8x128xf32>
    %49 = arith.mulf %47, %47 : vector<8x128xf32>
    %50 = arith.mulf %48, %48 : vector<8x128xf32>
    %51 = arith.addf %49, %50 : vector<8x128xf32>
    %cst_22 = arith.constant 9.99999996E-13 : f32
    %52 = vector.broadcast %cst_22 : f32 to vector<8x128xf32>
    %53 = arith.addf %51, %52 : vector<8x128xf32>
    %54 = math.rsqrt %53 : vector<8x128xf32>
    %55 = arith.mulf %51, %54 : vector<8x128xf32>
    %56 = arith.addf %55, %11 : vector<8x128xf32>
    %cst_23 = arith.constant 0.000000e+00 : f32
    %57 = vector.broadcast %cst_23 : f32 to vector<8x128xf32>
    %58 = arith.maximumf %56, %57 : vector<8x128xf32>
    %59 = arith.mulf %58, %54 : vector<8x128xf32>
    %60 = arith.mulf %47, %59 : vector<8x128xf32>
    %61 = arith.mulf %48, %59 : vector<8x128xf32>
    %62 = arith.index_cast %41 : i32 to index
    %c0_24 = arith.constant 0 : index
    %63 = vector.load %arg11[%62, %c0_24] : memref<64x256xf32, #tpu.memory_space<vmem>>, vector<8x128xf32>
    tpu.vector_store %arg11[%62, %c0_24], %60 {strides = array<i32>} : memref<64x256xf32, #tpu.memory_space<vmem>>, vector<8x128xf32>,
    %64 = arith.index_cast %41 : i32 to index
    %c128_25 = arith.constant 128 : index
    %65 = vector.load %arg11[%64, %c128_25] : memref<64x256xf32, #tpu.memory_space<vmem>>, vector<8x128xf32>
    tpu.vector_store %arg11[%64, %c128_25], %61 {strides = array<i32>} : memref<64x256xf32, #tpu.memory_space<vmem>>, vector<8x128xf32>,
    %66 = tpu.concatenate %60, %61 in 1 : vector<8x128xf32>, vector<8x128xf32> -> vector<8x256xf32>
    %c2_i32 = arith.constant 2 : i32
    %c8_i32_26 = arith.constant 8 : i32
    %67 = arith.muli %c2_i32, %c8_i32_26 : i32
    %68 = tpu.assume_multiple %67, 8 : i32
    %69 = arith.index_cast %68 : i32 to index
    %c0_27 = arith.constant 0 : index
    %70 = vector.load %arg10[%69, %c0_27] : memref<64x256xf32, #tpu.memory_space<vmem>>, vector<8x256xf32>
    %71 = arith.truncf %66 : vector<8x256xf32> to vector<8x256xbf16>
    %cst_28 = arith.constant dense<0.000000e+00> : vector<8x256xf32>
    %72 = tpu.matmul %71, %8, %cst_28 {dimension_numbers = #tpu.dot_dimension_numbers<[1], [0], [0], [1], [0, 0, 1, 1], [], []>} : vector<8x256xbf16>, vector<256x256xbf16>, vector<8x256xf32> -> vector<8x256xf32>
    %73 = arith.addf %70, %72 : vector<8x256xf32>
    %74 = vector.extract_strided_slice %73 {offsets = [0, 0], sizes = [8, 128], strides = [1, 1]} : vector<8x256xf32> to vector<8x128xf32>
    %75 = vector.extract_strided_slice %73 {offsets = [0, 128], sizes = [8, 128], strides = [1, 1]} : vector<8x256xf32> to vector<8x128xf32>
    %76 = arith.mulf %74, %74 : vector<8x128xf32>
    %77 = arith.mulf %75, %75 : vector<8x128xf32>
    %78 = arith.addf %76, %77 : vector<8x128xf32>
    %cst_29 = arith.constant 9.99999996E-13 : f32
    %79 = vector.broadcast %cst_29 : f32 to vector<8x128xf32>
    %80 = arith.addf %78, %79 : vector<8x128xf32>
    %81 = math.rsqrt %80 : vector<8x128xf32>
    %82 = arith.mulf %78, %81 : vector<8x128xf32>
    %83 = arith.addf %82, %11 : vector<8x128xf32>
    %cst_30 = arith.constant 0.000000e+00 : f32
    %84 = vector.broadcast %cst_30 : f32 to vector<8x128xf32>
    %85 = arith.maximumf %83, %84 : vector<8x128xf32>
    %86 = arith.mulf %85, %81 : vector<8x128xf32>
    %87 = arith.mulf %74, %86 : vector<8x128xf32>
    %88 = arith.mulf %75, %86 : vector<8x128xf32>
    %89 = arith.index_cast %68 : i32 to index
    %c0_31 = arith.constant 0 : index
    %90 = vector.load %arg11[%89, %c0_31] : memref<64x256xf32, #tpu.memory_space<vmem>>, vector<8x128xf32>
    tpu.vector_store %arg11[%89, %c0_31], %87 {strides = array<i32>} : memref<64x256xf32, #tpu.memory_space<vmem>>, vector<8x128xf32>,
    %91 = arith.index_cast %68 : i32 to index
    %c128_32 = arith.constant 128 : index
    %92 = vector.load %arg11[%91, %c128_32] : memref<64x256xf32, #tpu.memory_space<vmem>>, vector<8x128xf32>
    tpu.vector_store %arg11[%91, %c128_32], %88 {strides = array<i32>} : memref<64x256xf32, #tpu.memory_space<vmem>>, vector<8x128xf32>,
    %93 = tpu.concatenate %87, %88 in 1 : vector<8x128xf32>, vector<8x128xf32> -> vector<8x256xf32>
    %c3_i32 = arith.constant 3 : i32
    %c8_i32_33 = arith.constant 8 : i32
    %94 = arith.muli %c3_i32, %c8_i32_33 : i32
    %95 = tpu.assume_multiple %94, 8 : i32
    %96 = arith.index_cast %95 : i32 to index
    %c0_34 = arith.constant 0 : index
    %97 = vector.load %arg10[%96, %c0_34] : memref<64x256xf32, #tpu.memory_space<vmem>>, vector<8x256xf32>
    %98 = arith.truncf %93 : vector<8x256xf32> to vector<8x256xbf16>
    %cst_35 = arith.constant dense<0.000000e+00> : vector<8x256xf32>
    %99 = tpu.matmul %98, %8, %cst_35 {dimension_numbers = #tpu.dot_dimension_numbers<[1], [0], [0], [1], [0, 0, 1, 1], [], []>} : vector<8x256xbf16>, vector<256x256xbf16>, vector<8x256xf32> -> vector<8x256xf32>
    %100 = arith.addf %97, %99 : vector<8x256xf32>
    %101 = vector.extract_strided_slice %100 {offsets = [0, 0], sizes = [8, 128], strides = [1, 1]} : vector<8x256xf32> to vector<8x128xf32>
    %102 = vector.extract_strided_slice %100 {offsets = [0, 128], sizes = [8, 128], strides = [1, 1]} : vector<8x256xf32> to vector<8x128xf32>
    %103 = arith.mulf %101, %101 : vector<8x128xf32>
    %104 = arith.mulf %102, %102 : vector<8x128xf32>
    %105 = arith.addf %103, %104 : vector<8x128xf32>
    %cst_36 = arith.constant 9.99999996E-13 : f32
    %106 = vector.broadcast %cst_36 : f32 to vector<8x128xf32>
    %107 = arith.addf %105, %106 : vector<8x128xf32>
    %108 = math.rsqrt %107 : vector<8x128xf32>
    %109 = arith.mulf %105, %108 : vector<8x128xf32>
    %110 = arith.addf %109, %11 : vector<8x128xf32>
    %cst_37 = arith.constant 0.000000e+00 : f32
    %111 = vector.broadcast %cst_37 : f32 to vector<8x128xf32>
    %112 = arith.maximumf %110, %111 : vector<8x128xf32>
    %113 = arith.mulf %112, %108 : vector<8x128xf32>
    %114 = arith.mulf %101, %113 : vector<8x128xf32>
    %115 = arith.mulf %102, %113 : vector<8x128xf32>
    %116 = arith.index_cast %95 : i32 to index
    %c0_38 = arith.constant 0 : index
    %117 = vector.load %arg11[%116, %c0_38] : memref<64x256xf32, #tpu.memory_space<vmem>>, vector<8x128xf32>
    tpu.vector_store %arg11[%116, %c0_38], %114 {strides = array<i32>} : memref<64x256xf32, #tpu.memory_space<vmem>>, vector<8x128xf32>,
    %118 = arith.index_cast %95 : i32 to index
    %c128_39 = arith.constant 128 : index
    %119 = vector.load %arg11[%118, %c128_39] : memref<64x256xf32, #tpu.memory_space<vmem>>, vector<8x128xf32>
    tpu.vector_store %arg11[%118, %c128_39], %115 {strides = array<i32>} : memref<64x256xf32, #tpu.memory_space<vmem>>, vector<8x128xf32>,
    %120 = tpu.concatenate %114, %115 in 1 : vector<8x128xf32>, vector<8x128xf32> -> vector<8x256xf32>
    %c4_i32 = arith.constant 4 : i32
    %c8_i32_40 = arith.constant 8 : i32
    %121 = arith.muli %c4_i32, %c8_i32_40 : i32
    %122 = tpu.assume_multiple %121, 8 : i32
    %123 = arith.index_cast %122 : i32 to index
    %c0_41 = arith.constant 0 : index
    %124 = vector.load %arg10[%123, %c0_41] : memref<64x256xf32, #tpu.memory_space<vmem>>, vector<8x256xf32>
    %125 = arith.truncf %120 : vector<8x256xf32> to vector<8x256xbf16>
    %cst_42 = arith.constant dense<0.000000e+00> : vector<8x256xf32>
    %126 = tpu.matmul %125, %8, %cst_42 {dimension_numbers = #tpu.dot_dimension_numbers<[1], [0], [0], [1], [0, 0, 1, 1], [], []>} : vector<8x256xbf16>, vector<256x256xbf16>, vector<8x256xf32> -> vector<8x256xf32>
    %127 = arith.addf %124, %126 : vector<8x256xf32>
    %128 = vector.extract_strided_slice %127 {offsets = [0, 0], sizes = [8, 128], strides = [1, 1]} : vector<8x256xf32> to vector<8x128xf32>
    %129 = vector.extract_strided_slice %127 {offsets = [0, 128], sizes = [8, 128], strides = [1, 1]} : vector<8x256xf32> to vector<8x128xf32>
    %130 = arith.mulf %128, %128 : vector<8x128xf32>
    %131 = arith.mulf %129, %129 : vector<8x128xf32>
    %132 = arith.addf %130, %131 : vector<8x128xf32>
    %cst_43 = arith.constant 9.99999996E-13 : f32
    %133 = vector.broadcast %cst_43 : f32 to vector<8x128xf32>
    %134 = arith.addf %132, %133 : vector<8x128xf32>
    %135 = math.rsqrt %134 : vector<8x128xf32>
    %136 = arith.mulf %132, %135 : vector<8x128xf32>
    %137 = arith.addf %136, %11 : vector<8x128xf32>
    %cst_44 = arith.constant 0.000000e+00 : f32
    %138 = vector.broadcast %cst_44 : f32 to vector<8x128xf32>
    %139 = arith.maximumf %137, %138 : vector<8x128xf32>
    %140 = arith.mulf %139, %135 : vector<8x128xf32>
    %141 = arith.mulf %128, %140 : vector<8x128xf32>
    %142 = arith.mulf %129, %140 : vector<8x128xf32>
    %143 = arith.index_cast %122 : i32 to index
    %c0_45 = arith.constant 0 : index
    %144 = vector.load %arg11[%143, %c0_45] : memref<64x256xf32, #tpu.memory_space<vmem>>, vector<8x128xf32>
    tpu.vector_store %arg11[%143, %c0_45], %141 {strides = array<i32>} : memref<64x256xf32, #tpu.memory_space<vmem>>, vector<8x128xf32>,
    %145 = arith.index_cast %122 : i32 to index
    %c128_46 = arith.constant 128 : index
    %146 = vector.load %arg11[%145, %c128_46] : memref<64x256xf32, #tpu.memory_space<vmem>>, vector<8x128xf32>
    tpu.vector_store %arg11[%145, %c128_46], %142 {strides = array<i32>} : memref<64x256xf32, #tpu.memory_space<vmem>>, vector<8x128xf32>,
    %147 = tpu.concatenate %141, %142 in 1 : vector<8x128xf32>, vector<8x128xf32> -> vector<8x256xf32>
    %c5_i32 = arith.constant 5 : i32
    %c8_i32_47 = arith.constant 8 : i32
    %148 = arith.muli %c5_i32, %c8_i32_47 : i32
    %149 = tpu.assume_multiple %148, 8 : i32
    %150 = arith.index_cast %149 : i32 to index
    %c0_48 = arith.constant 0 : index
    %151 = vector.load %arg10[%150, %c0_48] : memref<64x256xf32, #tpu.memory_space<vmem>>, vector<8x256xf32>
    %152 = arith.truncf %147 : vector<8x256xf32> to vector<8x256xbf16>
    %cst_49 = arith.constant dense<0.000000e+00> : vector<8x256xf32>
    %153 = tpu.matmul %152, %8, %cst_49 {dimension_numbers = #tpu.dot_dimension_numbers<[1], [0], [0], [1], [0, 0, 1, 1], [], []>} : vector<8x256xbf16>, vector<256x256xbf16>, vector<8x256xf32> -> vector<8x256xf32>
    %154 = arith.addf %151, %153 : vector<8x256xf32>
    %155 = vector.extract_strided_slice %154 {offsets = [0, 0], sizes = [8, 128], strides = [1, 1]} : vector<8x256xf32> to vector<8x128xf32>
    %156 = vector.extract_strided_slice %154 {offsets = [0, 128], sizes = [8, 128], strides = [1, 1]} : vector<8x256xf32> to vector<8x128xf32>
    %157 = arith.mulf %155, %155 : vector<8x128xf32>
    %158 = arith.mulf %156, %156 : vector<8x128xf32>
    %159 = arith.addf %157, %158 : vector<8x128xf32>
    %cst_50 = arith.constant 9.99999996E-13 : f32
    %160 = vector.broadcast %cst_50 : f32 to vector<8x128xf32>
    %161 = arith.addf %159, %160 : vector<8x128xf32>
    %162 = math.rsqrt %161 : vector<8x128xf32>
    %163 = arith.mulf %159, %162 : vector<8x128xf32>
    %164 = arith.addf %163, %11 : vector<8x128xf32>
    %cst_51 = arith.constant 0.000000e+00 : f32
    %165 = vector.broadcast %cst_51 : f32 to vector<8x128xf32>
    %166 = arith.maximumf %164, %165 : vector<8x128xf32>
    %167 = arith.mulf %166, %162 : vector<8x128xf32>
    %168 = arith.mulf %155, %167 : vector<8x128xf32>
    %169 = arith.mulf %156, %167 : vector<8x128xf32>
    %170 = arith.index_cast %149 : i32 to index
    %c0_52 = arith.constant 0 : index
    %171 = vector.load %arg11[%170, %c0_52] : memref<64x256xf32, #tpu.memory_space<vmem>>, vector<8x128xf32>
    tpu.vector_store %arg11[%170, %c0_52], %168 {strides = array<i32>} : memref<64x256xf32, #tpu.memory_space<vmem>>, vector<8x128xf32>,
    %172 = arith.index_cast %149 : i32 to index
    %c128_53 = arith.constant 128 : index
    %173 = vector.load %arg11[%172, %c128_53] : memref<64x256xf32, #tpu.memory_space<vmem>>, vector<8x128xf32>
    tpu.vector_store %arg11[%172, %c128_53], %169 {strides = array<i32>} : memref<64x256xf32, #tpu.memory_space<vmem>>, vector<8x128xf32>,
    %174 = tpu.concatenate %168, %169 in 1 : vector<8x128xf32>, vector<8x128xf32> -> vector<8x256xf32>
    %c6_i32 = arith.constant 6 : i32
    %c8_i32_54 = arith.constant 8 : i32
    %175 = arith.muli %c6_i32, %c8_i32_54 : i32
    %176 = tpu.assume_multiple %175, 8 : i32
    %177 = arith.index_cast %176 : i32 to index
    %c0_55 = arith.constant 0 : index
    %178 = vector.load %arg10[%177, %c0_55] : memref<64x256xf32, #tpu.memory_space<vmem>>, vector<8x256xf32>
    %179 = arith.truncf %174 : vector<8x256xf32> to vector<8x256xbf16>
    %cst_56 = arith.constant dense<0.000000e+00> : vector<8x256xf32>
    %180 = tpu.matmul %179, %8, %cst_56 {dimension_numbers = #tpu.dot_dimension_numbers<[1], [0], [0], [1], [0, 0, 1, 1], [], []>} : vector<8x256xbf16>, vector<256x256xbf16>, vector<8x256xf32> -> vector<8x256xf32>
    %181 = arith.addf %178, %180 : vector<8x256xf32>
    %182 = vector.extract_strided_slice %181 {offsets = [0, 0], sizes = [8, 128], strides = [1, 1]} : vector<8x256xf32> to vector<8x128xf32>
    %183 = vector.extract_strided_slice %181 {offsets = [0, 128], sizes = [8, 128], strides = [1, 1]} : vector<8x256xf32> to vector<8x128xf32>
    %184 = arith.mulf %182, %182 : vector<8x128xf32>
    %185 = arith.mulf %183, %183 : vector<8x128xf32>
    %186 = arith.addf %184, %185 : vector<8x128xf32>
    %cst_57 = arith.constant 9.99999996E-13 : f32
    %187 = vector.broadcast %cst_57 : f32 to vector<8x128xf32>
    %188 = arith.addf %186, %187 : vector<8x128xf32>
    %189 = math.rsqrt %188 : vector<8x128xf32>
    %190 = arith.mulf %186, %189 : vector<8x128xf32>
    %191 = arith.addf %190, %11 : vector<8x128xf32>
    %cst_58 = arith.constant 0.000000e+00 : f32
    %192 = vector.broadcast %cst_58 : f32 to vector<8x128xf32>
    %193 = arith.maximumf %191, %192 : vector<8x128xf32>
    %194 = arith.mulf %193, %189 : vector<8x128xf32>
    %195 = arith.mulf %182, %194 : vector<8x128xf32>
    %196 = arith.mulf %183, %194 : vector<8x128xf32>
    %197 = arith.index_cast %176 : i32 to index
    %c0_59 = arith.constant 0 : index
    %198 = vector.load %arg11[%197, %c0_59] : memref<64x256xf32, #tpu.memory_space<vmem>>, vector<8x128xf32>
    tpu.vector_store %arg11[%197, %c0_59], %195 {strides = array<i32>} : memref<64x256xf32, #tpu.memory_space<vmem>>, vector<8x128xf32>,
    %199 = arith.index_cast %176 : i32 to index
    %c128_60 = arith.constant 128 : index
    %200 = vector.load %arg11[%199, %c128_60] : memref<64x256xf32, #tpu.memory_space<vmem>>, vector<8x128xf32>
    tpu.vector_store %arg11[%199, %c128_60], %196 {strides = array<i32>} : memref<64x256xf32, #tpu.memory_space<vmem>>, vector<8x128xf32>,
    %201 = tpu.concatenate %195, %196 in 1 : vector<8x128xf32>, vector<8x128xf32> -> vector<8x256xf32>
    %c7_i32 = arith.constant 7 : i32
    %c8_i32_61 = arith.constant 8 : i32
    %202 = arith.muli %c7_i32, %c8_i32_61 : i32
    %203 = tpu.assume_multiple %202, 8 : i32
    %204 = arith.index_cast %203 : i32 to index
    %c0_62 = arith.constant 0 : index
    %205 = vector.load %arg10[%204, %c0_62] : memref<64x256xf32, #tpu.memory_space<vmem>>, vector<8x256xf32>
    %206 = arith.truncf %201 : vector<8x256xf32> to vector<8x256xbf16>
    %cst_63 = arith.constant dense<0.000000e+00> : vector<8x256xf32>
    %207 = tpu.matmul %206, %8, %cst_63 {dimension_numbers = #tpu.dot_dimension_numbers<[1], [0], [0], [1], [0, 0, 1, 1], [], []>} : vector<8x256xbf16>, vector<256x256xbf16>, vector<8x256xf32> -> vector<8x256xf32>
    %208 = arith.addf %205, %207 : vector<8x256xf32>
    %209 = vector.extract_strided_slice %208 {offsets = [0, 0], sizes = [8, 128], strides = [1, 1]} : vector<8x256xf32> to vector<8x128xf32>
    %210 = vector.extract_strided_slice %208 {offsets = [0, 128], sizes = [8, 128], strides = [1, 1]} : vector<8x256xf32> to vector<8x128xf32>
    %211 = arith.mulf %209, %209 : vector<8x128xf32>
    %212 = arith.mulf %210, %210 : vector<8x128xf32>
    %213 = arith.addf %211, %212 : vector<8x128xf32>
    %cst_64 = arith.constant 9.99999996E-13 : f32
    %214 = vector.broadcast %cst_64 : f32 to vector<8x128xf32>
    %215 = arith.addf %213, %214 : vector<8x128xf32>
    %216 = math.rsqrt %215 : vector<8x128xf32>
    %217 = arith.mulf %213, %216 : vector<8x128xf32>
    %218 = arith.addf %217, %11 : vector<8x128xf32>
    %cst_65 = arith.constant 0.000000e+00 : f32
    %219 = vector.broadcast %cst_65 : f32 to vector<8x128xf32>
    %220 = arith.maximumf %218, %219 : vector<8x128xf32>
    %221 = arith.mulf %220, %216 : vector<8x128xf32>
    %222 = arith.mulf %209, %221 : vector<8x128xf32>
    %223 = arith.mulf %210, %221 : vector<8x128xf32>
    %224 = arith.index_cast %203 : i32 to index
    %c0_66 = arith.constant 0 : index
    %225 = vector.load %arg11[%224, %c0_66] : memref<64x256xf32, #tpu.memory_space<vmem>>, vector<8x128xf32>
    tpu.vector_store %arg11[%224, %c0_66], %222 {strides = array<i32>} : memref<64x256xf32, #tpu.memory_space<vmem>>, vector<8x128xf32>,
    %226 = arith.index_cast %203 : i32 to index
    %c128_67 = arith.constant 128 : index
    %227 = vector.load %arg11[%226, %c128_67] : memref<64x256xf32, #tpu.memory_space<vmem>>, vector<8x128xf32>
    tpu.vector_store %arg11[%226, %c128_67], %223 {strides = array<i32>} : memref<64x256xf32, #tpu.memory_space<vmem>>, vector<8x128xf32>,
    %228 = tpu.concatenate %222, %223 in 1 : vector<8x128xf32>, vector<8x128xf32> -> vector<8x256xf32>
    %c8_i32_68 = arith.constant 8 : i32
    %c0_69 = arith.constant 0 : index
    %c0_70 = arith.constant 0 : index
    %229 = vector.load %arg12[%c0_69, %c0_70] : memref<8x256xf32, #tpu.memory_space<vmem>>, vector<8x256xf32>
    tpu.vector_store %arg12[%c0_69, %c0_70], %228 {strides = array<i32>} : memref<8x256xf32, #tpu.memory_space<vmem>>, vector<8x256xf32>,
    %c0_71 = arith.constant 0 : index
    %c0_72 = arith.constant 0 : index
    %230 = vector.load %arg11[%c0_71, %c0_72] : memref<64x256xf32, #tpu.memory_space<vmem>>, vector<64x256xf32>
    %c0_73 = arith.constant 0 : index
    %c0_74 = arith.constant 0 : index
    %231 = vector.load %arg7[%c0_73, %c0_74] : memref<256x128xf32, #tpu.memory_space<vmem>>, vector<256x128xf32>
    %cst_75 = arith.constant dense<0.000000e+00> : vector<64x128xf32>
    %232 = tpu.matmul %230, %231, %cst_75 {dimension_numbers = #tpu.dot_dimension_numbers<[1], [0], [0], [1], [0, 0, 1, 1], [], []>} : vector<64x256xf32>, vector<256x128xf32>, vector<64x128xf32> -> vector<64x128xf32>
    %c0_76 = arith.constant 0 : index
    %c0_77 = arith.constant 0 : index
    %233 = vector.load %arg8[%c0_76, %c0_77] : memref<1x128xf32, #tpu.memory_space<vmem>>, vector<1x128xf32>
    %234 = vector.broadcast %233 : vector<1x128xf32> to vector<64x128xf32>
    %235 = arith.addf %232, %234 : vector<64x128xf32>
    %236 = vector.shape_cast %235 : vector<64x128xf32> to vector<8x8x128xf32>
    %c0_78 = arith.constant 0 : index
    %c0_79 = arith.constant 0 : index
    %c0_80 = arith.constant 0 : index
    %237 = vector.load %arg9[%c0_78, %c0_79, %c0_80] : memref<8x8x128xf32, #tpu.memory_space<vmem>>, vector<8x8x128xf32>
    tpu.vector_store %arg9[%c0_78, %c0_79, %c0_80], %236 {strides = array<i32>} : memref<8x8x128xf32, #tpu.memory_space<vmem>>, vector<8x8x128xf32>,
    return
  }
  func.func @transform_0(%arg0: i32, %arg1: i32) -> (i32, i32, i32) {
    %c0_i32 = arith.constant 0 : i32
    %c0_i32_0 = arith.constant 0 : i32
    return %arg1, %arg0, %c0_i32 : i32, i32, i32
  }
  func.func @transform_1(%arg0: i32, %arg1: i32) -> (i32, i32) {
    %c0_i32 = arith.constant 0 : i32
    %c0_i32_0 = arith.constant 0 : i32
    return %arg0, %c0_i32 : i32, i32
  }
  func.func @transform_2(%arg0: i32, %arg1: i32) -> (i32, i32) {
    %c0_i32 = arith.constant 0 : i32
    %c0_i32_0 = arith.constant 0 : i32
    %c0_i32_1 = arith.constant 0 : i32
    return %c0_i32, %c0_i32_0 : i32, i32
  }
  func.func @transform_3(%arg0: i32, %arg1: i32) -> (i32, i32) {
    %c0_i32 = arith.constant 0 : i32
    %c0_i32_0 = arith.constant 0 : i32
    %c0_i32_1 = arith.constant 0 : i32
    return %c0_i32, %c0_i32_0 : i32, i32
  }
  func.func @transform_4(%arg0: i32, %arg1: i32) -> (i32, i32) {
    %c0_i32 = arith.constant 0 : i32
    %c0_i32_0 = arith.constant 0 : i32
    %c0_i32_1 = arith.constant 0 : i32
    return %c0_i32, %c0_i32_0 : i32, i32
  }
  func.func @transform_5(%arg0: i32, %arg1: i32) -> (i32, i32) {
    %c0_i32 = arith.constant 0 : i32
    %c0_i32_0 = arith.constant 0 : i32
    %c0_i32_1 = arith.constant 0 : i32
    return %c0_i32, %c0_i32_0 : i32, i32
  }
  func.func @transform_6(%arg0: i32, %arg1: i32) -> (i32, i32) {
    %c0_i32 = arith.constant 0 : i32
    %c0_i32_0 = arith.constant 0 : i32
    %c0_i32_1 = arith.constant 0 : i32
    return %c0_i32, %c0_i32_0 : i32, i32
  }
  func.func @transform_7(%arg0: i32, %arg1: i32) -> (i32, i32, i32) {
    %c0_i32 = arith.constant 0 : i32
    %c0_i32_0 = arith.constant 0 : i32
    return %arg1, %arg0, %c0_i32 : i32, i32, i32
  }
}

module attributes {stable_mosaic.version = 11 : i64} {
  func.func @tfrnn_fused_kernel(%arg0: i32, %arg1: i32, %arg2: memref<8x8x128xf32, #tpu.memory_space<vmem>>, %arg3: memref<8x256xf32, #tpu.memory_space<vmem>>, %arg4: memref<128x256xf32, #tpu.memory_space<vmem>>, %arg5: memref<256x256xbf16, #tpu.memory_space<vmem>>, %arg6: memref<1x128xf32, #tpu.memory_space<vmem>>, %arg7: memref<256x128xf32, #tpu.memory_space<vmem>>, %arg8: memref<1x128xf32, #tpu.memory_space<vmem>>, %arg9: memref<8x8x128xf32, #tpu.memory_space<vmem>>, %arg10: memref<64x256xf32, #tpu.memory_space<vmem>>, %arg11: memref<64x256xf32, #tpu.memory_space<vmem>>, %arg12: memref<8x256xf32, #tpu.memory_space<vmem>>) attributes {dimension_semantics = [#tpu.dimension_semantics<parallel>, #tpu.dimension_semantics<arbitrary>], iteration_bounds = array<i64: 1, 1>, scalar_prefetch = 0 : i64, scratch_operands = 3 : i64, tpu.core_type = #tpu.core_type<tc>, window_params = [{transform_indices = @transform_0, window_bounds = array<i64: 8, 8, 128>}, {transform_indices = @transform_1, window_bounds = array<i64: 8, 256>}, {pipeline_mode = #tpu.pipeline_mode<synchronous>, transform_indices = @transform_2, window_bounds = array<i64: 128, 256>}, {pipeline_mode = #tpu.pipeline_mode<synchronous>, transform_indices = @transform_3, window_bounds = array<i64: 256, 256>}, {pipeline_mode = #tpu.pipeline_mode<synchronous>, transform_indices = @transform_4, window_bounds = array<i64: 1, 128>}, {pipeline_mode = #tpu.pipeline_mode<synchronous>, transform_indices = @transform_5, window_bounds = array<i64: 256, 128>}, {pipeline_mode = #tpu.pipeline_mode<synchronous>, transform_indices = @transform_6, window_bounds = array<i64: 1, 128>}, {transform_indices = @transform_7, window_bounds = array<i64: 8, 8, 128>}]} {
    %c0_i32 = arith.constant 0 : i32
    %0 = arith.cmpi eq, %arg1, %c0_i32 : i32
    %1 = arith.extui %0 : i1 to i32
    %c0_i32_0 = arith.constant 0 : i32
    %2 = arith.cmpi ne, %1, %c0_i32_0 : i32
    scf.if %2 {
      %c0_81 = arith.constant 0 : index
      %c0_82 = arith.constant 0 : index
      %238 = vector.load %arg3[%c0_81, %c0_82] : memref<8x256xf32, #tpu.memory_space<vmem>>, vector<8x256xf32>
      %c0_83 = arith.constant 0 : index
      %c0_84 = arith.constant 0 : index
      %239 = vector.load %arg12[%c0_83, %c0_84] : memref<8x256xf32, #tpu.memory_space<vmem>>, vector<8x256xf32>
      tpu.vector_store %arg12[%c0_83, %c0_84], %238 {strides = array<i32>} : memref<8x256xf32, #tpu.memory_space<vmem>>, vector<8x256xf32>,
    } else {
    }
    %c0 = arith.constant 0 : index
    %c0_1 = arith.constant 0 : index
    %c0_2 = arith.constant 0 : index
    %3 = vector.load %arg2[%c0, %c0_1, %c0_2] : memref<8x8x128xf32, #tpu.memory_space<vmem>>, vector<8x8x128xf32>
    %4 = vector.shape_cast %3 : vector<8x8x128xf32> to vector<64x128xf32>
    %c0_3 = arith.constant 0 : index
    %c0_4 = arith.constant 0 : index
    %5 = vector.load %arg4[%c0_3, %c0_4] : memref<128x256xf32, #tpu.memory_space<vmem>>, vector<128x256xf32>
    %cst = arith.constant dense<0.000000e+00> : vector<64x256xf32>
    %6 = tpu.matmul %4, %5, %cst {dimension_numbers = #tpu.dot_dimension_numbers<[1], [0], [0], [1], [0, 0, 1, 1], [], []>} : vector<64x128xf32>, vector<128x256xf32>, vector<64x256xf32> -> vector<64x256xf32>
    %c0_5 = arith.constant 0 : index
    %c0_6 = arith.constant 0 : index
    %7 = vector.load %arg10[%c0_5, %c0_6] : memref<64x256xf32, #tpu.memory_space<vmem>>, vector<64x256xf32>
    tpu.vector_store %arg10[%c0_5, %c0_6], %6 {strides = array<i32>} : memref<64x256xf32, #tpu.memory_space<vmem>>, vector<64x256xf32>,
    %c0_7 = arith.constant 0 : index
    %c0_8 = arith.constant 0 : index
    %8 = vector.load %arg5[%c0_7, %c0_8] : memref<256x256xbf16, #tpu.memory_space<vmem>>, vector<256x256xbf16>
    %c0_9 = arith.constant 0 : index
    %c0_10 = arith.constant 0 : index
    %9 = vector.load %arg6[%c0_9, %c0_10] : memref<1x128xf32, #tpu.memory_space<vmem>>, vector<1x128xf32>
    %10 = vector.shape_cast %9 : vector<1x128xf32> to vector<1x128xf32>
    %11 = vector.broadcast %10 : vector<1x128xf32> to vector<8x128xf32>
    %c0_11 = arith.constant 0 : index
    %c0_12 = arith.constant 0 : index
    %12 = vector.load %arg12[%c0_11, %c0_12] : memref<8x256xf32, #tpu.memory_space<vmem>>, vector<8x256xf32>
    %c0_i32_13 = arith.constant 0 : i32
    %c8_i32 = arith.constant 8 : i32
    %13 = arith.muli %c0_i32_13, %c8_i32 : i32
    %14 = tpu.assume_multiple %13, 8 : i32
    %15 = arith.index_cast %14 : i32 to index
    %c0_14 = arith.constant 0 : index
    %16 = vector.load %arg10[%15, %c0_14] : memref<64x256xf32, #tpu.memory_space<vmem>>, vector<8x256xf32>
    %17 = arith.truncf %12 : vector<8x256xf32> to vector<8x256xbf16>
    %cst_15 = arith.constant dense<0.000000e+00> : vector<8x256xf32>
    %18 = tpu.matmul %17, %8, %cst_15 {dimension_numbers = #tpu.dot_dimension_numbers<[1], [0], [0], [1], [0, 0, 1, 1], [], []>} : vector<8x256xbf16>, vector<256x256xbf16>, vector<8x256xf32> -> vector<8x256xf32>
    %19 = arith.addf %16, %18 : vector<8x256xf32>
    %20 = vector.extract_strided_slice %19 {offsets = [0, 0], sizes = [8, 128], strides = [1, 1]} : vector<8x256xf32> to vector<8x128xf32>
    %21 = vector.extract_strided_slice %19 {offsets = [0, 128], sizes = [8, 128], strides = [1, 1]} : vector<8x256xf32> to vector<8x128xf32>
    %22 = arith.mulf %20, %20 : vector<8x128xf32>
    %23 = arith.mulf %21, %21 : vector<8x128xf32>
    %24 = arith.addf %22, %23 : vector<8x128xf32>
    %cst_16 = arith.constant 9.99999996E-13 : f32
    %25 = vector.broadcast %cst_16 : f32 to vector<8x128xf32>
    %26 = arith.addf %24, %25 : vector<8x128xf32>
    %27 = math.rsqrt %26 : vector<8x128xf32>
    %28 = arith.mulf %24, %27 : vector<8x128xf32>
    %29 = arith.addf %28, %11 : vector<8x128xf32>
    %cst_17 = arith.constant 0.000000e+00 : f32
    %30 = vector.broadcast %cst_17 : f32 to vector<8x128xf32>
    %31 = arith.maximumf %29, %30 : vector<8x128xf32>
    %32 = arith.mulf %31, %27 : vector<8x128xf32>
    %33 = arith.mulf %20, %32 : vector<8x128xf32>
    %34 = arith.mulf %21, %32 : vector<8x128xf32>
    %35 = arith.index_cast %14 : i32 to index
    %c0_18 = arith.constant 0 : index
    %36 = vector.load %arg11[%35, %c0_18] : memref<64x256xf32, #tpu.memory_space<vmem>>, vector<8x128xf32>
    tpu.vector_store %arg11[%35, %c0_18], %33 {strides = array<i32>} : memref<64x256xf32, #tpu.memory_space<vmem>>, vector<8x128xf32>,
    %37 = arith.index_cast %14 : i32 to index
    %c128 = arith.constant 128 : index
    %38 = vector.load %arg11[%37, %c128] : memref<64x256xf32, #tpu.memory_space<vmem>>, vector<8x128xf32>
    tpu.vector_store %arg11[%37, %c128], %34 {strides = array<i32>} : memref<64x256xf32, #tpu.memory_space<vmem>>, vector<8x128xf32>,
    %39 = tpu.concatenate %33, %34 in 1 : vector<8x128xf32>, vector<8x128xf32> -> vector<8x256xf32>
    %c1_i32 = arith.constant 1 : i32
    %c8_i32_19 = arith.constant 8 : i32
    %40 = arith.muli %c1_i32, %c8_i32_19 : i32
    %41 = tpu.assume_multiple %40, 8 : i32
    %42 = arith.index_cast %41 : i32 to index
    %c0_20 = arith.constant 0 : index
    %43 = vector.load %arg10[%42, %c0_20] : memref<64x256xf32, #tpu.memory_space<vmem>>, vector<8x256xf32>
    %44 = arith.truncf %39 : vector<8x256xf32> to vector<8x256xbf16>
    %cst_21 = arith.constant dense<0.000000e+00> : vector<8x256xf32>
    %45 = tpu.matmul %44, %8, %cst_21 {dimension_numbers = #tpu.dot_dimension_numbers<[1], [0], [0], [1], [0, 0, 1, 1], [], []>} : vector<8x256xbf16>, vector<256x256xbf16>, vector<8x256xf32> -> vector<8x256xf32>
    %46 = arith.addf %43, %45 : vector<8x256xf32>
    %47 = vector.extract_strided_slice %46 {offsets = [0, 0], sizes = [8, 128], strides = [1, 1]} : vector<8x256xf32> to vector<8x128xf32>
    %48 = vector.extract_strided_slice %46 {offsets = [0, 128], sizes = [8, 128], strides = [1, 1]} : vector<8x256xf32> to vector<8x128xf32>
    %49 = arith.mulf %47, %47 : vector<8x128xf32>
    %50 = arith.mulf %48, %48 : vector<8x128xf32>
    %51 = arith.addf %49, %50 : vector<8x128xf32>
    %cst_22 = arith.constant 9.99999996E-13 : f32
    %52 = vector.broadcast %cst_22 : f32 to vector<8x128xf32>
    %53 = arith.addf %51, %52 : vector<8x128xf32>
    %54 = math.rsqrt %53 : vector<8x128xf32>
    %55 = arith.mulf %51, %54 : vector<8x128xf32>
    %56 = arith.addf %55, %11 : vector<8x128xf32>
    %cst_23 = arith.constant 0.000000e+00 : f32
    %57 = vector.broadcast %cst_23 : f32 to vector<8x128xf32>
    %58 = arith.maximumf %56, %57 : vector<8x128xf32>
    %59 = arith.mulf %58, %54 : vector<8x128xf32>
    %60 = arith.mulf %47, %59 : vector<8x128xf32>
    %61 = arith.mulf %48, %59 : vector<8x128xf32>
    %62 = arith.index_cast %41 : i32 to index
    %c0_24 = arith.constant 0 : index
    %63 = vector.load %arg11[%62, %c0_24] : memref<64x256xf32, #tpu.memory_space<vmem>>, vector<8x128xf32>
    tpu.vector_store %arg11[%62, %c0_24], %60 {strides = array<i32>} : memref<64x256xf32, #tpu.memory_space<vmem>>, vector<8x128xf32>,
    %64 = arith.index_cast %41 : i32 to index
    %c128_25 = arith.constant 128 : index
    %65 = vector.load %arg11[%64, %c128_25] : memref<64x256xf32, #tpu.memory_space<vmem>>, vector<8x128xf32>
    tpu.vector_store %arg11[%64, %c128_25], %61 {strides = array<i32>} : memref<64x256xf32, #tpu.memory_space<vmem>>, vector<8x128xf32>,
    %66 = tpu.concatenate %60, %61 in 1 : vector<8x128xf32>, vector<8x128xf32> -> vector<8x256xf32>
    %c2_i32 = arith.constant 2 : i32
    %c8_i32_26 = arith.constant 8 : i32
    %67 = arith.muli %c2_i32, %c8_i32_26 : i32
    %68 = tpu.assume_multiple %67, 8 : i32
    %69 = arith.index_cast %68 : i32 to index
    %c0_27 = arith.constant 0 : index
    %70 = vector.load %arg10[%69, %c0_27] : memref<64x256xf32, #tpu.memory_space<vmem>>, vector<8x256xf32>
    %71 = arith.truncf %66 : vector<8x256xf32> to vector<8x256xbf16>
    %cst_28 = arith.constant dense<0.000000e+00> : vector<8x256xf32>
    %72 = tpu.matmul %71, %8, %cst_28 {dimension_numbers = #tpu.dot_dimension_numbers<[1], [0], [0], [1], [0, 0, 1, 1], [], []>} : vector<8x256xbf16>, vector<256x256xbf16>, vector<8x256xf32> -> vector<8x256xf32>
    %73 = arith.addf %70, %72 : vector<8x256xf32>
    %74 = vector.extract_strided_slice %73 {offsets = [0, 0], sizes = [8, 128], strides = [1, 1]} : vector<8x256xf32> to vector<8x128xf32>
    %75 = vector.extract_strided_slice %73 {offsets = [0, 128], sizes = [8, 128], strides = [1, 1]} : vector<8x256xf32> to vector<8x128xf32>
    %76 = arith.mulf %74, %74 : vector<8x128xf32>
    %77 = arith.mulf %75, %75 : vector<8x128xf32>
    %78 = arith.addf %76, %77 : vector<8x128xf32>
    %cst_29 = arith.constant 9.99999996E-13 : f32
    %79 = vector.broadcast %cst_29 : f32 to vector<8x128xf32>
    %80 = arith.addf %78, %79 : vector<8x128xf32>
    %81 = math.rsqrt %80 : vector<8x128xf32>
    %82 = arith.mulf %78, %81 : vector<8x128xf32>
    %83 = arith.addf %82, %11 : vector<8x128xf32>
    %cst_30 = arith.constant 0.000000e+00 : f32
    %84 = vector.broadcast %cst_30 : f32 to vector<8x128xf32>
    %85 = arith.maximumf %83, %84 : vector<8x128xf32>
    %86 = arith.mulf %85, %81 : vector<8x128xf32>
    %87 = arith.mulf %74, %86 : vector<8x128xf32>
    %88 = arith.mulf %75, %86 : vector<8x128xf32>
    %89 = arith.index_cast %68 : i32 to index
    %c0_31 = arith.constant 0 : index
    %90 = vector.load %arg11[%89, %c0_31] : memref<64x256xf32, #tpu.memory_space<vmem>>, vector<8x128xf32>
    tpu.vector_store %arg11[%89, %c0_31], %87 {strides = array<i32>} : memref<64x256xf32, #tpu.memory_space<vmem>>, vector<8x128xf32>,
    %91 = arith.index_cast %68 : i32 to index
    %c128_32 = arith.constant 128 : index
    %92 = vector.load %arg11[%91, %c128_32] : memref<64x256xf32, #tpu.memory_space<vmem>>, vector<8x128xf32>
    tpu.vector_store %arg11[%91, %c128_32], %88 {strides = array<i32>} : memref<64x256xf32, #tpu.memory_space<vmem>>, vector<8x128xf32>,
    %93 = tpu.concatenate %87, %88 in 1 : vector<8x128xf32>, vector<8x128xf32> -> vector<8x256xf32>
    %c3_i32 = arith.constant 3 : i32
    %c8_i32_33 = arith.constant 8 : i32
    %94 = arith.muli %c3_i32, %c8_i32_33 : i32
    %95 = tpu.assume_multiple %94, 8 : i32
    %96 = arith.index_cast %95 : i32 to index
    %c0_34 = arith.constant 0 : index
    %97 = vector.load %arg10[%96, %c0_34] : memref<64x256xf32, #tpu.memory_space<vmem>>, vector<8x256xf32>
    %98 = arith.truncf %93 : vector<8x256xf32> to vector<8x256xbf16>
    %cst_35 = arith.constant dense<0.000000e+00> : vector<8x256xf32>
    %99 = tpu.matmul %98, %8, %cst_35 {dimension_numbers = #tpu.dot_dimension_numbers<[1], [0], [0], [1], [0, 0, 1, 1], [], []>} : vector<8x256xbf16>, vector<256x256xbf16>, vector<8x256xf32> -> vector<8x256xf32>
    %100 = arith.addf %97, %99 : vector<8x256xf32>
    %101 = vector.extract_strided_slice %100 {offsets = [0, 0], sizes = [8, 128], strides = [1, 1]} : vector<8x256xf32> to vector<8x128xf32>
    %102 = vector.extract_strided_slice %100 {offsets = [0, 128], sizes = [8, 128], strides = [1, 1]} : vector<8x256xf32> to vector<8x128xf32>
    %103 = arith.mulf %101, %101 : vector<8x128xf32>
    %104 = arith.mulf %102, %102 : vector<8x128xf32>
    %105 = arith.addf %103, %104 : vector<8x128xf32>
    %cst_36 = arith.constant 9.99999996E-13 : f32
    %106 = vector.broadcast %cst_36 : f32 to vector<8x128xf32>
    %107 = arith.addf %105, %106 : vector<8x128xf32>
    %108 = math.rsqrt %107 : vector<8x128xf32>
    %109 = arith.mulf %105, %108 : vector<8x128xf32>
    %110 = arith.addf %109, %11 : vector<8x128xf32>
    %cst_37 = arith.constant 0.000000e+00 : f32
    %111 = vector.broadcast %cst_37 : f32 to vector<8x128xf32>
    %112 = arith.maximumf %110, %111 : vector<8x128xf32>
    %113 = arith.mulf %112, %108 : vector<8x128xf32>
    %114 = arith.mulf %101, %113 : vector<8x128xf32>
    %115 = arith.mulf %102, %113 : vector<8x128xf32>
    %116 = arith.index_cast %95 : i32 to index
    %c0_38 = arith.constant 0 : index
    %117 = vector.load %arg11[%116, %c0_38] : memref<64x256xf32, #tpu.memory_space<vmem>>, vector<8x128xf32>
    tpu.vector_store %arg11[%116, %c0_38], %114 {strides = array<i32>} : memref<64x256xf32, #tpu.memory_space<vmem>>, vector<8x128xf32>,
    %118 = arith.index_cast %95 : i32 to index
    %c128_39 = arith.constant 128 : index
    %119 = vector.load %arg11[%118, %c128_39] : memref<64x256xf32, #tpu.memory_space<vmem>>, vector<8x128xf32>
    tpu.vector_store %arg11[%118, %c128_39], %115 {strides = array<i32>} : memref<64x256xf32, #tpu.memory_space<vmem>>, vector<8x128xf32>,
    %120 = tpu.concatenate %114, %115 in 1 : vector<8x128xf32>, vector<8x128xf32> -> vector<8x256xf32>
    %c4_i32 = arith.constant 4 : i32
    %c8_i32_40 = arith.constant 8 : i32
    %121 = arith.muli %c4_i32, %c8_i32_40 : i32
    %122 = tpu.assume_multiple %121, 8 : i32
    %123 = arith.index_cast %122 : i32 to index
    %c0_41 = arith.constant 0 : index
    %124 = vector.load %arg10[%123, %c0_41] : memref<64x256xf32, #tpu.memory_space<vmem>>, vector<8x256xf32>
    %125 = arith.truncf %120 : vector<8x256xf32> to vector<8x256xbf16>
    %cst_42 = arith.constant dense<0.000000e+00> : vector<8x256xf32>
    %126 = tpu.matmul %125, %8, %cst_42 {dimension_numbers = #tpu.dot_dimension_numbers<[1], [0], [0], [1], [0, 0, 1, 1], [], []>} : vector<8x256xbf16>, vector<256x256xbf16>, vector<8x256xf32> -> vector<8x256xf32>
    %127 = arith.addf %124, %126 : vector<8x256xf32>
    %128 = vector.extract_strided_slice %127 {offsets = [0, 0], sizes = [8, 128], strides = [1, 1]} : vector<8x256xf32> to vector<8x128xf32>
    %129 = vector.extract_strided_slice %127 {offsets = [0, 128], sizes = [8, 128], strides = [1, 1]} : vector<8x256xf32> to vector<8x128xf32>
    %130 = arith.mulf %128, %128 : vector<8x128xf32>
    %131 = arith.mulf %129, %129 : vector<8x128xf32>
    %132 = arith.addf %130, %131 : vector<8x128xf32>
    %cst_43 = arith.constant 9.99999996E-13 : f32
    %133 = vector.broadcast %cst_43 : f32 to vector<8x128xf32>
    %134 = arith.addf %132, %133 : vector<8x128xf32>
    %135 = math.rsqrt %134 : vector<8x128xf32>
    %136 = arith.mulf %132, %135 : vector<8x128xf32>
    %137 = arith.addf %136, %11 : vector<8x128xf32>
    %cst_44 = arith.constant 0.000000e+00 : f32
    %138 = vector.broadcast %cst_44 : f32 to vector<8x128xf32>
    %139 = arith.maximumf %137, %138 : vector<8x128xf32>
    %140 = arith.mulf %139, %135 : vector<8x128xf32>
    %141 = arith.mulf %128, %140 : vector<8x128xf32>
    %142 = arith.mulf %129, %140 : vector<8x128xf32>
    %143 = arith.index_cast %122 : i32 to index
    %c0_45 = arith.constant 0 : index
    %144 = vector.load %arg11[%143, %c0_45] : memref<64x256xf32, #tpu.memory_space<vmem>>, vector<8x128xf32>
    tpu.vector_store %arg11[%143, %c0_45], %141 {strides = array<i32>} : memref<64x256xf32, #tpu.memory_space<vmem>>, vector<8x128xf32>,
    %145 = arith.index_cast %122 : i32 to index
    %c128_46 = arith.constant 128 : index
    %146 = vector.load %arg11[%145, %c128_46] : memref<64x256xf32, #tpu.memory_space<vmem>>, vector<8x128xf32>
    tpu.vector_store %arg11[%145, %c128_46], %142 {strides = array<i32>} : memref<64x256xf32, #tpu.memory_space<vmem>>, vector<8x128xf32>,
    %147 = tpu.concatenate %141, %142 in 1 : vector<8x128xf32>, vector<8x128xf32> -> vector<8x256xf32>
    %c5_i32 = arith.constant 5 : i32
    %c8_i32_47 = arith.constant 8 : i32
    %148 = arith.muli %c5_i32, %c8_i32_47 : i32
    %149 = tpu.assume_multiple %148, 8 : i32
    %150 = arith.index_cast %149 : i32 to index
    %c0_48 = arith.constant 0 : index
    %151 = vector.load %arg10[%150, %c0_48] : memref<64x256xf32, #tpu.memory_space<vmem>>, vector<8x256xf32>
    %152 = arith.truncf %147 : vector<8x256xf32> to vector<8x256xbf16>
    %cst_49 = arith.constant dense<0.000000e+00> : vector<8x256xf32>
    %153 = tpu.matmul %152, %8, %cst_49 {dimension_numbers = #tpu.dot_dimension_numbers<[1], [0], [0], [1], [0, 0, 1, 1], [], []>} : vector<8x256xbf16>, vector<256x256xbf16>, vector<8x256xf32> -> vector<8x256xf32>
    %154 = arith.addf %151, %153 : vector<8x256xf32>
    %155 = vector.extract_strided_slice %154 {offsets = [0, 0], sizes = [8, 128], strides = [1, 1]} : vector<8x256xf32> to vector<8x128xf32>
    %156 = vector.extract_strided_slice %154 {offsets = [0, 128], sizes = [8, 128], strides = [1, 1]} : vector<8x256xf32> to vector<8x128xf32>
    %157 = arith.mulf %155, %155 : vector<8x128xf32>
    %158 = arith.mulf %156, %156 : vector<8x128xf32>
    %159 = arith.addf %157, %158 : vector<8x128xf32>
    %cst_50 = arith.constant 9.99999996E-13 : f32
    %160 = vector.broadcast %cst_50 : f32 to vector<8x128xf32>
    %161 = arith.addf %159, %160 : vector<8x128xf32>
    %162 = math.rsqrt %161 : vector<8x128xf32>
    %163 = arith.mulf %159, %162 : vector<8x128xf32>
    %164 = arith.addf %163, %11 : vector<8x128xf32>
    %cst_51 = arith.constant 0.000000e+00 : f32
    %165 = vector.broadcast %cst_51 : f32 to vector<8x128xf32>
    %166 = arith.maximumf %164, %165 : vector<8x128xf32>
    %167 = arith.mulf %166, %162 : vector<8x128xf32>
    %168 = arith.mulf %155, %167 : vector<8x128xf32>
    %169 = arith.mulf %156, %167 : vector<8x128xf32>
    %170 = arith.index_cast %149 : i32 to index
    %c0_52 = arith.constant 0 : index
    %171 = vector.load %arg11[%170, %c0_52] : memref<64x256xf32, #tpu.memory_space<vmem>>, vector<8x128xf32>
    tpu.vector_store %arg11[%170, %c0_52], %168 {strides = array<i32>} : memref<64x256xf32, #tpu.memory_space<vmem>>, vector<8x128xf32>,
    %172 = arith.index_cast %149 : i32 to index
    %c128_53 = arith.constant 128 : index
    %173 = vector.load %arg11[%172, %c128_53] : memref<64x256xf32, #tpu.memory_space<vmem>>, vector<8x128xf32>
    tpu.vector_store %arg11[%172, %c128_53], %169 {strides = array<i32>} : memref<64x256xf32, #tpu.memory_space<vmem>>, vector<8x128xf32>,
    %174 = tpu.concatenate %168, %169 in 1 : vector<8x128xf32>, vector<8x128xf32> -> vector<8x256xf32>
    %c6_i32 = arith.constant 6 : i32
    %c8_i32_54 = arith.constant 8 : i32
    %175 = arith.muli %c6_i32, %c8_i32_54 : i32
    %176 = tpu.assume_multiple %175, 8 : i32
    %177 = arith.index_cast %176 : i32 to index
    %c0_55 = arith.constant 0 : index
    %178 = vector.load %arg10[%177, %c0_55] : memref<64x256xf32, #tpu.memory_space<vmem>>, vector<8x256xf32>
    %179 = arith.truncf %174 : vector<8x256xf32> to vector<8x256xbf16>
    %cst_56 = arith.constant dense<0.000000e+00> : vector<8x256xf32>
    %180 = tpu.matmul %179, %8, %cst_56 {dimension_numbers = #tpu.dot_dimension_numbers<[1], [0], [0], [1], [0, 0, 1, 1], [], []>} : vector<8x256xbf16>, vector<256x256xbf16>, vector<8x256xf32> -> vector<8x256xf32>
    %181 = arith.addf %178, %180 : vector<8x256xf32>
    %182 = vector.extract_strided_slice %181 {offsets = [0, 0], sizes = [8, 128], strides = [1, 1]} : vector<8x256xf32> to vector<8x128xf32>
    %183 = vector.extract_strided_slice %181 {offsets = [0, 128], sizes = [8, 128], strides = [1, 1]} : vector<8x256xf32> to vector<8x128xf32>
    %184 = arith.mulf %182, %182 : vector<8x128xf32>
    %185 = arith.mulf %183, %183 : vector<8x128xf32>
    %186 = arith.addf %184, %185 : vector<8x128xf32>
    %cst_57 = arith.constant 9.99999996E-13 : f32
    %187 = vector.broadcast %cst_57 : f32 to vector<8x128xf32>
    %188 = arith.addf %186, %187 : vector<8x128xf32>
    %189 = math.rsqrt %188 : vector<8x128xf32>
    %190 = arith.mulf %186, %189 : vector<8x128xf32>
    %191 = arith.addf %190, %11 : vector<8x128xf32>
    %cst_58 = arith.constant 0.000000e+00 : f32
    %192 = vector.broadcast %cst_58 : f32 to vector<8x128xf32>
    %193 = arith.maximumf %191, %192 : vector<8x128xf32>
    %194 = arith.mulf %193, %189 : vector<8x128xf32>
    %195 = arith.mulf %182, %194 : vector<8x128xf32>
    %196 = arith.mulf %183, %194 : vector<8x128xf32>
    %197 = arith.index_cast %176 : i32 to index
    %c0_59 = arith.constant 0 : index
    %198 = vector.load %arg11[%197, %c0_59] : memref<64x256xf32, #tpu.memory_space<vmem>>, vector<8x128xf32>
    tpu.vector_store %arg11[%197, %c0_59], %195 {strides = array<i32>} : memref<64x256xf32, #tpu.memory_space<vmem>>, vector<8x128xf32>,
    %199 = arith.index_cast %176 : i32 to index
    %c128_60 = arith.constant 128 : index
    %200 = vector.load %arg11[%199, %c128_60] : memref<64x256xf32, #tpu.memory_space<vmem>>, vector<8x128xf32>
    tpu.vector_store %arg11[%199, %c128_60], %196 {strides = array<i32>} : memref<64x256xf32, #tpu.memory_space<vmem>>, vector<8x128xf32>,
    %201 = tpu.concatenate %195, %196 in 1 : vector<8x128xf32>, vector<8x128xf32> -> vector<8x256xf32>
    %c7_i32 = arith.constant 7 : i32
    %c8_i32_61 = arith.constant 8 : i32
    %202 = arith.muli %c7_i32, %c8_i32_61 : i32
    %203 = tpu.assume_multiple %202, 8 : i32
    %204 = arith.index_cast %203 : i32 to index
    %c0_62 = arith.constant 0 : index
    %205 = vector.load %arg10[%204, %c0_62] : memref<64x256xf32, #tpu.memory_space<vmem>>, vector<8x256xf32>
    %206 = arith.truncf %201 : vector<8x256xf32> to vector<8x256xbf16>
    %cst_63 = arith.constant dense<0.000000e+00> : vector<8x256xf32>
    %207 = tpu.matmul %206, %8, %cst_63 {dimension_numbers = #tpu.dot_dimension_numbers<[1], [0], [0], [1], [0, 0, 1, 1], [], []>} : vector<8x256xbf16>, vector<256x256xbf16>, vector<8x256xf32> -> vector<8x256xf32>
    %208 = arith.addf %205, %207 : vector<8x256xf32>
    %209 = vector.extract_strided_slice %208 {offsets = [0, 0], sizes = [8, 128], strides = [1, 1]} : vector<8x256xf32> to vector<8x128xf32>
    %210 = vector.extract_strided_slice %208 {offsets = [0, 128], sizes = [8, 128], strides = [1, 1]} : vector<8x256xf32> to vector<8x128xf32>
    %211 = arith.mulf %209, %209 : vector<8x128xf32>
    %212 = arith.mulf %210, %210 : vector<8x128xf32>
    %213 = arith.addf %211, %212 : vector<8x128xf32>
    %cst_64 = arith.constant 9.99999996E-13 : f32
    %214 = vector.broadcast %cst_64 : f32 to vector<8x128xf32>
    %215 = arith.addf %213, %214 : vector<8x128xf32>
    %216 = math.rsqrt %215 : vector<8x128xf32>
    %217 = arith.mulf %213, %216 : vector<8x128xf32>
    %218 = arith.addf %217, %11 : vector<8x128xf32>
    %cst_65 = arith.constant 0.000000e+00 : f32
    %219 = vector.broadcast %cst_65 : f32 to vector<8x128xf32>
    %220 = arith.maximumf %218, %219 : vector<8x128xf32>
    %221 = arith.mulf %220, %216 : vector<8x128xf32>
    %222 = arith.mulf %209, %221 : vector<8x128xf32>
    %223 = arith.mulf %210, %221 : vector<8x128xf32>
    %224 = arith.index_cast %203 : i32 to index
    %c0_66 = arith.constant 0 : index
    %225 = vector.load %arg11[%224, %c0_66] : memref<64x256xf32, #tpu.memory_space<vmem>>, vector<8x128xf32>
    tpu.vector_store %arg11[%224, %c0_66], %222 {strides = array<i32>} : memref<64x256xf32, #tpu.memory_space<vmem>>, vector<8x128xf32>,
    %226 = arith.index_cast %203 : i32 to index
    %c128_67 = arith.constant 128 : index
    %227 = vector.load %arg11[%226, %c128_67] : memref<64x256xf32, #tpu.memory_space<vmem>>, vector<8x128xf32>
    tpu.vector_store %arg11[%226, %c128_67], %223 {strides = array<i32>} : memref<64x256xf32, #tpu.memory_space<vmem>>, vector<8x128xf32>,
    %228 = tpu.concatenate %222, %223 in 1 : vector<8x128xf32>, vector<8x128xf32> -> vector<8x256xf32>
    %c8_i32_68 = arith.constant 8 : i32
    %c0_69 = arith.constant 0 : index
    %c0_70 = arith.constant 0 : index
    %229 = vector.load %arg12[%c0_69, %c0_70] : memref<8x256xf32, #tpu.memory_space<vmem>>, vector<8x256xf32>
    tpu.vector_store %arg12[%c0_69, %c0_70], %228 {strides = array<i32>} : memref<8x256xf32, #tpu.memory_space<vmem>>, vector<8x256xf32>,
    %c0_71 = arith.constant 0 : index
    %c0_72 = arith.constant 0 : index
    %230 = vector.load %arg11[%c0_71, %c0_72] : memref<64x256xf32, #tpu.memory_space<vmem>>, vector<64x256xf32>
    %c0_73 = arith.constant 0 : index
    %c0_74 = arith.constant 0 : index
    %231 = vector.load %arg7[%c0_73, %c0_74] : memref<256x128xf32, #tpu.memory_space<vmem>>, vector<256x128xf32>
    %cst_75 = arith.constant dense<0.000000e+00> : vector<64x128xf32>
    %232 = tpu.matmul %230, %231, %cst_75 {dimension_numbers = #tpu.dot_dimension_numbers<[1], [0], [0], [1], [0, 0, 1, 1], [], []>} : vector<64x256xf32>, vector<256x128xf32>, vector<64x128xf32> -> vector<64x128xf32>
    %c0_76 = arith.constant 0 : index
    %c0_77 = arith.constant 0 : index
    %233 = vector.load %arg8[%c0_76, %c0_77] : memref<1x128xf32, #tpu.memory_space<vmem>>, vector<1x128xf32>
    %234 = vector.broadcast %233 : vector<1x128xf32> to vector<64x128xf32>
    %235 = arith.addf %232, %234 : vector<64x128xf32>
    %236 = vector.shape_cast %235 : vector<64x128xf32> to vector<8x8x128xf32>
    %c0_78 = arith.constant 0 : index
    %c0_79 = arith.constant 0 : index
    %c0_80 = arith.constant 0 : index
    %237 = vector.load %arg9[%c0_78, %c0_79, %c0_80] : memref<8x8x128xf32, #tpu.memory_space<vmem>>, vector<8x8x128xf32>
    tpu.vector_store %arg9[%c0_78, %c0_79, %c0_80], %236 {strides = array<i32>} : memref<8x8x128xf32, #tpu.memory_space<vmem>>, vector<8x8x128xf32>,
    return
  }
  func.func @transform_0(%arg0: i32, %arg1: i32) -> (i32, i32, i32) {
    %c0_i32 = arith.constant 0 : i32
    %c0_i32_0 = arith.constant 0 : i32
    return %arg1, %arg0, %c0_i32 : i32, i32, i32
  }
  func.func @transform_1(%arg0: i32, %arg1: i32) -> (i32, i32) {
    %c0_i32 = arith.constant 0 : i32
    %c0_i32_0 = arith.constant 0 : i32
    return %arg0, %c0_i32 : i32, i32
  }
  func.func @transform_2(%arg0: i32, %arg1: i32) -> (i32, i32) {
    %c0_i32 = arith.constant 0 : i32
    %c0_i32_0 = arith.constant 0 : i32
    %c0_i32_1 = arith.constant 0 : i32
    return %c0_i32, %c0_i32_0 : i32, i32
  }
  func.func @transform_3(%arg0: i32, %arg1: i32) -> (i32, i32) {
    %c0_i32 = arith.constant 0 : i32
    %c0_i32_0 = arith.constant 0 : i32
    %c0_i32_1 = arith.constant 0 : i32
    return %c0_i32, %c0_i32_0 : i32, i32
  }
  func.func @transform_4(%arg0: i32, %arg1: i32) -> (i32, i32) {
    %c0_i32 = arith.constant 0 : i32
    %c0_i32_0 = arith.constant 0 : i32
    %c0_i32_1 = arith.constant 0 : i32
    return %c0_i32, %c0_i32_0 : i32, i32
  }
  func.func @transform_5(%arg0: i32, %arg1: i32) -> (i32, i32) {
    %c0_i32 = arith.constant 0 : i32
    %c0_i32_0 = arith.constant 0 : i32
    %c0_i32_1 = arith.constant 0 : i32
    return %c0_i32, %c0_i32_0 : i32, i32
  }
  func.func @transform_6(%arg0: i32, %arg1: i32) -> (i32, i32) {
    %c0_i32 = arith.constant 0 : i32
    %c0_i32_0 = arith.constant 0 : i32
    %c0_i32_1 = arith.constant 0 : i32
    return %c0_i32, %c0_i32_0 : i32, i32
  }
  func.func @transform_7(%arg0: i32, %arg1: i32) -> (i32, i32, i32) {
    %c0_i32 = arith.constant 0 : i32
    %c0_i32_0 = arith.constant 0 : i32
    return %arg1, %arg0, %c0_i32 : i32, i32, i32
  }
}

</mosaic_0001>

<bundles_post_ra>
// kernel: tpu_custom_call.1
= control target key start
LH: loop header
LB: loop body
LE: loop exit
PB: predicated region body
PF: predicated region fallthrough
CT: control target
= control target key end

     0   :  { %12 = vsyncpa [#allocation6], 0  ;;  %s2138_s0 = inlined_call_operand.hbm [shape: f32[8,8,128], index: 0, kind: input, shape index: {}]   ;;  %s2139_s1 = inlined_call_operand.hbm [shape: f32[8,256], index: 1, kind: input, shape index: {}]   ;;  %s2140_s2 = inlined_call_operand.hbm [shape: f32[128,256], index: 2, kind: input, shape index: {}]   ;;  %s2141_s3 = inlined_call_operand.hbm [shape: bf16[256,256], index: 3, kind: input, shape index: {}]   ;;  %s2142_s4 = inlined_call_operand.vmem [shape: f32[1,128], index: 4, kind: input, shape index: {}]   ;;  %s2143_s5 = inlined_call_operand.hbm [shape: f32[256,128], index: 5, kind: input, shape index: {}]   ;;  %s2144_s6 = inlined_call_operand.vmem [shape: f32[1,128], index: 6, kind: input, shape index: {}]   ;;  %s2145_s7 = inlined_call_operand.hbm [shape: f32[8,8,128], index: 7, kind: output, shape index: {}]  }
   0x1   :  { %13 = vsyncpa [#allocation9], 0 }
   0x2   :  { %14 = vsyncpa [#allocation12], 0 }
   0x3   :  { %15 = vsyncpa [#allocation7], 0  ;;  %s1563_s24 = smov [#allocation8]   ;;  %s1423_s28 = scalar_lea.hbm %s2139_s1, 256 }
   0x4   :  { %s34_s25 = sshll.u32 %s1563_s24, 4  ;;  %p1424_p0 = scmp.ne.s32.totalorder %s2139_s1, %s1423_s28  ;;  %s35_s25 = int_to_ptr.vmem [resolvable:$true] %s34_s25 }
   0x5   :  { %p1427_p1 = scmp.lt.u32.totalorder %s1423_s28, %s2139_s1 }
   0x7   :  { %p1429_p2 = pnand %p1427_p1, %p1424_p0 }
   0x9   :  { %1432 = shalt.err (!%p1429_p2)
}
   0xa   :  { %s1433_s10 = scalar_lea.vmem %s35_s25, 256  ;;  %p1438_p4 = scmp.lt.s32.totalorder %s35_s25, %s35_s25 }
   0xb   :  { %p1434_p3 = scmp.ne.s32.totalorder %s35_s25, %s1433_s10  ;;  %p1439_p5 = scmp.lt.s32.totalorder %s1433_s10, %s1433_s10 }
   0xd   :  { %p1440_p6 = por %p1439_p5, %p1438_p4 }
   0xf   :  { %p1441_p7 = pnand %p1440_p6, %p1434_p3 }
  0x11   :  { %1444 = shalt.err (!%p1441_p7)
}
  0x12   :  { %37 = dma.hbm_to_vmem [thread:$0]  %s2139_s1, 256, %s35_s25, [#allocation9]  }
  0x13   :  { %s1564_s13 = smov [#allocation11]   ;;  %s1565_s15 = smov [#allocation5]  }
  0x14   :  { %s55_s14 = sshll.u32 %s1564_s13, 4  ;;  %s21_s16 = sshll.u32 %s1565_s15, 4  ;;  %s56_s14 = int_to_ptr.vmem [resolvable:$true] %s55_s14  ;;  %s22_s16 = int_to_ptr.vmem [resolvable:$true] %s21_s16 }
  0x15   :  { %s1445_s19 = scalar_lea.hbm %s2141_s3, 4096 }
  0x16   :  { %p1446_p8 = scmp.ne.s32.totalorder %s2141_s3, %s1445_s19  ;;  %p1449_p9 = scmp.lt.u32.totalorder %s1445_s19, %s2141_s3 }
  0x18   :  { %p1451_p10 = pnand %p1449_p9, %p1446_p8 }
  0x1a   :  { %1454 = shalt.err (!%p1451_p10)
}
  0x1b   :  { %s1455_s1 = scalar_lea.vmem %s56_s14, 4096  ;;  %p1460_p12 = scmp.lt.s32.totalorder %s56_s14, %s56_s14 }
  0x1c   :  { %p1456_p11 = scmp.ne.s32.totalorder %s56_s14, %s1455_s1  ;;  %p1461_p13 = scmp.lt.s32.totalorder %s1455_s1, %s1455_s1 }
  0x1e   :  { %p1462_p0 = por %p1461_p13, %p1460_p12 }
  0x20   :  { %p1463_p1 = pnand %p1462_p0, %p1456_p11 }
  0x22   :  { %1466 = shalt.err (!%p1463_p1)
}
  0x23   :  { %s1566_s24 = smov 128   ;;  %s1567_s25 = smov 8  }
  0x24   :  { %61 = dma.hbm_to_vmem [thread:$0]  %s2141_s3, 4096, %s56_s14, [#allocation12], %s1566_s24, %s1566_s24, %s1567_s25  }
  0x25   :  { %s1467_s30 = scalar_lea.hbm %s2138_s0, 1024 }
  0x26   :  { %p1468_p2 = scmp.ne.s32.totalorder %s2138_s0, %s1467_s30  ;;  %p1471_p3 = scmp.lt.u32.totalorder %s1467_s30, %s2138_s0 }
  0x28   :  { %p1473_p4 = pnand %p1471_p3, %p1468_p2 }
  0x2a   :  { %1476 = shalt.err (!%p1473_p4)
}
  0x2b   :  { %s1477_s12 = scalar_lea.vmem %s22_s16, 1024  ;;  %p1482_p6 = scmp.lt.s32.totalorder %s22_s16, %s22_s16 }
  0x2c   :  { %p1478_p5 = scmp.ne.s32.totalorder %s22_s16, %s1477_s12  ;;  %p1483_p7 = scmp.lt.s32.totalorder %s1477_s12, %s1477_s12 }
  0x2e   :  { %p1484_p8 = por %p1483_p7, %p1482_p6 }
  0x30   :  { %p1485_p9 = pnand %p1484_p8, %p1478_p5 }
  0x32   :  { %1488 = shalt.err (!%p1485_p9)
}
  0x33   :  { %27 = dma.hbm_to_vmem [thread:$0]  %s2138_s0, 1024, %s22_s16, [#allocation6], %s1566_s24, %s1566_s24, %s1567_s25  }
  0x34   :  { %s1568_s14 = smov [#allocation10]   ;;  %s1489_s19 = scalar_lea.hbm %s2140_s2, 4096 }
  0x35   :  { %s43_s15 = sshll.u32 %s1568_s14, 4  ;;  %p1490_p10 = scmp.ne.s32.totalorder %s2140_s2, %s1489_s19  ;;  %s44_s15 = int_to_ptr.vmem [resolvable:$true] %s43_s15 }
  0x36   :  { %p1493_p11 = scmp.lt.u32.totalorder %s1489_s19, %s2140_s2 }
  0x38   :  { %p1495_p12 = pnand %p1493_p11, %p1490_p10 }
  0x3a   :  { %1498 = shalt.err (!%p1495_p12)
}
  0x3b   :  { %s1499_s1 = scalar_lea.vmem %s44_s15, 4096  ;;  %p1504_p0 = scmp.lt.s32.totalorder %s44_s15, %s44_s15 }
  0x3c   :  { %p1500_p13 = scmp.ne.s32.totalorder %s44_s15, %s1499_s1  ;;  %p1505_p1 = scmp.lt.s32.totalorder %s1499_s1, %s1499_s1 }
  0x3e   :  { %p1506_p2 = por %p1505_p1, %p1504_p0 }
  0x40   :  { %p1507_p3 = pnand %p1506_p2, %p1500_p13 }
  0x42   :  { %1510 = shalt.err (!%p1507_p3)
}
  0x43   :  { %s1569_s0 = smov 256   ;;  %s1570_s16 = smov 16  }
  0x44   :  { %49 = dma.hbm_to_vmem [thread:$0]  %s2140_s2, 4096, %s44_s15, [#allocation9], %s1569_s0, %s1569_s0, %s1570_s16  }
  0x45   :  { %s1571_s28 = smov [#allocation13]   ;;  %s1511_s9 = scalar_lea.hbm %s2143_s5, 4096 }
  0x46   :  { %s69_s29 = sshll.u32 %s1571_s28, 4  ;;  %p1512_p4 = scmp.ne.s32.totalorder %s2143_s5, %s1511_s9  ;;  %s70_s29 = int_to_ptr.vmem [resolvable:$true] %s69_s29 }
  0x47   :  { %p1515_p5 = scmp.lt.u32.totalorder %s1511_s9, %s2143_s5 }
  0x49   :  { %p1517_p6 = pnand %p1515_p5, %p1512_p4 }
  0x4b   :  { %1520 = shalt.err (!%p1517_p6)
}
  0x4c   :  { %s1521_s13 = scalar_lea.vmem %s70_s29, 4096  ;;  %p1526_p8 = scmp.lt.s32.totalorder %s70_s29, %s70_s29 }
  0x4d   :  { %p1522_p7 = scmp.ne.s32.totalorder %s70_s29, %s1521_s13  ;;  %p1527_p9 = scmp.lt.s32.totalorder %s1521_s13, %s1521_s13 }
  0x4f   :  { %p1528_p10 = por %p1527_p9, %p1526_p8 }
  0x51   :  { %p1529_p11 = pnand %p1528_p10, %p1522_p7 }
  0x53   :  { %1532 = shalt.err (!%p1529_p11)
}
  0x54   :  { %75 = dma.hbm_to_vmem [thread:$0]  %s2143_s5, 4096, %s70_s29, [#allocation12], %s1566_s24, %s1566_s24, %s1567_s25  }
  0x55   :  { %1555 = dma.done.wait [#allocation6], 1024  }
  0x56   :  { %1556 = vsyncadd [#allocation6], 4294966272 }
  0x57   :  { %1557 = dma.done.wait [#allocation9], 4352  }
  0x58   :  { %1558 = vsyncadd [#allocation9], 4294962944 }
  0x59   :  { %1559 = dma.done.wait [#allocation12], 8192  }
  0x5a   :  { %1560 = vsyncadd [#allocation12], 4294959104  ;;  %v1572_v0 = vmov 0.0   ;;  %v1684_v1 = vld [vmem:[#allocation11 + $0x4] ss:$8 sps:$4 sm:$0xff]   ;;  %v112_v10 = vld [vmem:[#allocation10 + $0x18] sm:$0xff] }
  0x5b   :  { %205 = vmatprep.mubr.f32.mxu0 %v1572_v0  ;;  %v1686_v2 = vld [vmem:[#allocation11] ss:$8 sps:$4 sm:$0xff]   ;;  %478 = vmatprep.subr.bf16.mxu1 %v1684_v1  ;;  %v1689_v3 = vld [vmem:[#allocation11 + $0x14] ss:$8 sps:$4 sm:$0xff]   ;;  %v1692_v4 = vld [vmem:[#allocation11 + $0x10] ss:$8 sps:$4 sm:$0xff]  }
  0x5c   :  { %479 = vmatpush1.bf16.msra.mxu1 %v1686_v2  ;;  %v1695_v5 = vld [vmem:[#allocation11 + $0x24] ss:$8 sps:$4 sm:$0xff]   ;;  %v1698_v6 = vld [vmem:[#allocation11 + $0x20] ss:$8 sps:$4 sm:$0xff]   ;;  %v1701_v7 = vld [vmem:[#allocation11 + $0x34] ss:$8 sps:$4 sm:$0xff]  }
  0x5d   :  { %480 = vmatprep.subr.bf16.mxu1 %v1689_v3  ;;  %v1703_v8 = vld [vmem:[#allocation11 + $0x30] ss:$8 sps:$4 sm:$0xff]   ;;  %v110_v9 = vld [vmem:[#allocation10 + $0x8] sm:$0xff]  ;;  %v109_v11 = vld [vmem:[#allocation10] sm:$0xff] }
  0x5e   :  { %v111_v12 = vld [vmem:[#allocation10 + $0x10] sm:$0xff]  ;;  %v1707_v13 = vld [vmem:[#allocation11 + $0x44] ss:$8 sps:$4 sm:$0xff]   ;;  %v1284_v14 = vpack.c.bf16 %v112_v10, %v110_v9  ;;  %v116_v17 = vld [vmem:[#allocation10 + $0x38] sm:$0xff] }
  0x5f   :  { %v1286_v15 = vpack.c.bf16 %v111_v12, %v109_v11  ;;  %v114_v16 = vld [vmem:[#allocation10 + $0x28] sm:$0xff]  ;;  %v113_v19 = vld [vmem:[#allocation10 + $0x20] sm:$0xff]  ;;  %v115_v20 = vld [vmem:[#allocation10 + $0x30] sm:$0xff] }
  0x60   :  { %481 = vmatpush1.bf16.msra.mxu1 %v1692_v4  ;;  %1285 = vmatprep.subr.bf16.mxu0 %v1284_v14  ;;  %v1288_v18 = vpack.c.bf16 %v116_v17, %v114_v16  ;;  %v1710_v21 = vld [vmem:[#allocation11 + $0x40] ss:$8 sps:$4 sm:$0xff]   ;;  %v1712_v22 = vld [vmem:[#allocation11 + $0x54] ss:$8 sps:$4 sm:$0xff]   ;;  %v1290_v23 = vpack.c.bf16 %v115_v20, %v113_v19  ;;  %v1715_v29 = vld [vmem:[#allocation11 + $0x50] ss:$8 sps:$4 sm:$0xff]  }
  0x61   :  { %482 = vmatprep.subr.bf16.mxu1 %v1695_v5  ;;  %1287 = vmatpush1.bf16.msra.mxu0 %v1286_v15  ;;  %v118_v24 = vld [vmem:[#allocation10 + $0x48] sm:$0xff]  ;;  %v120_v25 = vld [vmem:[#allocation10 + $0x58] sm:$0xff]  ;;  %v117_v26 = vld [vmem:[#allocation10 + $0x40] sm:$0xff] }
  0x62   :  { %1289 = vmatprep.subr.bf16.mxu0 %v1288_v18  ;;  %v1292_v27 = vpack.c.bf16 %v120_v25, %v118_v24  ;;  %v119_v28 = vld [vmem:[#allocation10 + $0x50] sm:$0xff]  ;;  %v122_v30 = vld [vmem:[#allocation10 + $0x68] sm:$0xff]  ;;  %v124_v33 = vld [vmem:[#allocation10 + $0x78] sm:$0xff] }
  0x63   :  { %v1718_v31 = vld [vmem:[#allocation11 + $0x64] ss:$8 sps:$4 sm:$0xff]   ;;  %v1294_v32 = vpack.c.bf16 %v119_v28, %v117_v26  ;;  %v1296_v35 = vpack.c.bf16 %v124_v33, %v122_v30  ;;  %v123_v36 = vld [vmem:[#allocation10 + $0x70] sm:$0xff]  ;;  %v128_v38 = vld [vmem:[#allocation10 + $0x98] sm:$0xff] }
  0x64   :  { %483 = vmatpush1.bf16.msra.mxu1 %v1698_v6  ;;  %v121_v34 = vld [vmem:[#allocation10 + $0x60] sm:$0xff]  ;;  %v126_v37 = vld [vmem:[#allocation10 + $0x88] sm:$0xff]  ;;  %v1724_v40 = vld [vmem:[#allocation11 + $0x74] ss:$8 sps:$4 sm:$0xff]  }
  0x65   :  { %484 = vmatprep.subr.bf16.mxu1 %v1701_v7  ;;  %1291 = vmatpush1.bf16.msra.mxu0 %v1290_v23  ;;  %v1722_v39 = vld [vmem:[#allocation11 + $0x60] ss:$8 sps:$4 sm:$0xff]   ;;  %v1298_v41 = vpack.c.bf16 %v123_v36, %v121_v34  ;;  %v1300_v42 = vpack.c.bf16 %v128_v38, %v126_v37  ;;  %v127_v44 = vld [vmem:[#allocation10 + $0x90] sm:$0xff]  ;;  %v132_v46 = vld [vmem:[#allocation10 + $0xb8] sm:$0xff] }
  0x66   :  { %1293 = vmatprep.subr.bf16.mxu0 %v1292_v27  ;;  %v125_v43 = vld [vmem:[#allocation10 + $0x80] sm:$0xff]  ;;  %v130_v45 = vld [vmem:[#allocation10 + $0xa8] sm:$0xff]  ;;  %v1728_v47 = vld [vmem:[#allocation11 + $0x70] ss:$8 sps:$4 sm:$0xff]  }
  0x67   :  { %v1730_v48 = vld [vmem:[#allocation11 + $0x84] ss:$8 sps:$4 sm:$0xff]   ;;  %v1302_v49 = vpack.c.bf16 %v127_v44, %v125_v43  ;;  %v1304_v51 = vpack.c.bf16 %v132_v46, %v130_v45  ;;  %v131_v52 = vld [vmem:[#allocation10 + $0xb0] sm:$0xff]  ;;  %v136_v54 = vld [vmem:[#allocation10 + $0xd8] sm:$0xff] }
  0x68   :  { %485 = vmatpush1.bf16.msra.mxu1 %v1703_v8  ;;  %v129_v50 = vld [vmem:[#allocation10 + $0xa0] sm:$0xff]  ;;  %v134_v53 = vld [vmem:[#allocation10 + $0xc8] sm:$0xff]  ;;  %v1736_v56 = vld [vmem:[#allocation11 + $0x94] ss:$8 sps:$4 sm:$0xff]  }
  0x69   :  { %486 = vmatprep.subr.bf16.mxu1 %v1707_v13  ;;  %1295 = vmatpush1.bf16.msra.mxu0 %v1294_v32  ;;  %v1734_v55 = vld [vmem:[#allocation11 + $0x80] ss:$8 sps:$4 sm:$0xff]   ;;  %v1306_v57 = vpack.c.bf16 %v131_v52, %v129_v50  ;;  %v1308_v58 = vpack.c.bf16 %v136_v54, %v134_v53  ;;  %v135_v60 = vld [vmem:[#allocation10 + $0xd0] sm:$0xff]  ;;  %v98_v61 = vld [vmem:[#allocation8 + $0x8] sm:$0xff] }
  0x6a   :  { %1297 = vmatprep.subr.bf16.mxu0 %v1296_v35  ;;  %v133_v59 = vld [vmem:[#allocation10 + $0xc0] sm:$0xff]  ;;  %v138_v62 = vld [vmem:[#allocation10 + $0xe8] sm:$0xff]  ;;  %v140_v63 = vld [vmem:[#allocation10 + $0xf8] sm:$0xff]  ;;  %v317_v9 = vpack.c.bf16 %v98_v61, %v98_v61 }
  0x6b   :  { %v1740_v10 = vld [vmem:[#allocation11 + $0x90] ss:$8 sps:$4 sm:$0xff]   ;;  %v1310_v11 = vpack.c.bf16 %v135_v60, %v133_v59  ;;  %v1743_v12 = vld [vmem:[#allocation11 + $0xa4] ss:$8 sps:$4 sm:$0xff]   ;;  %v1312_v14 = vpack.c.bf16 %v140_v63, %v138_v62  ;;  %v1746_v17 = vld [vmem:[#allocation11 + $0xa0] ss:$8 sps:$4 sm:$0xff]  }
  0x6c   :  { %487 = vmatpush1.bf16.msra.mxu1 %v1710_v21  ;;  %v137_v15 = vld [vmem:[#allocation10 + $0xe0] sm:$0xff]  ;;  %v139_v16 = vld [vmem:[#allocation10 + $0xf0] sm:$0xff]  ;;  %510 = vmatprep.mubr.bf16.mxu1 %v317_v9  ;;  %v102_v36 = vld [vmem:[#allocation5 + $0x8] sm:$0xff] }
  0x6d   :  { %488 = vmatprep.subr.bf16.mxu1 %v1712_v22  ;;  %1299 = vmatpush1.bf16.msra.mxu0 %v1298_v41  ;;  %v1314_v18 = vpack.c.bf16 %v139_v16, %v137_v15  ;;  %v1749_v19 = vld [vmem:[#allocation11 + $0xb4] ss:$8 sps:$4 sm:$0xff]   ;;  %v1752_v20 = vld [vmem:[#allocation11 + $0xb0] ss:$8 sps:$4 sm:$0xff]   ;;  %v1755_v24 = vld [vmem:[#allocation11 + $0xc4] ss:$8 sps:$4 sm:$0xff]  }
  0x6e   :  { %1301 = vmatprep.subr.bf16.mxu0 %v1300_v42  ;;  %v101_v23 = vld [vmem:[#allocation5] sm:$0xff]  ;;  %v1759_v25 = vld [vmem:[#allocation11 + $0xc0] ss:$8 sps:$4 sm:$0xff]   ;;  %v1772_v28 = vld [vmem:[#allocation11 + $0xe4] ss:$8 sps:$4 sm:$0xff]  }
  0x6f   :  { %v1763_v26 = vld [vmem:[#allocation11 + $0xd4] ss:$8 sps:$4 sm:$0xff]   ;;  %v1768_v27 = vld [vmem:[#allocation11 + $0xd0] ss:$8 sps:$4 sm:$0xff]   ;;  %v1776_v30 = vld [vmem:[#allocation11 + $0xe0] ss:$8 sps:$4 sm:$0xff]  }
  0x70   :  { %489 = vmatpush1.bf16.msra.mxu1 %v1715_v29  ;;  %v1780_v32 = vld [vmem:[#allocation11 + $0xf4] ss:$8 sps:$4 sm:$0xff]   ;;  %v1784_v33 = vld [vmem:[#allocation11 + $0xf0] ss:$8 sps:$4 sm:$0xff]   ;;  %v103_v37 = vld [vmem:[#allocation5 + $0x10] sm:$0xff] }
  0x71   :  { %490 = vmatprep.subr.bf16.mxu1 %v1718_v31  ;;  %1303 = vmatpush1.bf16.msra.mxu0 %v1302_v49  ;;  %v97_v34 = vld [vmem:[#allocation8] sm:$0xff]  ;;  %v104_v38 = vld [vmem:[#allocation5 + $0x18] sm:$0xff]  ;;  %v106_v42 = vld [vmem:[#allocation5 + $0x28] sm:$0xff] }
  0x72   :  { %1305 = vmatprep.subr.bf16.mxu0 %v1304_v51  ;;  %v316_v35 = vpack.c.bf16 %v97_v34, %v97_v34  ;;  %v105_v41 = vld [vmem:[#allocation5 + $0x20] sm:$0xff]  ;;  %v107_v43 = vld [vmem:[#allocation5 + $0x30] sm:$0xff]  ;;  %v108_v44 = vld [vmem:[#allocation5 + $0x38] sm:$0xff] }
  0x74   :  { %491 = vmatpush1.bf16.msra.mxu1 %v1722_v39 }
  0x75   :  { %492 = vmatprep.subr.bf16.mxu1 %v1724_v40  ;;  %1307 = vmatpush1.bf16.msra.mxu0 %v1306_v57 }
  0x76   :  { %1309 = vmatprep.subr.bf16.mxu0 %v1308_v58 }
  0x78   :  { %493 = vmatpush1.bf16.msra.mxu1 %v1728_v47 }
  0x79   :  { %494 = vmatprep.subr.bf16.mxu1 %v1730_v48  ;;  %1311 = vmatpush1.bf16.msra.mxu0 %v1310_v11 }
  0x7a   :  { %1313 = vmatprep.subr.bf16.mxu0 %v1312_v14 }
  0x7c   :  { %495 = vmatpush1.bf16.msra.mxu1 %v1734_v55 }
  0x7d   :  { %496 = vmatprep.subr.bf16.mxu1 %v1736_v56  ;;  %1315 = vmatpush1.bf16.msra.mxu0 %v1314_v18 }
  0x7e   :  { %543 = vmatprep.subr.bf16.mxu0 %v1684_v1 }
  0x80   :  { %497 = vmatpush1.bf16.msra.mxu1 %v1740_v10  ;;  %206 = vmatmul.mubr.f32.vlgmr.msra.gmra.mrb[0].mxu0 %v101_v23 }
  0x81   :  { %498 = vmatprep.subr.bf16.mxu1 %v1743_v12  ;;  %544 = vmatpush1.bf16.msra.mxu0 %v1686_v2 }
  0x82   :  { %545 = vmatprep.subr.bf16.mxu0 %v1689_v3  ;;  %211 = vmatprep.mubr.f32.mxu0 %v1572_v0 }
  0x84   :  { %499 = vmatpush1.bf16.msra.mxu1 %v1746_v17  ;;  %212 = vmatmul.mubr.f32.gmra.mrb[2].mxu0 %v102_v36 }
  0x85   :  { %500 = vmatprep.subr.bf16.mxu1 %v1749_v19  ;;  %546 = vmatpush1.bf16.msra.mxu0 %v1692_v4 }
  0x86   :  { %547 = vmatprep.subr.bf16.mxu0 %v1695_v5  ;;  %217 = vmatprep.mubr.f32.mxu0 %v1572_v0 }
  0x88   :  { %501 = vmatpush1.bf16.msra.mxu1 %v1752_v20  ;;  %218 = vmatmul.mubr.f32.gmra.mrb[4].mxu0 %v103_v37 }
  0x89   :  { %502 = vmatprep.subr.bf16.mxu1 %v1755_v24  ;;  %548 = vmatpush1.bf16.msra.mxu0 %v1698_v6 }
  0x8a   :  { %549 = vmatprep.subr.bf16.mxu0 %v1701_v7  ;;  %223 = vmatprep.mubr.f32.mxu0 %v1572_v0 }
  0x8c   :  { %503 = vmatpush1.bf16.msra.mxu1 %v1759_v25  ;;  %224 = vmatmul.mubr.f32.gmra.mrb[6].mxu0 %v104_v38 }
  0x8d   :  { %504 = vmatprep.subr.bf16.mxu1 %v1763_v26  ;;  %550 = vmatpush1.bf16.msra.mxu0 %v1703_v8 }
  0x8e   :  { %551 = vmatprep.subr.bf16.mxu0 %v1707_v13  ;;  %229 = vmatprep.mubr.f32.mxu0 %v1572_v0 }
  0x90   :  { %505 = vmatpush1.bf16.msra.mxu1 %v1768_v27  ;;  %230 = vmatmul.mubr.f32.gmra.mrb[8].mxu0 %v105_v41 }
  0x91   :  { %506 = vmatprep.subr.bf16.mxu1 %v1772_v28  ;;  %552 = vmatpush1.bf16.msra.mxu0 %v1710_v21 }
  0x92   :  { %553 = vmatprep.subr.bf16.mxu0 %v1712_v22  ;;  %235 = vmatprep.mubr.f32.mxu0 %v1572_v0 }
  0x94   :  { %507 = vmatpush1.bf16.msra.mxu1 %v1776_v30  ;;  %236 = vmatmul.mubr.f32.gmra.mrb[10].mxu0 %v106_v42 }
  0x95   :  { %508 = vmatprep.subr.bf16.mxu1 %v1780_v32  ;;  %554 = vmatpush1.bf16.msra.mxu0 %v1715_v29 }
  0x96   :  { %555 = vmatprep.subr.bf16.mxu0 %v1718_v31  ;;  %241 = vmatprep.mubr.f32.mxu0 %v1572_v0 }
  0x98   :  { %509 = vmatpush1.bf16.msra.mxu1 %v1784_v33  ;;  %242 = vmatmul.mubr.f32.gmra.mrb[12].mxu0 %v107_v43 }
  0x99   :  { %608 = vmatprep.subr.bf16.mxu1 %v1684_v1  ;;  %556 = vmatpush1.bf16.msra.mxu0 %v1722_v39 }
  0x9a   :  { %557 = vmatprep.subr.bf16.mxu0 %v1724_v40  ;;  %247 = vmatprep.mubr.f32.mxu0 %v1572_v0  ;;  %v1856_v0 = vld [vmem:[%s2142_s4] ss:$0 sm:$0xff] }
  0x9b   :  { %511 = vmatmul.mubr.bf16.vlgmr.msra.gmra.mrb[0].mxu1 %v316_v35 }
  0x9c   :  { %609 = vmatpush1.bf16.msra.mxu1 %v1686_v2  ;;  %248 = vmatmul.mubr.f32.gmra.mrb[14].mxu0 %v108_v44 }
  0x9d   :  { %610 = vmatprep.subr.bf16.mxu1 %v1689_v3  ;;  %558 = vmatpush1.bf16.msra.mxu0 %v1728_v47 }
  0x9e   :  { %559 = vmatprep.subr.bf16.mxu0 %v1730_v48 }
  0xa0   :  { %611 = vmatpush1.bf16.msra.mxu1 %v1692_v4 }
  0xa1   :  { %612 = vmatprep.subr.bf16.mxu1 %v1695_v5  ;;  %560 = vmatpush1.bf16.msra.mxu0 %v1734_v55 }
  0xa2   :  { %561 = vmatprep.subr.bf16.mxu0 %v1736_v56 }
  0xa4   :  { %613 = vmatpush1.bf16.msra.mxu1 %v1698_v6 }
  0xa5   :  { %614 = vmatprep.subr.bf16.mxu1 %v1701_v7  ;;  %562 = vmatpush1.bf16.msra.mxu0 %v1740_v10 }
  0xa6   :  { %563 = vmatprep.subr.bf16.mxu0 %v1743_v12 }
  0xa8   :  { %615 = vmatpush1.bf16.msra.mxu1 %v1703_v8 }
  0xa9   :  { %616 = vmatprep.subr.bf16.mxu1 %v1707_v13  ;;  %564 = vmatpush1.bf16.msra.mxu0 %v1746_v17 }
  0xaa   :  { %565 = vmatprep.subr.bf16.mxu0 %v1749_v19 }
  0xac   :  { %617 = vmatpush1.bf16.msra.mxu1 %v1710_v21 }
  0xad   :  { %618 = vmatprep.subr.bf16.mxu1 %v1712_v22  ;;  %566 = vmatpush1.bf16.msra.mxu0 %v1752_v20 }
  0xae   :  { %567 = vmatprep.subr.bf16.mxu0 %v1755_v24 }
  0xb0   :  { %619 = vmatpush1.bf16.msra.mxu1 %v1715_v29 }
  0xb1   :  { %620 = vmatprep.subr.bf16.mxu1 %v1718_v31  ;;  %568 = vmatpush1.bf16.msra.mxu0 %v1759_v25 }
  0xb2   :  { %569 = vmatprep.subr.bf16.mxu0 %v1763_v26 }
  0xb4   :  { %621 = vmatpush1.bf16.msra.mxu1 %v1722_v39 }
  0xb5   :  { %622 = vmatprep.subr.bf16.mxu1 %v1724_v40  ;;  %570 = vmatpush1.bf16.msra.mxu0 %v1768_v27 }
  0xb6   :  { %571 = vmatprep.subr.bf16.mxu0 %v1772_v28 }
  0xb8   :  { %623 = vmatpush1.bf16.msra.mxu1 %v1728_v47 }
  0xb9   :  { %624 = vmatprep.subr.bf16.mxu1 %v1730_v48  ;;  %572 = vmatpush1.bf16.msra.mxu0 %v1776_v30 }
  0xba   :  { %573 = vmatprep.subr.bf16.mxu0 %v1780_v32 }
  0xbc   :  { %625 = vmatpush1.bf16.msra.mxu1 %v1734_v55 }
  0xbd   :  { %626 = vmatprep.subr.bf16.mxu1 %v1736_v56  ;;  %574 = vmatpush1.bf16.msra.mxu0 %v1784_v33 }
  0xbe   :  { %673 = vmatprep.subr.bf16.mxu0 %v1684_v1 }
  0xc0   :  { %627 = vmatpush1.bf16.msra.mxu1 %v1740_v10 }
  0xc1   :  { %628 = vmatprep.subr.bf16.mxu1 %v1743_v12 }
  0xc4   :  { %629 = vmatpush1.bf16.msra.mxu1 %v1746_v17 }
  0xc5   :  { %630 = vmatprep.subr.bf16.mxu1 %v1749_v19 }
  0xc8   :  { %631 = vmatpush1.bf16.msra.mxu1 %v1752_v20 }
  0xc9   :  { %632 = vmatprep.subr.bf16.mxu1 %v1755_v24 }
  0xcc   :  { %633 = vmatpush1.bf16.msra.mxu1 %v1759_v25 }
  0xcd   :  { %634 = vmatprep.subr.bf16.mxu1 %v1763_v26 }
  0xd0   :  { %635 = vmatpush1.bf16.msra.mxu1 %v1768_v27 }
  0xd1   :  { %636 = vmatprep.subr.bf16.mxu1 %v1772_v28 }
  0xd4   :  { %637 = vmatpush1.bf16.msra.mxu1 %v1776_v30 }
  0xd5   :  { %638 = vmatprep.subr.bf16.mxu1 %v1780_v32 }
  0xd8   :  { %639 = vmatpush1.bf16.msra.mxu1 %v1784_v33 }
  0xd9   :  { %738 = vmatprep.subr.bf16.mxu1 %v1684_v1 }
 0x153   :  { %v207_v45 = vpop.f32.mrb[0].mxu0 }
 0x154   :  { %v209_v46 = vpop.f32.mrb[1].mxu0 }
 0x157   :  { %v213_v23 = vpop.f32.mrb[2].mxu0 }
 0x158   :  { %v215_v34 = vpop.f32.mrb[3].mxu0 }
 0x15b   :  { %v1896_v35 = vpop.f32.mrb[4].mxu0 }
 0x15c   :  { %v1899_v36 = vpop.f32.mrb[5].mxu0 }
 0x15f   :  { %v1902_v37 = vpop.f32.mrb[6].mxu0 }
 0x160   :  { %v1905_v38 = vpop.f32.mrb[7].mxu0 }
 0x163   :  { %v1907_v41 = vpop.f32.mrb[8].mxu0 }
 0x164   :  { %v1909_v42 = vpop.f32.mrb[9].mxu0 }
 0x167   :  { %v1911_v43 = vpop.f32.mrb[10].mxu0 }
 0x168   :  { %v1913_v44 = vpop.f32.mrb[11].mxu0 }
 0x16e   :  { %v512_v49 = vpop.f32.mrb[0].mxu1 }
 0x16f   :  { %v519_v50 = vadd.f32 %v512_v49, %v207_v45  ;;  %v514_v51 = vpop.f32.mrb[1].mxu1  ;;  %v1915_v45 = vpop.f32.mrb[12].mxu0 }
 0x170   :  { %v520_v52 = vadd.f32 %v514_v51, %v209_v46  ;;  %v516_v53 = vpop.f32.mrb[2].mxu1  ;;  %v1917_v46 = vpop.f32.mrb[13].mxu0 }
 0x171   :  { %v521_v54 = vmul.f32 %v519_v50, %v519_v50  ;;  %v517_v57 = vpop.f32.mrb[3].mxu1  ;;  %v1919_v49 = vpop.f32.mrb[14].mxu0 }
 0x172   :  { %v522_v58 = vmul.f32 %v520_v52, %v520_v52  ;;  %2146 = vst [vmem:[#allocation19_spill] sm:$0xff] %v1919_v49 }
 0x174   :  { %v523_v59 = vadd.f32 %v522_v58, %v521_v54 }
 0x176   :  { %v524_v60 = vadd.f32 1e-12, %v523_v59 }
 0x178   :  { %1407 = vrsqrt.f32 %v524_v60 }
 0x182   :  { %v1408_v61 = vpop.eup %1407 }
 0x183   :  { %v526_v62 = vmul.f32 %v1408_v61, %v523_v59 }
 0x185   :  { %v527_v63 = vadd.f32 %v1856_v0, %v526_v62 }
 0x187   :  { %v528_v9 = vmax.f32 %v527_v63, 0.0 }
 0x189   :  { %v529_v11 = vmul.f32 %v1408_v61, %v528_v9 }
 0x18b   :  { %v1859_v14 = vmul.f32 %v529_v11, %v519_v50  ;;  %v1861_v15 = vmul.f32 %v529_v11, %v520_v52  ;;  %v1921_v50 = vpop.f32.mrb[15].mxu0 }
 0x18c   :  { %2147 = vst [vmem:[#allocation20_spill] sm:$0xff] %v1921_v50 }
 0x18d   :  { %v541_v16 = vpack.c.bf16 %v1859_v14, %v1859_v14  ;;  %v542_v18 = vpack.c.bf16 %v1861_v15, %v1861_v15 }
 0x18f   :  { %575 = vmatprep.mubr.bf16.mxu0 %v542_v18 }
 0x190   :  { %576 = vmatmul.mubr.bf16.vlgmr.msra.gmra.mrb[16].mxu0 %v541_v16 }
 0x191   :  { %674 = vmatpush1.bf16.msra.mxu0 %v1686_v2 }
 0x192   :  { %675 = vmatprep.subr.bf16.mxu0 %v1689_v3 }
 0x195   :  { %676 = vmatpush1.bf16.msra.mxu0 %v1692_v4 }
 0x196   :  { %677 = vmatprep.subr.bf16.mxu0 %v1695_v5 }
 0x199   :  { %678 = vmatpush1.bf16.msra.mxu0 %v1698_v6 }
 0x19a   :  { %679 = vmatprep.subr.bf16.mxu0 %v1701_v7 }
 0x19d   :  { %680 = vmatpush1.bf16.msra.mxu0 %v1703_v8 }
 0x19e   :  { %681 = vmatprep.subr.bf16.mxu0 %v1707_v13 }
 0x1a1   :  { %682 = vmatpush1.bf16.msra.mxu0 %v1710_v21 }
 0x1a2   :  { %683 = vmatprep.subr.bf16.mxu0 %v1712_v22 }
 0x1a5   :  { %684 = vmatpush1.bf16.msra.mxu0 %v1715_v29 }
 0x1a6   :  { %685 = vmatprep.subr.bf16.mxu0 %v1718_v31 }
 0x1a9   :  { %686 = vmatpush1.bf16.msra.mxu0 %v1722_v39 }
 0x1aa   :  { %687 = vmatprep.subr.bf16.mxu0 %v1724_v40 }
 0x1ad   :  { %688 = vmatpush1.bf16.msra.mxu0 %v1728_v47 }
 0x1ae   :  { %689 = vmatprep.subr.bf16.mxu0 %v1730_v48 }
 0x1b1   :  { %690 = vmatpush1.bf16.msra.mxu0 %v1734_v55 }
 0x1b2   :  { %691 = vmatprep.subr.bf16.mxu0 %v1736_v56 }
 0x1b5   :  { %692 = vmatpush1.bf16.msra.mxu0 %v1740_v10 }
 0x1b6   :  { %693 = vmatprep.subr.bf16.mxu0 %v1743_v12 }
 0x1b9   :  { %694 = vmatpush1.bf16.msra.mxu0 %v1746_v17 }
 0x1ba   :  { %695 = vmatprep.subr.bf16.mxu0 %v1749_v19 }
 0x1bd   :  { %696 = vmatpush1.bf16.msra.mxu0 %v1752_v20 }
 0x1be   :  { %697 = vmatprep.subr.bf16.mxu0 %v1755_v24 }
 0x1c1   :  { %698 = vmatpush1.bf16.msra.mxu0 %v1759_v25 }
 0x1c2   :  { %699 = vmatprep.subr.bf16.mxu0 %v1763_v26 }
 0x1c5   :  { %700 = vmatpush1.bf16.msra.mxu0 %v1768_v27 }
 0x1c6   :  { %701 = vmatprep.subr.bf16.mxu0 %v1772_v28 }
 0x1c9   :  { %702 = vmatpush1.bf16.msra.mxu0 %v1776_v30 }
 0x1ca   :  { %703 = vmatprep.subr.bf16.mxu0 %v1780_v32 }
 0x1cd   :  { %704 = vmatpush1.bf16.msra.mxu0 %v1784_v33 }
 0x1ce   :  { %803 = vmatprep.subr.bf16.mxu0 %v1684_v1 }
 0x263   :  { %v577_v51 = vpop.f32.mrb[16].mxu0 }
 0x264   :  { %v584_v52 = vadd.f32 %v577_v51, %v213_v23  ;;  %v579_v53 = vpop.f32.mrb[17].mxu0 }
 0x265   :  { %v585_v54 = vadd.f32 %v579_v53, %v215_v34  ;;  %v581_v57 = vpop.f32.mrb[18].mxu0 }
 0x266   :  { %v586_v58 = vmul.f32 %v584_v52, %v584_v52  ;;  %v582_v59 = vpop.f32.mrb[19].mxu0 }
 0x267   :  { %v587_v60 = vmul.f32 %v585_v54, %v585_v54 }
 0x269   :  { %v588_v61 = vadd.f32 %v587_v60, %v586_v58 }
 0x26b   :  { %v589_v62 = vadd.f32 1e-12, %v588_v61 }
 0x26d   :  { %1409 = vrsqrt.f32 %v589_v62 }
 0x277   :  { %v1410_v63 = vpop.eup %1409 }
 0x278   :  { %v591_v9 = vmul.f32 %v1410_v63, %v588_v61 }
 0x27a   :  { %v592_v11 = vadd.f32 %v1856_v0, %v591_v9 }
 0x27c   :  { %v593_v16 = vmax.f32 %v592_v11, 0.0 }
 0x27e   :  { %v594_v18 = vmul.f32 %v1410_v63, %v593_v16 }
 0x280   :  { %v1924_v49 = vmul.f32 %v594_v18, %v584_v52  ;;  %v1926_v50 = vmul.f32 %v594_v18, %v585_v54 }
 0x282   :  { %v607_v23 = vpack.c.bf16 %v1926_v50, %v1926_v50  ;;  %v606_v34 = vpack.c.bf16 %v1924_v49, %v1924_v49 }
 0x284   :  { %640 = vmatprep.mubr.bf16.mxu1 %v607_v23 }
 0x285   :  { %641 = vmatmul.mubr.bf16.vlgmr.msra.gmra.mrb[4].mxu1 %v606_v34 }
 0x286   :  { %739 = vmatpush1.bf16.msra.mxu1 %v1686_v2 }
 0x287   :  { %740 = vmatprep.subr.bf16.mxu1 %v1689_v3 }
 0x28a   :  { %741 = vmatpush1.bf16.msra.mxu1 %v1692_v4 }
 0x28b   :  { %742 = vmatprep.subr.bf16.mxu1 %v1695_v5 }
 0x28e   :  { %743 = vmatpush1.bf16.msra.mxu1 %v1698_v6 }
 0x28f   :  { %744 = vmatprep.subr.bf16.mxu1 %v1701_v7 }
 0x292   :  { %745 = vmatpush1.bf16.msra.mxu1 %v1703_v8 }
 0x293   :  { %746 = vmatprep.subr.bf16.mxu1 %v1707_v13 }
 0x296   :  { %747 = vmatpush1.bf16.msra.mxu1 %v1710_v21 }
 0x297   :  { %748 = vmatprep.subr.bf16.mxu1 %v1712_v22 }
 0x29a   :  { %749 = vmatpush1.bf16.msra.mxu1 %v1715_v29 }
 0x29b   :  { %750 = vmatprep.subr.bf16.mxu1 %v1718_v31 }
 0x29e   :  { %751 = vmatpush1.bf16.msra.mxu1 %v1722_v39 }
 0x29f   :  { %752 = vmatprep.subr.bf16.mxu1 %v1724_v40 }
 0x2a2   :  { %753 = vmatpush1.bf16.msra.mxu1 %v1728_v47 }
 0x2a3   :  { %754 = vmatprep.subr.bf16.mxu1 %v1730_v48 }
 0x2a6   :  { %755 = vmatpush1.bf16.msra.mxu1 %v1734_v55 }
 0x2a7   :  { %756 = vmatprep.subr.bf16.mxu1 %v1736_v56 }
 0x2aa   :  { %757 = vmatpush1.bf16.msra.mxu1 %v1740_v10 }
 0x2ab   :  { %758 = vmatprep.subr.bf16.mxu1 %v1743_v12 }
 0x2ae   :  { %759 = vmatpush1.bf16.msra.mxu1 %v1746_v17 }
 0x2af   :  { %760 = vmatprep.subr.bf16.mxu1 %v1749_v19 }
 0x2b2   :  { %761 = vmatpush1.bf16.msra.mxu1 %v1752_v20 }
 0x2b3   :  { %762 = vmatprep.subr.bf16.mxu1 %v1755_v24 }
 0x2b6   :  { %763 = vmatpush1.bf16.msra.mxu1 %v1759_v25 }
 0x2b7   :  { %764 = vmatprep.subr.bf16.mxu1 %v1763_v26 }
 0x2ba   :  { %765 = vmatpush1.bf16.msra.mxu1 %v1768_v27 }
 0x2bb   :  { %766 = vmatprep.subr.bf16.mxu1 %v1772_v28 }
 0x2be   :  { %767 = vmatpush1.bf16.msra.mxu1 %v1776_v30 }
 0x2bf   :  { %768 = vmatprep.subr.bf16.mxu1 %v1780_v32 }
 0x2c2   :  { %769 = vmatpush1.bf16.msra.mxu1 %v1784_v33 }
 0x2c3   :  { %868 = vmatprep.subr.bf16.mxu1 %v1684_v1 }
 0x358   :  { %v642_v51 = vpop.f32.mrb[4].mxu1 }
 0x359   :  { %v649_v52 = vadd.f32 %v642_v51, %v1896_v35  ;;  %v644_v53 = vpop.f32.mrb[5].mxu1 }
 0x35a   :  { %v650_v54 = vadd.f32 %v644_v53, %v1899_v36  ;;  %v646_v57 = vpop.f32.mrb[6].mxu1 }
 0x35b   :  { %v651_v58 = vmul.f32 %v649_v52, %v649_v52  ;;  %v647_v59 = vpop.f32.mrb[7].mxu1 }
 0x35c   :  { %v652_v60 = vmul.f32 %v650_v54, %v650_v54 }
 0x35e   :  { %v653_v61 = vadd.f32 %v652_v60, %v651_v58 }
 0x360   :  { %v654_v62 = vadd.f32 1e-12, %v653_v61 }
 0x362   :  { %1411 = vrsqrt.f32 %v654_v62 }
 0x36c   :  { %v1412_v63 = vpop.eup %1411 }
 0x36d   :  { %v656_v9 = vmul.f32 %v1412_v63, %v653_v61 }
 0x36f   :  { %v657_v11 = vadd.f32 %v1856_v0, %v656_v9 }
 0x371   :  { %v658_v16 = vmax.f32 %v657_v11, 0.0 }
 0x373   :  { %v659_v18 = vmul.f32 %v1412_v63, %v658_v16 }
 0x375   :  { %v1967_v23 = vmul.f32 %v659_v18, %v649_v52  ;;  %v1969_v34 = vmul.f32 %v659_v18, %v650_v54 }
 0x377   :  { %v672_v35 = vpack.c.bf16 %v1969_v34, %v1969_v34  ;;  %v671_v36 = vpack.c.bf16 %v1967_v23, %v1967_v23 }
 0x379   :  { %705 = vmatprep.mubr.bf16.mxu0 %v672_v35 }
 0x37a   :  { %706 = vmatmul.mubr.bf16.vlgmr.msra.gmra.mrb[20].mxu0 %v671_v36 }
 0x37b   :  { %804 = vmatpush1.bf16.msra.mxu0 %v1686_v2 }
 0x37c   :  { %805 = vmatprep.subr.bf16.mxu0 %v1689_v3 }
 0x37f   :  { %806 = vmatpush1.bf16.msra.mxu0 %v1692_v4 }
 0x380   :  { %807 = vmatprep.subr.bf16.mxu0 %v1695_v5 }
 0x383   :  { %808 = vmatpush1.bf16.msra.mxu0 %v1698_v6 }
 0x384   :  { %809 = vmatprep.subr.bf16.mxu0 %v1701_v7 }
 0x387   :  { %810 = vmatpush1.bf16.msra.mxu0 %v1703_v8 }
 0x388   :  { %811 = vmatprep.subr.bf16.mxu0 %v1707_v13 }
 0x38b   :  { %812 = vmatpush1.bf16.msra.mxu0 %v1710_v21 }
 0x38c   :  { %813 = vmatprep.subr.bf16.mxu0 %v1712_v22 }
 0x38f   :  { %814 = vmatpush1.bf16.msra.mxu0 %v1715_v29 }
 0x390   :  { %815 = vmatprep.subr.bf16.mxu0 %v1718_v31 }
 0x393   :  { %816 = vmatpush1.bf16.msra.mxu0 %v1722_v39 }
 0x394   :  { %817 = vmatprep.subr.bf16.mxu0 %v1724_v40 }
 0x397   :  { %818 = vmatpush1.bf16.msra.mxu0 %v1728_v47 }
 0x398   :  { %819 = vmatprep.subr.bf16.mxu0 %v1730_v48 }
 0x39b   :  { %820 = vmatpush1.bf16.msra.mxu0 %v1734_v55 }
 0x39c   :  { %821 = vmatprep.subr.bf16.mxu0 %v1736_v56 }
 0x39f   :  { %822 = vmatpush1.bf16.msra.mxu0 %v1740_v10 }
 0x3a0   :  { %823 = vmatprep.subr.bf16.mxu0 %v1743_v12 }
 0x3a3   :  { %824 = vmatpush1.bf16.msra.mxu0 %v1746_v17 }
 0x3a4   :  { %825 = vmatprep.subr.bf16.mxu0 %v1749_v19 }
 0x3a7   :  { %826 = vmatpush1.bf16.msra.mxu0 %v1752_v20 }
 0x3a8   :  { %827 = vmatprep.subr.bf16.mxu0 %v1755_v24 }
 0x3ab   :  { %828 = vmatpush1.bf16.msra.mxu0 %v1759_v25 }
 0x3ac   :  { %829 = vmatprep.subr.bf16.mxu0 %v1763_v26 }
 0x3af   :  { %830 = vmatpush1.bf16.msra.mxu0 %v1768_v27 }
 0x3b0   :  { %831 = vmatprep.subr.bf16.mxu0 %v1772_v28 }
 0x3b3   :  { %832 = vmatpush1.bf16.msra.mxu0 %v1776_v30 }
 0x3b4   :  { %833 = vmatprep.subr.bf16.mxu0 %v1780_v32 }
 0x3b7   :  { %834 = vmatpush1.bf16.msra.mxu0 %v1784_v33 }
 0x3b8   :  { %933 = vmatprep.subr.bf16.mxu0 %v1684_v1 }
 0x44d   :  { %v707_v51 = vpop.f32.mrb[20].mxu0 }
 0x44e   :  { %v714_v52 = vadd.f32 %v707_v51, %v1902_v37  ;;  %v709_v53 = vpop.f32.mrb[21].mxu0 }
 0x44f   :  { %v715_v54 = vadd.f32 %v709_v53, %v1905_v38  ;;  %v711_v57 = vpop.f32.mrb[22].mxu0 }
 0x450   :  { %v716_v58 = vmul.f32 %v714_v52, %v714_v52  ;;  %v712_v59 = vpop.f32.mrb[23].mxu0 }
 0x451   :  { %v717_v60 = vmul.f32 %v715_v54, %v715_v54 }
 0x453   :  { %v718_v61 = vadd.f32 %v717_v60, %v716_v58 }
 0x455   :  { %v719_v62 = vadd.f32 1e-12, %v718_v61 }
 0x457   :  { %1413 = vrsqrt.f32 %v719_v62 }
 0x461   :  { %v1414_v63 = vpop.eup %1413 }
 0x462   :  { %v721_v9 = vmul.f32 %v1414_v63, %v718_v61 }
 0x464   :  { %v722_v11 = vadd.f32 %v1856_v0, %v721_v9 }
 0x466   :  { %v723_v16 = vmax.f32 %v722_v11, 0.0 }
 0x468   :  { %v724_v18 = vmul.f32 %v1414_v63, %v723_v16 }
 0x46a   :  { %v2010_v1 = vmul.f32 %v724_v18, %v714_v52  ;;  %v2012_v35 = vmul.f32 %v724_v18, %v715_v54 }
 0x46c   :  { %v737_v37 = vpack.c.bf16 %v2012_v35, %v2012_v35  ;;  %v736_v38 = vpack.c.bf16 %v2010_v1, %v2010_v1 }
 0x46e   :  { %770 = vmatprep.mubr.bf16.mxu1 %v737_v37 }
 0x46f   :  { %771 = vmatmul.mubr.bf16.vlgmr.msra.gmra.mrb[8].mxu1 %v736_v38 }
 0x470   :  { %869 = vmatpush1.bf16.msra.mxu1 %v1686_v2 }
 0x471   :  { %870 = vmatprep.subr.bf16.mxu1 %v1689_v3 }
 0x474   :  { %871 = vmatpush1.bf16.msra.mxu1 %v1692_v4 }
 0x475   :  { %872 = vmatprep.subr.bf16.mxu1 %v1695_v5 }
 0x478   :  { %873 = vmatpush1.bf16.msra.mxu1 %v1698_v6 }
 0x479   :  { %874 = vmatprep.subr.bf16.mxu1 %v1701_v7 }
 0x47c   :  { %875 = vmatpush1.bf16.msra.mxu1 %v1703_v8 }
 0x47d   :  { %876 = vmatprep.subr.bf16.mxu1 %v1707_v13 }
 0x480   :  { %877 = vmatpush1.bf16.msra.mxu1 %v1710_v21 }
 0x481   :  { %878 = vmatprep.subr.bf16.mxu1 %v1712_v22 }
 0x484   :  { %879 = vmatpush1.bf16.msra.mxu1 %v1715_v29 }
 0x485   :  { %880 = vmatprep.subr.bf16.mxu1 %v1718_v31 }
 0x488   :  { %881 = vmatpush1.bf16.msra.mxu1 %v1722_v39 }
 0x489   :  { %882 = vmatprep.subr.bf16.mxu1 %v1724_v40 }
 0x48c   :  { %883 = vmatpush1.bf16.msra.mxu1 %v1728_v47 }
 0x48d   :  { %884 = vmatprep.subr.bf16.mxu1 %v1730_v48 }
 0x490   :  { %885 = vmatpush1.bf16.msra.mxu1 %v1734_v55 }
 0x491   :  { %886 = vmatprep.subr.bf16.mxu1 %v1736_v56 }
 0x494   :  { %887 = vmatpush1.bf16.msra.mxu1 %v1740_v10 }
 0x495   :  { %888 = vmatprep.subr.bf16.mxu1 %v1743_v12 }
 0x498   :  { %889 = vmatpush1.bf16.msra.mxu1 %v1746_v17 }
 0x499   :  { %890 = vmatprep.subr.bf16.mxu1 %v1749_v19 }
 0x49c   :  { %891 = vmatpush1.bf16.msra.mxu1 %v1752_v20 }
 0x49d   :  { %892 = vmatprep.subr.bf16.mxu1 %v1755_v24 }
 0x4a0   :  { %893 = vmatpush1.bf16.msra.mxu1 %v1759_v25 }
 0x4a1   :  { %894 = vmatprep.subr.bf16.mxu1 %v1763_v26 }
 0x4a4   :  { %895 = vmatpush1.bf16.msra.mxu1 %v1768_v27 }
 0x4a5   :  { %896 = vmatprep.subr.bf16.mxu1 %v1772_v28 }
 0x4a8   :  { %897 = vmatpush1.bf16.msra.mxu1 %v1776_v30 }
 0x4a9   :  { %898 = vmatprep.subr.bf16.mxu1 %v1780_v32 }
 0x4ac   :  { %899 = vmatpush1.bf16.msra.mxu1 %v1784_v33 }
 0x542   :  { %v772_v36 = vpop.f32.mrb[8].mxu1 }
 0x543   :  { %v779_v51 = vadd.f32 %v772_v36, %v1907_v41  ;;  %v774_v52 = vpop.f32.mrb[9].mxu1  ;;  %v1013_v36 = vld [vmem:[#allocation13 + $0x20] sm:$0xff] }
 0x544   :  { %v780_v53 = vadd.f32 %v774_v52, %v1909_v42  ;;  %v776_v54 = vpop.f32.mrb[10].mxu1  ;;  %v1031_v52 = vld [vmem:[#allocation13 + $0xb0] sm:$0xff] }
 0x545   :  { %v781_v57 = vmul.f32 %v779_v51, %v779_v51  ;;  %v777_v58 = vpop.f32.mrb[11].mxu1 }
 0x546   :  { %v782_v59 = vmul.f32 %v780_v53, %v780_v53  ;;  %v1015_v58 = vld [vmem:[#allocation13 + $0x30] sm:$0xff] }
 0x548   :  { %v783_v60 = vadd.f32 %v782_v59, %v781_v57  ;;  %v1016_v59 = vld [vmem:[#allocation13 + $0x38] sm:$0xff] }
 0x54a   :  { %v784_v61 = vadd.f32 1e-12, %v783_v60 }
 0x54c   :  { %1415 = vrsqrt.f32 %v784_v61  ;;  %v1034_v61 = vld [vmem:[#allocation13 + $0xc8] sm:$0xff] }
 0x556   :  { %v1416_v62 = vpop.eup %1415 }
 0x557   :  { %v786_v63 = vmul.f32 %v1416_v62, %v783_v60  ;;  %v1033_v60 = vld [vmem:[#allocation13 + $0xc0] sm:$0xff] }
 0x559   :  { %v787_v9 = vadd.f32 %v1856_v0, %v786_v63  ;;  %v1332_v63 = vpack.c.bf16 %v1034_v61, %v1033_v60 }
 0x55b   :  { %v788_v11 = vmax.f32 %v787_v9, 0.0  ;;  %v1018_v9 = vld [vmem:[#allocation13 + $0x48] sm:$0xff] }
 0x55d   :  { %v789_v16 = vmul.f32 %v1416_v62, %v788_v11  ;;  %v1330_v62 = vpack.c.bf16 %v1016_v59, %v1015_v58  ;;  %v1035_v11 = vld [vmem:[#allocation13 + $0xd0] sm:$0xff] }
 0x55f   :  { %v2052_v18 = vmul.f32 %v789_v16, %v779_v51  ;;  %v2054_v37 = vmul.f32 %v789_v16, %v780_v53  ;;  %v1014_v51 = vld [vmem:[#allocation13 + $0x28] sm:$0xff]  ;;  %v1032_v53 = vld [vmem:[#allocation13 + $0xb8] sm:$0xff] }
 0x560   :  { %v1326_v54 = vpack.c.bf16 %v1014_v51, %v1013_v36  ;;  %v1328_v57 = vpack.c.bf16 %v1032_v53, %v1031_v52  ;;  %v1036_v16 = vld [vmem:[#allocation13 + $0xd8] sm:$0xff] }
 0x561   :  { %v802_v41 = vpack.c.bf16 %v2054_v37, %v2054_v37  ;;  %v801_v42 = vpack.c.bf16 %v2052_v18, %v2052_v18 }
 0x563   :  { %835 = vmatprep.mubr.bf16.mxu0 %v802_v41 }
 0x564   :  { %836 = vmatmul.mubr.bf16.vlgmr.msra.gmra.mrb[24].mxu0 %v801_v42  ;;  %v1336_v42 = vpack.c.bf16 %v1036_v16, %v1035_v11 }
 0x565   :  { %934 = vmatpush1.bf16.msra.mxu0 %v1686_v2  ;;  %v1025_v2 = vld [vmem:[#allocation13 + $0x80] sm:$0xff] }
 0x566   :  { %935 = vmatprep.subr.bf16.mxu0 %v1689_v3  ;;  %v1026_v3 = vld [vmem:[#allocation13 + $0x88] sm:$0xff] }
 0x569   :  { %936 = vmatpush1.bf16.msra.mxu0 %v1692_v4  ;;  %v1316_v4 = vpack.c.bf16 %v1026_v3, %v1025_v2  ;;  %v1019_v2 = vld [vmem:[#allocation13 + $0x50] sm:$0xff]  ;;  %v1020_v3 = vld [vmem:[#allocation13 + $0x58] sm:$0xff] }
 0x56a   :  { %937 = vmatprep.subr.bf16.mxu0 %v1695_v5 }
 0x56b   :  { %1317 = vmatprep.subr.bf16.mxu1 %v1316_v4  ;;  %v1037_v4 = vld [vmem:[#allocation13 + $0xe0] sm:$0xff] }
 0x56d   :  { %938 = vmatpush1.bf16.msra.mxu0 %v1698_v6 }
 0x56e   :  { %939 = vmatprep.subr.bf16.mxu0 %v1701_v7 }
 0x571   :  { %940 = vmatpush1.bf16.msra.mxu0 %v1703_v8 }
 0x572   :  { %941 = vmatprep.subr.bf16.mxu0 %v1707_v13 }
 0x575   :  { %942 = vmatpush1.bf16.msra.mxu0 %v1710_v21 }
 0x576   :  { %943 = vmatprep.subr.bf16.mxu0 %v1712_v22 }
 0x579   :  { %944 = vmatpush1.bf16.msra.mxu0 %v1715_v29 }
 0x57a   :  { %945 = vmatprep.subr.bf16.mxu0 %v1718_v31 }
 0x57d   :  { %946 = vmatpush1.bf16.msra.mxu0 %v1722_v39 }
 0x57e   :  { %947 = vmatprep.subr.bf16.mxu0 %v1724_v40 }
 0x581   :  { %948 = vmatpush1.bf16.msra.mxu0 %v1728_v47 }
 0x582   :  { %949 = vmatprep.subr.bf16.mxu0 %v1730_v48 }
 0x585   :  { %950 = vmatpush1.bf16.msra.mxu0 %v1734_v55 }
 0x586   :  { %951 = vmatprep.subr.bf16.mxu0 %v1736_v56 }
 0x589   :  { %952 = vmatpush1.bf16.msra.mxu0 %v1740_v10  ;;  %v1009_v10 = vld [vmem:[#allocation13] sm:$0xff] }
 0x58a   :  { %953 = vmatprep.subr.bf16.mxu0 %v1743_v12  ;;  %v1010_v12 = vld [vmem:[#allocation13 + $0x8] sm:$0xff] }
 0x58d   :  { %954 = vmatpush1.bf16.msra.mxu0 %v1746_v17 }
 0x58e   :  { %955 = vmatprep.subr.bf16.mxu0 %v1749_v19 }
 0x591   :  { %956 = vmatpush1.bf16.msra.mxu0 %v1752_v20  ;;  %v1027_v20 = vld [vmem:[#allocation13 + $0x90] sm:$0xff] }
 0x592   :  { %957 = vmatprep.subr.bf16.mxu0 %v1755_v24  ;;  %v1028_v24 = vld [vmem:[#allocation13 + $0x98] sm:$0xff] }
 0x595   :  { %958 = vmatpush1.bf16.msra.mxu0 %v1759_v25 }
 0x596   :  { %959 = vmatprep.subr.bf16.mxu0 %v1763_v26 }
 0x599   :  { %960 = vmatpush1.bf16.msra.mxu0 %v1768_v27  ;;  %v1318_v27 = vpack.c.bf16 %v1010_v12, %v1009_v10 }
 0x59a   :  { %961 = vmatprep.subr.bf16.mxu0 %v1772_v28  ;;  %v1320_v28 = vpack.c.bf16 %v1028_v24, %v1027_v20 }
 0x59d   :  { %962 = vmatpush1.bf16.msra.mxu0 %v1776_v30  ;;  %v1011_v30 = vld [vmem:[#allocation13 + $0x10] sm:$0xff] }
 0x59e   :  { %963 = vmatprep.subr.bf16.mxu0 %v1780_v32  ;;  %v1012_v32 = vld [vmem:[#allocation13 + $0x18] sm:$0xff] }
 0x5a1   :  { %964 = vmatpush1.bf16.msra.mxu0 %v1784_v33  ;;  %v1029_v33 = vld [vmem:[#allocation13 + $0xa0] sm:$0xff] }
 0x637   :  { %v837_v5 = vpop.f32.mrb[24].mxu0 }
 0x638   :  { %v844_v6 = vadd.f32 %v837_v5, %v1911_v43  ;;  %v839_v7 = vpop.f32.mrb[25].mxu0  ;;  %v1030_v43 = vld [vmem:[#allocation13 + $0xa8] sm:$0xff] }
 0x639   :  { %v845_v8 = vadd.f32 %v839_v7, %v1913_v44  ;;  %v841_v13 = vpop.f32.mrb[26].mxu0  ;;  %v1322_v44 = vpack.c.bf16 %v1012_v32, %v1011_v30  ;;  %v1324_v38 = vpack.c.bf16 %v1030_v43, %v1029_v33  ;;  %v1038_v5 = vld [vmem:[#allocation13 + $0xe8] sm:$0xff] }
 0x63a   :  { %v846_v21 = vmul.f32 %v844_v6, %v844_v6  ;;  %v842_v22 = vpop.f32.mrb[27].mxu0  ;;  %v1340_v7 = vpack.c.bf16 %v1038_v5, %v1037_v4  ;;  %v1022_v13 = vld [vmem:[#allocation13 + $0x68] sm:$0xff] }
 0x63b   :  { %v847_v29 = vmul.f32 %v845_v8, %v845_v8  ;;  %v1040_v22 = vld [vmem:[#allocation13 + $0xf8] sm:$0xff] }
 0x63d   :  { %v848_v31 = vadd.f32 %v847_v29, %v846_v21  ;;  %v1039_v21 = vld [vmem:[#allocation13 + $0xf0] sm:$0xff] }
 0x63f   :  { %v849_v39 = vadd.f32 1e-12, %v848_v31 }
 0x641   :  { %1417 = vrsqrt.f32 %v849_v39  ;;  %v1023_v39 = vld [vmem:[#allocation13 + $0x70] sm:$0xff] }
 0x64b   :  { %v1418_v40 = vpop.eup %1417 }
 0x64c   :  { %v851_v47 = vmul.f32 %v1418_v40, %v848_v31  ;;  %v1344_v31 = vpack.c.bf16 %v1040_v22, %v1039_v21 }
 0x64e   :  { %v852_v48 = vadd.f32 %v1856_v0, %v851_v47 }
 0x650   :  { %v853_v55 = vmax.f32 %v852_v48, 0.0 }
 0x652   :  { %v854_v56 = vmul.f32 %v1418_v40, %v853_v55  ;;  %v1024_v40 = vld [vmem:[#allocation13 + $0x78] sm:$0xff] }
 0x653   :  { %v1346_v47 = vpack.c.bf16 %v1024_v40, %v1023_v39 }
 0x654   :  { %v2094_v17 = vmul.f32 %v854_v56, %v844_v6  ;;  %v2096_v19 = vmul.f32 %v854_v56, %v845_v8  ;;  %v1338_v6 = vpack.c.bf16 %v1020_v3, %v1019_v2  ;;  %v1021_v8 = vld [vmem:[#allocation13 + $0x60] sm:$0xff] }
 0x655   :  { %v1342_v29 = vpack.c.bf16 %v1022_v13, %v1021_v8  ;;  %v2148_v2 = vld [vmem:[#allocation19_spill] sm:$0xff] }
 0x656   :  { %v867_v25 = vpack.c.bf16 %v2096_v19, %v2096_v19  ;;  %v866_v26 = vpack.c.bf16 %v2094_v17, %v2094_v17 }
 0x658   :  { %900 = vmatprep.mubr.bf16.mxu1 %v867_v25 }
 0x659   :  { %901 = vmatmul.mubr.bf16.vlgmr.msra.gmra.mrb[12].mxu1 %v866_v26 }
 0x65a   :  { %1319 = vmatpush3.bf16.msra.mxu1 %v1318_v27  ;;  %1112 = vmatprep.mubr.f32.mxu1 %v1861_v15  ;;  %v1017_v15 = vld [vmem:[#allocation13 + $0x40] sm:$0xff] }
 0x65b   :  { %1321 = vmatprep.subr.bf16.mxu1 %v1320_v28  ;;  %v1334_v41 = vpack.c.bf16 %v1018_v9, %v1017_v15 }
 0x65e   :  { %1323 = vmatpush3.bf16.msra.mxu1 %v1322_v44 }
 0x65f   :  { %1325 = vmatprep.subr.bf16.mxu1 %v1324_v38 }
 0x662   :  { %1327 = vmatpush3.bf16.msra.mxu1 %v1326_v54 }
 0x663   :  { %1329 = vmatprep.subr.bf16.mxu1 %v1328_v57 }
 0x666   :  { %1331 = vmatpush3.bf16.msra.mxu1 %v1330_v62 }
 0x667   :  { %1333 = vmatprep.subr.bf16.mxu1 %v1332_v63 }
 0x66a   :  { %1335 = vmatpush3.bf16.msra.mxu1 %v1334_v41 }
 0x66b   :  { %1337 = vmatprep.subr.bf16.mxu1 %v1336_v42 }
 0x66e   :  { %1339 = vmatpush3.bf16.msra.mxu1 %v1338_v6  ;;  %v2149_v6 = vld [vmem:[#allocation20_spill] sm:$0xff] }
 0x66f   :  { %1341 = vmatprep.subr.bf16.mxu1 %v1340_v7 }
 0x672   :  { %1343 = vmatpush3.bf16.msra.mxu1 %v1342_v29 }
 0x673   :  { %1345 = vmatprep.subr.bf16.mxu1 %v1344_v31 }
 0x676   :  { %1347 = vmatpush3.bf16.msra.mxu1 %v1346_v47 }
 0x679   :  { %1113 = vmatmul.mubr.f32.vlgmr.msra.gmra.mrb[16].mxu1 %v1859_v14 }
 0x67a   :  { %1117 = vmatprep.mubr.f32.mxu1 %v1926_v50 }
 0x67d   :  { %1118 = vmatmul.mubr.f32.gmra.mrb[18].mxu1 %v1924_v49 }
 0x67e   :  { %1122 = vmatprep.mubr.f32.mxu1 %v1969_v34 }
 0x681   :  { %1123 = vmatmul.mubr.f32.gmra.mrb[20].mxu1 %v1967_v23 }
 0x682   :  { %1127 = vmatprep.mubr.f32.mxu1 %v2012_v35 }
 0x685   :  { %1128 = vmatmul.mubr.f32.gmra.mrb[22].mxu1 %v2010_v1 }
 0x686   :  { %1132 = vmatprep.mubr.f32.mxu1 %v2054_v37 }
 0x689   :  { %1133 = vmatmul.mubr.f32.gmra.mrb[24].mxu1 %v2052_v18 }
 0x68a   :  { %1137 = vmatprep.mubr.f32.mxu1 %v2096_v19 }
 0x68d   :  { %1138 = vmatmul.mubr.f32.gmra.mrb[26].mxu1 %v2094_v17 }
 0x72c   :  { %v902_v14 = vpop.f32.mrb[12].mxu1 }
 0x72d   :  { %v909_v50 = vadd.f32 %v902_v14, %v1915_v45  ;;  %v904_v49 = vpop.f32.mrb[13].mxu1 }
 0x72e   :  { %v910_v34 = vadd.f32 %v904_v49, %v1917_v46  ;;  %v906_v48 = vpop.f32.mrb[14].mxu1  ;;  %v1227_v46 = vld [vmem:[%s2144_s6] ss:$0 sm:$0xff]  ;;  %s1573_s6 = smov [#allocation14]  }
 0x72f   :  { %v911_v23 = vmul.f32 %v909_v50, %v909_v50  ;;  %v907_v55 = vpop.f32.mrb[15].mxu1  ;;  %s1166_s18 = sshll.u32 %s1573_s6, 4  ;;  %s1167_s18 = int_to_ptr.vmem [resolvable:$true] %s1166_s18 }
 0x730   :  { %v912_v35 = vmul.f32 %v910_v34, %v910_v34  ;;  %s1533_s19 = scalar_lea.vmem %s1167_s18, 1024  ;;  %p1538_p13 = scmp.lt.s32.totalorder %s1167_s18, %s1167_s18 }
 0x731   :  { %p1534_p12 = scmp.ne.s32.totalorder %s1167_s18, %s1533_s19  ;;  %p1539_p0 = scmp.lt.s32.totalorder %s1533_s19, %s1533_s19 }
 0x732   :  { %v913_v56 = vadd.f32 %v912_v35, %v911_v23 }
 0x733   :  { %p1540_p1 = por %p1539_p0, %p1538_p13 }
 0x734   :  { %v914_v1 = vadd.f32 1e-12, %v913_v56 }
 0x735   :  { %p1541_p2 = pnand %p1540_p1, %p1534_p12 }
 0x736   :  { %1419 = vrsqrt.f32 %v914_v1 }
 0x740   :  { %v1420_v37 = vpop.eup %1419 }
 0x741   :  { %v916_v10 = vmul.f32 %v1420_v37, %v913_v56 }
 0x743   :  { %v917_v18 = vadd.f32 %v1856_v0, %v916_v10 }
 0x745   :  { %v918_v12 = vmax.f32 %v917_v18, 0.0 }
 0x747   :  { %v919_v19 = vmul.f32 %v1420_v37, %v918_v12 }
 0x749   :  { %v921_v17 = vmul.f32 %v919_v19, %v910_v34  ;;  %v920_v20 = vmul.f32 %v919_v19, %v909_v50 }
 0x74b   :  { %1142 = vmatprep.mubr.f32.mxu1 %v921_v17  ;;  %v931_v45 = vpack.c.bf16 %v920_v20, %v920_v20  ;;  %v932_v24 = vpack.c.bf16 %v921_v17, %v921_v17 }
 0x74c   :  { %v1260_v25 = vpop.f32.mrb[16].mxu1  ;;  %1143 = vmatmul.mubr.f32.gmra.mrb[28].mxu1 %v920_v20 }
 0x74d   :  { %v1261_v26 = vpop.f32.mrb[17].mxu1  ;;  %965 = vmatprep.mubr.bf16.mxu0 %v932_v24 }
 0x74e   :  { %v1262_v27 = vadd.f32 %v1261_v26, %v1260_v25  ;;  %966 = vmatmul.mubr.bf16.vlgmr.msra.gmra.mrb[28].mxu0 %v931_v45 }
 0x750   :  { %v1115_v28 = vadd.f32 %v1262_v27, %v1227_v46  ;;  %v1263_v30 = vpop.f32.mrb[18].mxu1 }
 0x751   :  { %v1264_v32 = vpop.f32.mrb[19].mxu1 }
 0x752   :  { %1153 = vst [vmem:[#allocation14] sm:$0xff] %v1115_v28  ;;  %v1265_v33 = vadd.f32 %v1264_v32, %v1263_v30 }
 0x754   :  { %v1120_v43 = vadd.f32 %v1265_v33, %v1227_v46  ;;  %v1266_v44 = vpop.f32.mrb[20].mxu1 }
 0x755   :  { %v1267_v38 = vpop.f32.mrb[21].mxu1 }
 0x756   :  { %1154 = vst [vmem:[#allocation14 + $0x8] sm:$0xff] %v1120_v43  ;;  %v1268_v36 = vadd.f32 %v1267_v38, %v1266_v44 }
 0x758   :  { %v1125_v51 = vadd.f32 %v1268_v36, %v1227_v46  ;;  %v1269_v52 = vpop.f32.mrb[22].mxu1 }
 0x759   :  { %v1270_v53 = vpop.f32.mrb[23].mxu1 }
 0x75a   :  { %1155 = vst [vmem:[#allocation14 + $0x10] sm:$0xff] %v1125_v51  ;;  %v1271_v54 = vadd.f32 %v1270_v53, %v1269_v52 }
 0x75c   :  { %v1130_v57 = vadd.f32 %v1271_v54, %v1227_v46  ;;  %v1272_v58 = vpop.f32.mrb[24].mxu1 }
 0x75d   :  { %v1273_v59 = vpop.f32.mrb[25].mxu1 }
 0x75e   :  { %1156 = vst [vmem:[#allocation14 + $0x18] sm:$0xff] %v1130_v57  ;;  %v1274_v60 = vadd.f32 %v1273_v59, %v1272_v58 }
 0x760   :  { %v1135_v61 = vadd.f32 %v1274_v60, %v1227_v46  ;;  %v1275_v62 = vpop.f32.mrb[26].mxu1 }
 0x761   :  { %v1276_v63 = vpop.f32.mrb[27].mxu1 }
 0x762   :  { %1157 = vst [vmem:[#allocation14 + $0x20] sm:$0xff] %v1135_v61  ;;  %v1277_v15 = vadd.f32 %v1276_v63, %v1275_v62 }
 0x764   :  { %v1140_v9 = vadd.f32 %v1277_v15, %v1227_v46 }
 0x766   :  { %1158 = vst [vmem:[#allocation14 + $0x28] sm:$0xff] %v1140_v9 }
 0x81f   :  { %v1278_v11 = vpop.f32.mrb[28].mxu1 }
 0x820   :  { %v1279_v16 = vpop.f32.mrb[29].mxu1 }
 0x821   :  { %v1280_v41 = vadd.f32 %v1279_v16, %v1278_v11  ;;  %v967_v42 = vpop.f32.mrb[28].mxu0 }
 0x822   :  { %v974_v3 = vadd.f32 %v967_v42, %v2148_v2  ;;  %v969_v4 = vpop.f32.mrb[29].mxu0 }
 0x823   :  { %v1145_v5 = vadd.f32 %v1280_v41, %v1227_v46  ;;  %v975_v7 = vadd.f32 %v969_v4, %v2149_v6  ;;  %v971_v8 = vpop.f32.mrb[30].mxu0 }
 0x824   :  { %v976_v13 = vmul.f32 %v974_v3, %v974_v3  ;;  %v972_v21 = vpop.f32.mrb[31].mxu0 }
 0x825   :  { %1159 = vst [vmem:[#allocation14 + $0x30] sm:$0xff] %v1145_v5  ;;  %v977_v22 = vmul.f32 %v975_v7, %v975_v7 }
 0x827   :  { %v978_v29 = vadd.f32 %v977_v22, %v976_v13 }
 0x829   :  { %v979_v31 = vadd.f32 1e-12, %v978_v29 }
 0x82b   :  { %1421 = vrsqrt.f32 %v979_v31 }
 0x835   :  { %v1422_v39 = vpop.eup %1421 }
 0x836   :  { %v981_v40 = vmul.f32 %v1422_v39, %v978_v29 }
 0x838   :  { %v982_v47 = vadd.f32 %v1856_v0, %v981_v40 }
 0x83a   :  { %v983_v14 = vmax.f32 %v982_v47, 0.0 }
 0x83c   :  { %v984_v50 = vmul.f32 %v1422_v39, %v983_v14 }
 0x83e   :  { %v986_v49 = vmul.f32 %v984_v50, %v975_v7  ;;  %v985_v34 = vmul.f32 %v984_v50, %v974_v3 }
 0x840   :  { %1147 = vmatprep.mubr.f32.mxu1 %v986_v49 }
 0x841   :  { %1148 = vmatmul.mubr.f32.gmra.mrb[30].mxu1 %v985_v34 }
 0x914   :  { %v1281_v48 = vpop.f32.mrb[30].mxu1 }
 0x915   :  { %v1282_v23 = vpop.f32.mrb[31].mxu1 }
 0x916   :  { %v1283_v55 = vadd.f32 %v1282_v23, %v1281_v48 }
 0x918   :  { %v1150_v35 = vadd.f32 %v1283_v55, %v1227_v46 }
 0x91a   :  { %1160 = vst [vmem:[#allocation14 + $0x38] sm:$0xff] %v1150_v35 }
 0x91b   :  { %1544 = shalt.err (!%p1541_p2)
}
 0x91c   :  { %s1545_s22 = scalar_lea.hbm %s2145_s7, 1024 }
 0x91d   :  { %p1546_p3 = scmp.ne.s32.totalorder %s2145_s7, %s1545_s22  ;;  %p1549_p4 = scmp.lt.u32.totalorder %s1545_s22, %s2145_s7 }
 0x91f   :  { %p1551_p5 = pnand %p1549_p4, %p1546_p3 }
 0x921   :  { %1554 = shalt.err (!%p1551_p5)
}
 0x922   :  { %1172 = dma.vmem_to_hbm [thread:$0]  %s1167_s18, 1024, %s2145_s7, [#allocation7], %s1566_s24, %s1566_s24, %s1567_s25  }
 0x923   :  { %1561 = dma.done.wait [#allocation7], 1024  }
 0x924   :  { %1562 = vsyncadd [#allocation7], 4294966272 }
 0x925   :  { %1176 = vsyncpa [#allocation6], 1 }
 0x926   :  { %1177 = vsyncpa [#allocation9], 1 }
 0x927   :  { %1178 = vsyncpa [#allocation12], 1 }
 0x928   :  { %1179 = vsyncpa [#allocation7], 1 }

// kernel: tpu_custom_call.1
= control target key start
LH: loop header
LB: loop body
LE: loop exit
PB: predicated region body
PF: predicated region fallthrough
CT: control target
= control target key end

     0   :  { %12 = vsyncpa [#allocation6], 0  ;;  %s2138_s0 = inlined_call_operand.hbm [shape: f32[8,8,128], index: 0, kind: input, shape index: {}]   ;;  %s2139_s1 = inlined_call_operand.hbm [shape: f32[8,256], index: 1, kind: input, shape index: {}]   ;;  %s2140_s2 = inlined_call_operand.hbm [shape: f32[128,256], index: 2, kind: input, shape index: {}]   ;;  %s2141_s3 = inlined_call_operand.hbm [shape: bf16[256,256], index: 3, kind: input, shape index: {}]   ;;  %s2142_s4 = inlined_call_operand.vmem [shape: f32[1,128], index: 4, kind: input, shape index: {}]   ;;  %s2143_s5 = inlined_call_operand.hbm [shape: f32[256,128], index: 5, kind: input, shape index: {}]   ;;  %s2144_s6 = inlined_call_operand.vmem [shape: f32[1,128], index: 6, kind: input, shape index: {}]   ;;  %s2145_s7 = inlined_call_operand.hbm [shape: f32[8,8,128], index: 7, kind: output, shape index: {}]  }
   0x1   :  { %13 = vsyncpa [#allocation9], 0 }
   0x2   :  { %14 = vsyncpa [#allocation12], 0 }
   0x3   :  { %15 = vsyncpa [#allocation7], 0  ;;  %s1563_s24 = smov [#allocation8]   ;;  %s1423_s28 = scalar_lea.hbm %s2139_s1, 256 }
   0x4   :  { %s34_s25 = sshll.u32 %s1563_s24, 4  ;;  %p1424_p0 = scmp.ne.s32.totalorder %s2139_s1, %s1423_s28  ;;  %s35_s25 = int_to_ptr.vmem [resolvable:$true] %s34_s25 }
   0x5   :  { %p1427_p1 = scmp.lt.u32.totalorder %s1423_s28, %s2139_s1 }
   0x7   :  { %p1429_p2 = pnand %p1427_p1, %p1424_p0 }
   0x9   :  { %1432 = shalt.err (!%p1429_p2)
}
   0xa   :  { %s1433_s10 = scalar_lea.vmem %s35_s25, 256  ;;  %p1438_p4 = scmp.lt.s32.totalorder %s35_s25, %s35_s25 }
   0xb   :  { %p1434_p3 = scmp.ne.s32.totalorder %s35_s25, %s1433_s10  ;;  %p1439_p5 = scmp.lt.s32.totalorder %s1433_s10, %s1433_s10 }
   0xd   :  { %p1440_p6 = por %p1439_p5, %p1438_p4 }
   0xf   :  { %p1441_p7 = pnand %p1440_p6, %p1434_p3 }
  0x11   :  { %1444 = shalt.err (!%p1441_p7)
}
  0x12   :  { %37 = dma.hbm_to_vmem [thread:$0]  %s2139_s1, 256, %s35_s25, [#allocation9]  }
  0x13   :  { %s1564_s13 = smov [#allocation11]   ;;  %s1565_s15 = smov [#allocation5]  }
  0x14   :  { %s55_s14 = sshll.u32 %s1564_s13, 4  ;;  %s21_s16 = sshll.u32 %s1565_s15, 4  ;;  %s56_s14 = int_to_ptr.vmem [resolvable:$true] %s55_s14  ;;  %s22_s16 = int_to_ptr.vmem [resolvable:$true] %s21_s16 }
  0x15   :  { %s1445_s19 = scalar_lea.hbm %s2141_s3, 4096 }
  0x16   :  { %p1446_p8 = scmp.ne.s32.totalorder %s2141_s3, %s1445_s19  ;;  %p1449_p9 = scmp.lt.u32.totalorder %s1445_s19, %s2141_s3 }
  0x18   :  { %p1451_p10 = pnand %p1449_p9, %p1446_p8 }
  0x1a   :  { %1454 = shalt.err (!%p1451_p10)
}
  0x1b   :  { %s1455_s1 = scalar_lea.vmem %s56_s14, 4096  ;;  %p1460_p12 = scmp.lt.s32.totalorder %s56_s14, %s56_s14 }
  0x1c   :  { %p1456_p11 = scmp.ne.s32.totalorder %s56_s14, %s1455_s1  ;;  %p1461_p13 = scmp.lt.s32.totalorder %s1455_s1, %s1455_s1 }
  0x1e   :  { %p1462_p0 = por %p1461_p13, %p1460_p12 }
  0x20   :  { %p1463_p1 = pnand %p1462_p0, %p1456_p11 }
  0x22   :  { %1466 = shalt.err (!%p1463_p1)
}
  0x23   :  { %s1566_s24 = smov 128   ;;  %s1567_s25 = smov 8  }
  0x24   :  { %61 = dma.hbm_to_vmem [thread:$0]  %s2141_s3, 4096, %s56_s14, [#allocation12], %s1566_s24, %s1566_s24, %s1567_s25  }
  0x25   :  { %s1467_s30 = scalar_lea.hbm %s2138_s0, 1024 }
  0x26   :  { %p1468_p2 = scmp.ne.s32.totalorder %s2138_s0, %s1467_s30  ;;  %p1471_p3 = scmp.lt.u32.totalorder %s1467_s30, %s2138_s0 }
  0x28   :  { %p1473_p4 = pnand %p1471_p3, %p1468_p2 }
  0x2a   :  { %1476 = shalt.err (!%p1473_p4)
}
  0x2b   :  { %s1477_s12 = scalar_lea.vmem %s22_s16, 1024  ;;  %p1482_p6 = scmp.lt.s32.totalorder %s22_s16, %s22_s16 }
  0x2c   :  { %p1478_p5 = scmp.ne.s32.totalorder %s22_s16, %s1477_s12  ;;  %p1483_p7 = scmp.lt.s32.totalorder %s1477_s12, %s1477_s12 }
  0x2e   :  { %p1484_p8 = por %p1483_p7, %p1482_p6 }
  0x30   :  { %p1485_p9 = pnand %p1484_p8, %p1478_p5 }
  0x32   :  { %1488 = shalt.err (!%p1485_p9)
}
  0x33   :  { %27 = dma.hbm_to_vmem [thread:$0]  %s2138_s0, 1024, %s22_s16, [#allocation6], %s1566_s24, %s1566_s24, %s1567_s25  }
  0x34   :  { %s1568_s14 = smov [#allocation10]   ;;  %s1489_s19 = scalar_lea.hbm %s2140_s2, 4096 }
  0x35   :  { %s43_s15 = sshll.u32 %s1568_s14, 4  ;;  %p1490_p10 = scmp.ne.s32.totalorder %s2140_s2, %s1489_s19  ;;  %s44_s15 = int_to_ptr.vmem [resolvable:$true] %s43_s15 }
  0x36   :  { %p1493_p11 = scmp.lt.u32.totalorder %s1489_s19, %s2140_s2 }
  0x38   :  { %p1495_p12 = pnand %p1493_p11, %p1490_p10 }
  0x3a   :  { %1498 = shalt.err (!%p1495_p12)
}
  0x3b   :  { %s1499_s1 = scalar_lea.vmem %s44_s15, 4096  ;;  %p1504_p0 = scmp.lt.s32.totalorder %s44_s15, %s44_s15 }
  0x3c   :  { %p1500_p13 = scmp.ne.s32.totalorder %s44_s15, %s1499_s1  ;;  %p1505_p1 = scmp.lt.s32.totalorder %s1499_s1, %s1499_s1 }
  0x3e   :  { %p1506_p2 = por %p1505_p1, %p1504_p0 }
  0x40   :  { %p1507_p3 = pnand %p1506_p2, %p1500_p13 }
  0x42   :  { %1510 = shalt.err (!%p1507_p3)
}
  0x43   :  { %s1569_s0 = smov 256   ;;  %s1570_s16 = smov 16  }
  0x44   :  { %49 = dma.hbm_to_vmem [thread:$0]  %s2140_s2, 4096, %s44_s15, [#allocation9], %s1569_s0, %s1569_s0, %s1570_s16  }
  0x45   :  { %s1571_s28 = smov [#allocation13]   ;;  %s1511_s9 = scalar_lea.hbm %s2143_s5, 4096 }
  0x46   :  { %s69_s29 = sshll.u32 %s1571_s28, 4  ;;  %p1512_p4 = scmp.ne.s32.totalorder %s2143_s5, %s1511_s9  ;;  %s70_s29 = int_to_ptr.vmem [resolvable:$true] %s69_s29 }
  0x47   :  { %p1515_p5 = scmp.lt.u32.totalorder %s1511_s9, %s2143_s5 }
  0x49   :  { %p1517_p6 = pnand %p1515_p5, %p1512_p4 }
  0x4b   :  { %1520 = shalt.err (!%p1517_p6)
}
  0x4c   :  { %s1521_s13 = scalar_lea.vmem %s70_s29, 4096  ;;  %p1526_p8 = scmp.lt.s32.totalorder %s70_s29, %s70_s29 }
  0x4d   :  { %p1522_p7 = scmp.ne.s32.totalorder %s70_s29, %s1521_s13  ;;  %p1527_p9 = scmp.lt.s32.totalorder %s1521_s13, %s1521_s13 }
  0x4f   :  { %p1528_p10 = por %p1527_p9, %p1526_p8 }
  0x51   :  { %p1529_p11 = pnand %p1528_p10, %p1522_p7 }
  0x53   :  { %1532 = shalt.err (!%p1529_p11)
}
  0x54   :  { %75 = dma.hbm_to_vmem [thread:$0]  %s2143_s5, 4096, %s70_s29, [#allocation12], %s1566_s24, %s1566_s24, %s1567_s25  }
  0x55   :  { %1555 = dma.done.wait [#allocation6], 1024  }
  0x56   :  { %1556 = vsyncadd [#allocation6], 4294966272 }
  0x57   :  { %1557 = dma.done.wait [#allocation9], 4352  }
  0x58   :  { %1558 = vsyncadd [#allocation9], 4294962944 }
  0x59   :  { %1559 = dma.done.wait [#allocation12], 8192  }
  0x5a   :  { %1560 = vsyncadd [#allocation12], 4294959104  ;;  %v1572_v0 = vmov 0.0   ;;  %v1684_v1 = vld [vmem:[#allocation11 + $0x4] ss:$8 sps:$4 sm:$0xff]   ;;  %v112_v10 = vld [vmem:[#allocation10 + $0x18] sm:$0xff] }
  0x5b   :  { %205 = vmatprep.mubr.f32.mxu0 %v1572_v0  ;;  %v1686_v2 = vld [vmem:[#allocation11] ss:$8 sps:$4 sm:$0xff]   ;;  %478 = vmatprep.subr.bf16.mxu1 %v1684_v1  ;;  %v1689_v3 = vld [vmem:[#allocation11 + $0x14] ss:$8 sps:$4 sm:$0xff]   ;;  %v1692_v4 = vld [vmem:[#allocation11 + $0x10] ss:$8 sps:$4 sm:$0xff]  }
  0x5c   :  { %479 = vmatpush1.bf16.msra.mxu1 %v1686_v2  ;;  %v1695_v5 = vld [vmem:[#allocation11 + $0x24] ss:$8 sps:$4 sm:$0xff]   ;;  %v1698_v6 = vld [vmem:[#allocation11 + $0x20] ss:$8 sps:$4 sm:$0xff]   ;;  %v1701_v7 = vld [vmem:[#allocation11 + $0x34] ss:$8 sps:$4 sm:$0xff]  }
  0x5d   :  { %480 = vmatprep.subr.bf16.mxu1 %v1689_v3  ;;  %v1703_v8 = vld [vmem:[#allocation11 + $0x30] ss:$8 sps:$4 sm:$0xff]   ;;  %v110_v9 = vld [vmem:[#allocation10 + $0x8] sm:$0xff]  ;;  %v109_v11 = vld [vmem:[#allocation10] sm:$0xff] }
  0x5e   :  { %v111_v12 = vld [vmem:[#allocation10 + $0x10] sm:$0xff]  ;;  %v1707_v13 = vld [vmem:[#allocation11 + $0x44] ss:$8 sps:$4 sm:$0xff]   ;;  %v1284_v14 = vpack.c.bf16 %v112_v10, %v110_v9  ;;  %v116_v17 = vld [vmem:[#allocation10 + $0x38] sm:$0xff] }
  0x5f   :  { %v1286_v15 = vpack.c.bf16 %v111_v12, %v109_v11  ;;  %v114_v16 = vld [vmem:[#allocation10 + $0x28] sm:$0xff]  ;;  %v113_v19 = vld [vmem:[#allocation10 + $0x20] sm:$0xff]  ;;  %v115_v20 = vld [vmem:[#allocation10 + $0x30] sm:$0xff] }
  0x60   :  { %481 = vmatpush1.bf16.msra.mxu1 %v1692_v4  ;;  %1285 = vmatprep.subr.bf16.mxu0 %v1284_v14  ;;  %v1288_v18 = vpack.c.bf16 %v116_v17, %v114_v16  ;;  %v1710_v21 = vld [vmem:[#allocation11 + $0x40] ss:$8 sps:$4 sm:$0xff]   ;;  %v1712_v22 = vld [vmem:[#allocation11 + $0x54] ss:$8 sps:$4 sm:$0xff]   ;;  %v1290_v23 = vpack.c.bf16 %v115_v20, %v113_v19  ;;  %v1715_v29 = vld [vmem:[#allocation11 + $0x50] ss:$8 sps:$4 sm:$0xff]  }
  0x61   :  { %482 = vmatprep.subr.bf16.mxu1 %v1695_v5  ;;  %1287 = vmatpush1.bf16.msra.mxu0 %v1286_v15  ;;  %v118_v24 = vld [vmem:[#allocation10 + $0x48] sm:$0xff]  ;;  %v120_v25 = vld [vmem:[#allocation10 + $0x58] sm:$0xff]  ;;  %v117_v26 = vld [vmem:[#allocation10 + $0x40] sm:$0xff] }
  0x62   :  { %1289 = vmatprep.subr.bf16.mxu0 %v1288_v18  ;;  %v1292_v27 = vpack.c.bf16 %v120_v25, %v118_v24  ;;  %v119_v28 = vld [vmem:[#allocation10 + $0x50] sm:$0xff]  ;;  %v122_v30 = vld [vmem:[#allocation10 + $0x68] sm:$0xff]  ;;  %v124_v33 = vld [vmem:[#allocation10 + $0x78] sm:$0xff] }
  0x63   :  { %v1718_v31 = vld [vmem:[#allocation11 + $0x64] ss:$8 sps:$4 sm:$0xff]   ;;  %v1294_v32 = vpack.c.bf16 %v119_v28, %v117_v26  ;;  %v1296_v35 = vpack.c.bf16 %v124_v33, %v122_v30  ;;  %v123_v36 = vld [vmem:[#allocation10 + $0x70] sm:$0xff]  ;;  %v128_v38 = vld [vmem:[#allocation10 + $0x98] sm:$0xff] }
  0x64   :  { %483 = vmatpush1.bf16.msra.mxu1 %v1698_v6  ;;  %v121_v34 = vld [vmem:[#allocation10 + $0x60] sm:$0xff]  ;;  %v126_v37 = vld [vmem:[#allocation10 + $0x88] sm:$0xff]  ;;  %v1724_v40 = vld [vmem:[#allocation11 + $0x74] ss:$8 sps:$4 sm:$0xff]  }
  0x65   :  { %484 = vmatprep.subr.bf16.mxu1 %v1701_v7  ;;  %1291 = vmatpush1.bf16.msra.mxu0 %v1290_v23  ;;  %v1722_v39 = vld [vmem:[#allocation11 + $0x60] ss:$8 sps:$4 sm:$0xff]   ;;  %v1298_v41 = vpack.c.bf16 %v123_v36, %v121_v34  ;;  %v1300_v42 = vpack.c.bf16 %v128_v38, %v126_v37  ;;  %v127_v44 = vld [vmem:[#allocation10 + $0x90] sm:$0xff]  ;;  %v132_v46 = vld [vmem:[#allocation10 + $0xb8] sm:$0xff] }
  0x66   :  { %1293 = vmatprep.subr.bf16.mxu0 %v1292_v27  ;;  %v125_v43 = vld [vmem:[#allocation10 + $0x80] sm:$0xff]  ;;  %v130_v45 = vld [vmem:[#allocation10 + $0xa8] sm:$0xff]  ;;  %v1728_v47 = vld [vmem:[#allocation11 + $0x70] ss:$8 sps:$4 sm:$0xff]  }
  0x67   :  { %v1730_v48 = vld [vmem:[#allocation11 + $0x84] ss:$8 sps:$4 sm:$0xff]   ;;  %v1302_v49 = vpack.c.bf16 %v127_v44, %v125_v43  ;;  %v1304_v51 = vpack.c.bf16 %v132_v46, %v130_v45  ;;  %v131_v52 = vld [vmem:[#allocation10 + $0xb0] sm:$0xff]  ;;  %v136_v54 = vld [vmem:[#allocation10 + $0xd8] sm:$0xff] }
  0x68   :  { %485 = vmatpush1.bf16.msra.mxu1 %v1703_v8  ;;  %v129_v50 = vld [vmem:[#allocation10 + $0xa0] sm:$0xff]  ;;  %v134_v53 = vld [vmem:[#allocation10 + $0xc8] sm:$0xff]  ;;  %v1736_v56 = vld [vmem:[#allocation11 + $0x94] ss:$8 sps:$4 sm:$0xff]  }
  0x69   :  { %486 = vmatprep.subr.bf16.mxu1 %v1707_v13  ;;  %1295 = vmatpush1.bf16.msra.mxu0 %v1294_v32  ;;  %v1734_v55 = vld [vmem:[#allocation11 + $0x80] ss:$8 sps:$4 sm:$0xff]   ;;  %v1306_v57 = vpack.c.bf16 %v131_v52, %v129_v50  ;;  %v1308_v58 = vpack.c.bf16 %v136_v54, %v134_v53  ;;  %v135_v60 = vld [vmem:[#allocation10 + $0xd0] sm:$0xff]  ;;  %v98_v61 = vld [vmem:[#allocation8 + $0x8] sm:$0xff] }
  0x6a   :  { %1297 = vmatprep.subr.bf16.mxu0 %v1296_v35  ;;  %v133_v59 = vld [vmem:[#allocation10 + $0xc0] sm:$0xff]  ;;  %v138_v62 = vld [vmem:[#allocation10 + $0xe8] sm:$0xff]  ;;  %v140_v63 = vld [vmem:[#allocation10 + $0xf8] sm:$0xff]  ;;  %v317_v9 = vpack.c.bf16 %v98_v61, %v98_v61 }
  0x6b   :  { %v1740_v10 = vld [vmem:[#allocation11 + $0x90] ss:$8 sps:$4 sm:$0xff]   ;;  %v1310_v11 = vpack.c.bf16 %v135_v60, %v133_v59  ;;  %v1743_v12 = vld [vmem:[#allocation11 + $0xa4] ss:$8 sps:$4 sm:$0xff]   ;;  %v1312_v14 = vpack.c.bf16 %v140_v63, %v138_v62  ;;  %v1746_v17 = vld [vmem:[#allocation11 + $0xa0] ss:$8 sps:$4 sm:$0xff]  }
  0x6c   :  { %487 = vmatpush1.bf16.msra.mxu1 %v1710_v21  ;;  %v137_v15 = vld [vmem:[#allocation10 + $0xe0] sm:$0xff]  ;;  %v139_v16 = vld [vmem:[#allocation10 + $0xf0] sm:$0xff]  ;;  %510 = vmatprep.mubr.bf16.mxu1 %v317_v9  ;;  %v102_v36 = vld [vmem:[#allocation5 + $0x8] sm:$0xff] }
  0x6d   :  { %488 = vmatprep.subr.bf16.mxu1 %v1712_v22  ;;  %1299 = vmatpush1.bf16.msra.mxu0 %v1298_v41  ;;  %v1314_v18 = vpack.c.bf16 %v139_v16, %v137_v15  ;;  %v1749_v19 = vld [vmem:[#allocation11 + $0xb4] ss:$8 sps:$4 sm:$0xff]   ;;  %v1752_v20 = vld [vmem:[#allocation11 + $0xb0] ss:$8 sps:$4 sm:$0xff]   ;;  %v1755_v24 = vld [vmem:[#allocation11 + $0xc4] ss:$8 sps:$4 sm:$0xff]  }
  0x6e   :  { %1301 = vmatprep.subr.bf16.mxu0 %v1300_v42  ;;  %v101_v23 = vld [vmem:[#allocation5] sm:$0xff]  ;;  %v1759_v25 = vld [vmem:[#allocation11 + $0xc0] ss:$8 sps:$4 sm:$0xff]   ;;  %v1772_v28 = vld [vmem:[#allocation11 + $0xe4] ss:$8 sps:$4 sm:$0xff]  }
  0x6f   :  { %v1763_v26 = vld [vmem:[#allocation11 + $0xd4] ss:$8 sps:$4 sm:$0xff]   ;;  %v1768_v27 = vld [vmem:[#allocation11 + $0xd0] ss:$8 sps:$4 sm:$0xff]   ;;  %v1776_v30 = vld [vmem:[#allocation11 + $0xe0] ss:$8 sps:$4 sm:$0xff]  }
  0x70   :  { %489 = vmatpush1.bf16.msra.mxu1 %v1715_v29  ;;  %v1780_v32 = vld [vmem:[#allocation11 + $0xf4] ss:$8 sps:$4 sm:$0xff]   ;;  %v1784_v33 = vld [vmem:[#allocation11 + $0xf0] ss:$8 sps:$4 sm:$0xff]   ;;  %v103_v37 = vld [vmem:[#allocation5 + $0x10] sm:$0xff] }
  0x71   :  { %490 = vmatprep.subr.bf16.mxu1 %v1718_v31  ;;  %1303 = vmatpush1.bf16.msra.mxu0 %v1302_v49  ;;  %v97_v34 = vld [vmem:[#allocation8] sm:$0xff]  ;;  %v104_v38 = vld [vmem:[#allocation5 + $0x18] sm:$0xff]  ;;  %v106_v42 = vld [vmem:[#allocation5 + $0x28] sm:$0xff] }
  0x72   :  { %1305 = vmatprep.subr.bf16.mxu0 %v1304_v51  ;;  %v316_v35 = vpack.c.bf16 %v97_v34, %v97_v34  ;;  %v105_v41 = vld [vmem:[#allocation5 + $0x20] sm:$0xff]  ;;  %v107_v43 = vld [vmem:[#allocation5 + $0x30] sm:$0xff]  ;;  %v108_v44 = vld [vmem:[#allocation5 + $0x38] sm:$0xff] }
  0x74   :  { %491 = vmatpush1.bf16.msra.mxu1 %v1722_v39 }
  0x75   :  { %492 = vmatprep.subr.bf16.mxu1 %v1724_v40  ;;  %1307 = vmatpush1.bf16.msra.mxu0 %v1306_v57 }
  0x76   :  { %1309 = vmatprep.subr.bf16.mxu0 %v1308_v58 }
  0x78   :  { %493 = vmatpush1.bf16.msra.mxu1 %v1728_v47 }
  0x79   :  { %494 = vmatprep.subr.bf16.mxu1 %v1730_v48  ;;  %1311 = vmatpush1.bf16.msra.mxu0 %v1310_v11 }
  0x7a   :  { %1313 = vmatprep.subr.bf16.mxu0 %v1312_v14 }
  0x7c   :  { %495 = vmatpush1.bf16.msra.mxu1 %v1734_v55 }
  0x7d   :  { %496 = vmatprep.subr.bf16.mxu1 %v1736_v56  ;;  %1315 = vmatpush1.bf16.msra.mxu0 %v1314_v18 }
  0x7e   :  { %543 = vmatprep.subr.bf16.mxu0 %v1684_v1 }
  0x80   :  { %497 = vmatpush1.bf16.msra.mxu1 %v1740_v10  ;;  %206 = vmatmul.mubr.f32.vlgmr.msra.gmra.mrb[0].mxu0 %v101_v23 }
  0x81   :  { %498 = vmatprep.subr.bf16.mxu1 %v1743_v12  ;;  %544 = vmatpush1.bf16.msra.mxu0 %v1686_v2 }
  0x82   :  { %545 = vmatprep.subr.bf16.mxu0 %v1689_v3  ;;  %211 = vmatprep.mubr.f32.mxu0 %v1572_v0 }
  0x84   :  { %499 = vmatpush1.bf16.msra.mxu1 %v1746_v17  ;;  %212 = vmatmul.mubr.f32.gmra.mrb[2].mxu0 %v102_v36 }
  0x85   :  { %500 = vmatprep.subr.bf16.mxu1 %v1749_v19  ;;  %546 = vmatpush1.bf16.msra.mxu0 %v1692_v4 }
  0x86   :  { %547 = vmatprep.subr.bf16.mxu0 %v1695_v5  ;;  %217 = vmatprep.mubr.f32.mxu0 %v1572_v0 }
  0x88   :  { %501 = vmatpush1.bf16.msra.mxu1 %v1752_v20  ;;  %218 = vmatmul.mubr.f32.gmra.mrb[4].mxu0 %v103_v37 }
  0x89   :  { %502 = vmatprep.subr.bf16.mxu1 %v1755_v24  ;;  %548 = vmatpush1.bf16.msra.mxu0 %v1698_v6 }
  0x8a   :  { %549 = vmatprep.subr.bf16.mxu0 %v1701_v7  ;;  %223 = vmatprep.mubr.f32.mxu0 %v1572_v0 }
  0x8c   :  { %503 = vmatpush1.bf16.msra.mxu1 %v1759_v25  ;;  %224 = vmatmul.mubr.f32.gmra.mrb[6].mxu0 %v104_v38 }
  0x8d   :  { %504 = vmatprep.subr.bf16.mxu1 %v1763_v26  ;;  %550 = vmatpush1.bf16.msra.mxu0 %v1703_v8 }
  0x8e   :  { %551 = vmatprep.subr.bf16.mxu0 %v1707_v13  ;;  %229 = vmatprep.mubr.f32.mxu0 %v1572_v0 }
  0x90   :  { %505 = vmatpush1.bf16.msra.mxu1 %v1768_v27  ;;  %230 = vmatmul.mubr.f32.gmra.mrb[8].mxu0 %v105_v41 }
  0x91   :  { %506 = vmatprep.subr.bf16.mxu1 %v1772_v28  ;;  %552 = vmatpush1.bf16.msra.mxu0 %v1710_v21 }
  0x92   :  { %553 = vmatprep.subr.bf16.mxu0 %v1712_v22  ;;  %235 = vmatprep.mubr.f32.mxu0 %v1572_v0 }
  0x94   :  { %507 = vmatpush1.bf16.msra.mxu1 %v1776_v30  ;;  %236 = vmatmul.mubr.f32.gmra.mrb[10].mxu0 %v106_v42 }
  0x95   :  { %508 = vmatprep.subr.bf16.mxu1 %v1780_v32  ;;  %554 = vmatpush1.bf16.msra.mxu0 %v1715_v29 }
  0x96   :  { %555 = vmatprep.subr.bf16.mxu0 %v1718_v31  ;;  %241 = vmatprep.mubr.f32.mxu0 %v1572_v0 }
  0x98   :  { %509 = vmatpush1.bf16.msra.mxu1 %v1784_v33  ;;  %242 = vmatmul.mubr.f32.gmra.mrb[12].mxu0 %v107_v43 }
  0x99   :  { %608 = vmatprep.subr.bf16.mxu1 %v1684_v1  ;;  %556 = vmatpush1.bf16.msra.mxu0 %v1722_v39 }
  0x9a   :  { %557 = vmatprep.subr.bf16.mxu0 %v1724_v40  ;;  %247 = vmatprep.mubr.f32.mxu0 %v1572_v0  ;;  %v1856_v0 = vld [vmem:[%s2142_s4] ss:$0 sm:$0xff] }
  0x9b   :  { %511 = vmatmul.mubr.bf16.vlgmr.msra.gmra.mrb[0].mxu1 %v316_v35 }
  0x9c   :  { %609 = vmatpush1.bf16.msra.mxu1 %v1686_v2  ;;  %248 = vmatmul.mubr.f32.gmra.mrb[14].mxu0 %v108_v44 }
  0x9d   :  { %610 = vmatprep.subr.bf16.mxu1 %v1689_v3  ;;  %558 = vmatpush1.bf16.msra.mxu0 %v1728_v47 }
  0x9e   :  { %559 = vmatprep.subr.bf16.mxu0 %v1730_v48 }
  0xa0   :  { %611 = vmatpush1.bf16.msra.mxu1 %v1692_v4 }
  0xa1   :  { %612 = vmatprep.subr.bf16.mxu1 %v1695_v5  ;;  %560 = vmatpush1.bf16.msra.mxu0 %v1734_v55 }
  0xa2   :  { %561 = vmatprep.subr.bf16.mxu0 %v1736_v56 }
  0xa4   :  { %613 = vmatpush1.bf16.msra.mxu1 %v1698_v6 }
  0xa5   :  { %614 = vmatprep.subr.bf16.mxu1 %v1701_v7  ;;  %562 = vmatpush1.bf16.msra.mxu0 %v1740_v10 }
  0xa6   :  { %563 = vmatprep.subr.bf16.mxu0 %v1743_v12 }
  0xa8   :  { %615 = vmatpush1.bf16.msra.mxu1 %v1703_v8 }
  0xa9   :  { %616 = vmatprep.subr.bf16.mxu1 %v1707_v13  ;;  %564 = vmatpush1.bf16.msra.mxu0 %v1746_v17 }
  0xaa   :  { %565 = vmatprep.subr.bf16.mxu0 %v1749_v19 }
  0xac   :  { %617 = vmatpush1.bf16.msra.mxu1 %v1710_v21 }
  0xad   :  { %618 = vmatprep.subr.bf16.mxu1 %v1712_v22  ;;  %566 = vmatpush1.bf16.msra.mxu0 %v1752_v20 }
  0xae   :  { %567 = vmatprep.subr.bf16.mxu0 %v1755_v24 }
  0xb0   :  { %619 = vmatpush1.bf16.msra.mxu1 %v1715_v29 }
  0xb1   :  { %620 = vmatprep.subr.bf16.mxu1 %v1718_v31  ;;  %568 = vmatpush1.bf16.msra.mxu0 %v1759_v25 }
  0xb2   :  { %569 = vmatprep.subr.bf16.mxu0 %v1763_v26 }
  0xb4   :  { %621 = vmatpush1.bf16.msra.mxu1 %v1722_v39 }
  0xb5   :  { %622 = vmatprep.subr.bf16.mxu1 %v1724_v40  ;;  %570 = vmatpush1.bf16.msra.mxu0 %v1768_v27 }
  0xb6   :  { %571 = vmatprep.subr.bf16.mxu0 %v1772_v28 }
  0xb8   :  { %623 = vmatpush1.bf16.msra.mxu1 %v1728_v47 }
  0xb9   :  { %624 = vmatprep.subr.bf16.mxu1 %v1730_v48  ;;  %572 = vmatpush1.bf16.msra.mxu0 %v1776_v30 }
  0xba   :  { %573 = vmatprep.subr.bf16.mxu0 %v1780_v32 }
  0xbc   :  { %625 = vmatpush1.bf16.msra.mxu1 %v1734_v55 }
  0xbd   :  { %626 = vmatprep.subr.bf16.mxu1 %v1736_v56  ;;  %574 = vmatpush1.bf16.msra.mxu0 %v1784_v33 }
  0xbe   :  { %673 = vmatprep.subr.bf16.mxu0 %v1684_v1 }
  0xc0   :  { %627 = vmatpush1.bf16.msra.mxu1 %v1740_v10 }
  0xc1   :  { %628 = vmatprep.subr.bf16.mxu1 %v1743_v12 }
  0xc4   :  { %629 = vmatpush1.bf16.msra.mxu1 %v1746_v17 }
  0xc5   :  { %630 = vmatprep.subr.bf16.mxu1 %v1749_v19 }
  0xc8   :  { %631 = vmatpush1.bf16.msra.mxu1 %v1752_v20 }
  0xc9   :  { %632 = vmatprep.subr.bf16.mxu1 %v1755_v24 }
  0xcc   :  { %633 = vmatpush1.bf16.msra.mxu1 %v1759_v25 }
  0xcd   :  { %634 = vmatprep.subr.bf16.mxu1 %v1763_v26 }
  0xd0   :  { %635 = vmatpush1.bf16.msra.mxu1 %v1768_v27 }
  0xd1   :  { %636 = vmatprep.subr.bf16.mxu1 %v1772_v28 }
  0xd4   :  { %637 = vmatpush1.bf16.msra.mxu1 %v1776_v30 }
  0xd5   :  { %638 = vmatprep.subr.bf16.mxu1 %v1780_v32 }
  0xd8   :  { %639 = vmatpush1.bf16.msra.mxu1 %v1784_v33 }
  0xd9   :  { %738 = vmatprep.subr.bf16.mxu1 %v1684_v1 }
 0x153   :  { %v207_v45 = vpop.f32.mrb[0].mxu0 }
 0x154   :  { %v209_v46 = vpop.f32.mrb[1].mxu0 }
 0x157   :  { %v213_v23 = vpop.f32.mrb[2].mxu0 }
 0x158   :  { %v215_v34 = vpop.f32.mrb[3].mxu0 }
 0x15b   :  { %v1896_v35 = vpop.f32.mrb[4].mxu0 }
 0x15c   :  { %v1899_v36 = vpop.f32.mrb[5].mxu0 }
 0x15f   :  { %v1902_v37 = vpop.f32.mrb[6].mxu0 }
 0x160   :  { %v1905_v38 = vpop.f32.mrb[7].mxu0 }
 0x163   :  { %v1907_v41 = vpop.f32.mrb[8].mxu0 }
 0x164   :  { %v1909_v42 = vpop.f32.mrb[9].mxu0 }
 0x167   :  { %v1911_v43 = vpop.f32.mrb[10].mxu0 }
 0x168   :  { %v1913_v44 = vpop.f32.mrb[11].mxu0 }
 0x16e   :  { %v512_v49 = vpop.f32.mrb[0].mxu1 }
 0x16f   :  { %v519_v50 = vadd.f32 %v512_v49, %v207_v45  ;;  %v514_v51 = vpop.f32.mrb[1].mxu1  ;;  %v1915_v45 = vpop.f32.mrb[12].mxu0 }
 0x170   :  { %v520_v52 = vadd.f32 %v514_v51, %v209_v46  ;;  %v516_v53 = vpop.f32.mrb[2].mxu1  ;;  %v1917_v46 = vpop.f32.mrb[13].mxu0 }
 0x171   :  { %v521_v54 = vmul.f32 %v519_v50, %v519_v50  ;;  %v517_v57 = vpop.f32.mrb[3].mxu1  ;;  %v1919_v49 = vpop.f32.mrb[14].mxu0 }
 0x172   :  { %v522_v58 = vmul.f32 %v520_v52, %v520_v52  ;;  %2146 = vst [vmem:[#allocation19_spill] sm:$0xff] %v1919_v49 }
 0x174   :  { %v523_v59 = vadd.f32 %v522_v58, %v521_v54 }
 0x176   :  { %v524_v60 = vadd.f32 1e-12, %v523_v59 }
 0x178   :  { %1407 = vrsqrt.f32 %v524_v60 }
 0x182   :  { %v1408_v61 = vpop.eup %1407 }
 0x183   :  { %v526_v62 = vmul.f32 %v1408_v61, %v523_v59 }
 0x185   :  { %v527_v63 = vadd.f32 %v1856_v0, %v526_v62 }
 0x187   :  { %v528_v9 = vmax.f32 %v527_v63, 0.0 }
 0x189   :  { %v529_v11 = vmul.f32 %v1408_v61, %v528_v9 }
 0x18b   :  { %v1859_v14 = vmul.f32 %v529_v11, %v519_v50  ;;  %v1861_v15 = vmul.f32 %v529_v11, %v520_v52  ;;  %v1921_v50 = vpop.f32.mrb[15].mxu0 }
 0x18c   :  { %2147 = vst [vmem:[#allocation20_spill] sm:$0xff] %v1921_v50 }
 0x18d   :  { %v541_v16 = vpack.c.bf16 %v1859_v14, %v1859_v14  ;;  %v542_v18 = vpack.c.bf16 %v1861_v15, %v1861_v15 }
 0x18f   :  { %575 = vmatprep.mubr.bf16.mxu0 %v542_v18 }
 0x190   :  { %576 = vmatmul.mubr.bf16.vlgmr.msra.gmra.mrb[16].mxu0 %v541_v16 }
 0x191   :  { %674 = vmatpush1.bf16.msra.mxu0 %v1686_v2 }
 0x192   :  { %675 = vmatprep.subr.bf16.mxu0 %v1689_v3 }
 0x195   :  { %676 = vmatpush1.bf16.msra.mxu0 %v1692_v4 }
 0x196   :  { %677 = vmatprep.subr.bf16.mxu0 %v1695_v5 }
 0x199   :  { %678 = vmatpush1.bf16.msra.mxu0 %v1698_v6 }
 0x19a   :  { %679 = vmatprep.subr.bf16.mxu0 %v1701_v7 }
 0x19d   :  { %680 = vmatpush1.bf16.msra.mxu0 %v1703_v8 }
 0x19e   :  { %681 = vmatprep.subr.bf16.mxu0 %v1707_v13 }
 0x1a1   :  { %682 = vmatpush1.bf16.msra.mxu0 %v1710_v21 }
 0x1a2   :  { %683 = vmatprep.subr.bf16.mxu0 %v1712_v22 }
 0x1a5   :  { %684 = vmatpush1.bf16.msra.mxu0 %v1715_v29 }
 0x1a6   :  { %685 = vmatprep.subr.bf16.mxu0 %v1718_v31 }
 0x1a9   :  { %686 = vmatpush1.bf16.msra.mxu0 %v1722_v39 }
 0x1aa   :  { %687 = vmatprep.subr.bf16.mxu0 %v1724_v40 }
 0x1ad   :  { %688 = vmatpush1.bf16.msra.mxu0 %v1728_v47 }
 0x1ae   :  { %689 = vmatprep.subr.bf16.mxu0 %v1730_v48 }
 0x1b1   :  { %690 = vmatpush1.bf16.msra.mxu0 %v1734_v55 }
 0x1b2   :  { %691 = vmatprep.subr.bf16.mxu0 %v1736_v56 }
 0x1b5   :  { %692 = vmatpush1.bf16.msra.mxu0 %v1740_v10 }
 0x1b6   :  { %693 = vmatprep.subr.bf16.mxu0 %v1743_v12 }
 0x1b9   :  { %694 = vmatpush1.bf16.msra.mxu0 %v1746_v17 }
 0x1ba   :  { %695 = vmatprep.subr.bf16.mxu0 %v1749_v19 }
 0x1bd   :  { %696 = vmatpush1.bf16.msra.mxu0 %v1752_v20 }
 0x1be   :  { %697 = vmatprep.subr.bf16.mxu0 %v1755_v24 }
 0x1c1   :  { %698 = vmatpush1.bf16.msra.mxu0 %v1759_v25 }
 0x1c2   :  { %699 = vmatprep.subr.bf16.mxu0 %v1763_v26 }
 0x1c5   :  { %700 = vmatpush1.bf16.msra.mxu0 %v1768_v27 }
 0x1c6   :  { %701 = vmatprep.subr.bf16.mxu0 %v1772_v28 }
 0x1c9   :  { %702 = vmatpush1.bf16.msra.mxu0 %v1776_v30 }
 0x1ca   :  { %703 = vmatprep.subr.bf16.mxu0 %v1780_v32 }
 0x1cd   :  { %704 = vmatpush1.bf16.msra.mxu0 %v1784_v33 }
 0x1ce   :  { %803 = vmatprep.subr.bf16.mxu0 %v1684_v1 }
 0x263   :  { %v577_v51 = vpop.f32.mrb[16].mxu0 }
 0x264   :  { %v584_v52 = vadd.f32 %v577_v51, %v213_v23  ;;  %v579_v53 = vpop.f32.mrb[17].mxu0 }
 0x265   :  { %v585_v54 = vadd.f32 %v579_v53, %v215_v34  ;;  %v581_v57 = vpop.f32.mrb[18].mxu0 }
 0x266   :  { %v586_v58 = vmul.f32 %v584_v52, %v584_v52  ;;  %v582_v59 = vpop.f32.mrb[19].mxu0 }
 0x267   :  { %v587_v60 = vmul.f32 %v585_v54, %v585_v54 }
 0x269   :  { %v588_v61 = vadd.f32 %v587_v60, %v586_v58 }
 0x26b   :  { %v589_v62 = vadd.f32 1e-12, %v588_v61 }
 0x26d   :  { %1409 = vrsqrt.f32 %v589_v62 }
 0x277   :  { %v1410_v63 = vpop.eup %1409 }
 0x278   :  { %v591_v9 = vmul.f32 %v1410_v63, %v588_v61 }
 0x27a   :  { %v592_v11 = vadd.f32 %v1856_v0, %v591_v9 }
 0x27c   :  { %v593_v16 = vmax.f32 %v592_v11, 0.0 }
 0x27e   :  { %v594_v18 = vmul.f32 %v1410_v63, %v593_v16 }
 0x280   :  { %v1924_v49 = vmul.f32 %v594_v18, %v584_v52  ;;  %v1926_v50 = vmul.f32 %v594_v18, %v585_v54 }
 0x282   :  { %v607_v23 = vpack.c.bf16 %v1926_v50, %v1926_v50  ;;  %v606_v34 = vpack.c.bf16 %v1924_v49, %v1924_v49 }
 0x284   :  { %640 = vmatprep.mubr.bf16.mxu1 %v607_v23 }
 0x285   :  { %641 = vmatmul.mubr.bf16.vlgmr.msra.gmra.mrb[4].mxu1 %v606_v34 }
 0x286   :  { %739 = vmatpush1.bf16.msra.mxu1 %v1686_v2 }
 0x287   :  { %740 = vmatprep.subr.bf16.mxu1 %v1689_v3 }
 0x28a   :  { %741 = vmatpush1.bf16.msra.mxu1 %v1692_v4 }
 0x28b   :  { %742 = vmatprep.subr.bf16.mxu1 %v1695_v5 }
 0x28e   :  { %743 = vmatpush1.bf16.msra.mxu1 %v1698_v6 }
 0x28f   :  { %744 = vmatprep.subr.bf16.mxu1 %v1701_v7 }
 0x292   :  { %745 = vmatpush1.bf16.msra.mxu1 %v1703_v8 }
 0x293   :  { %746 = vmatprep.subr.bf16.mxu1 %v1707_v13 }
 0x296   :  { %747 = vmatpush1.bf16.msra.mxu1 %v1710_v21 }
 0x297   :  { %748 = vmatprep.subr.bf16.mxu1 %v1712_v22 }
 0x29a   :  { %749 = vmatpush1.bf16.msra.mxu1 %v1715_v29 }
 0x29b   :  { %750 = vmatprep.subr.bf16.mxu1 %v1718_v31 }
 0x29e   :  { %751 = vmatpush1.bf16.msra.mxu1 %v1722_v39 }
 0x29f   :  { %752 = vmatprep.subr.bf16.mxu1 %v1724_v40 }
 0x2a2   :  { %753 = vmatpush1.bf16.msra.mxu1 %v1728_v47 }
 0x2a3   :  { %754 = vmatprep.subr.bf16.mxu1 %v1730_v48 }
 0x2a6   :  { %755 = vmatpush1.bf16.msra.mxu1 %v1734_v55 }
 0x2a7   :  { %756 = vmatprep.subr.bf16.mxu1 %v1736_v56 }
 0x2aa   :  { %757 = vmatpush1.bf16.msra.mxu1 %v1740_v10 }
 0x2ab   :  { %758 = vmatprep.subr.bf16.mxu1 %v1743_v12 }
 0x2ae   :  { %759 = vmatpush1.bf16.msra.mxu1 %v1746_v17 }
 0x2af   :  { %760 = vmatprep.subr.bf16.mxu1 %v1749_v19 }
 0x2b2   :  { %761 = vmatpush1.bf16.msra.mxu1 %v1752_v20 }
 0x2b3   :  { %762 = vmatprep.subr.bf16.mxu1 %v1755_v24 }
 0x2b6   :  { %763 = vmatpush1.bf16.msra.mxu1 %v1759_v25 }
 0x2b7   :  { %764 = vmatprep.subr.bf16.mxu1 %v1763_v26 }
 0x2ba   :  { %765 = vmatpush1.bf16.msra.mxu1 %v1768_v27 }
 0x2bb   :  { %766 = vmatprep.subr.bf16.mxu1 %v1772_v28 }
 0x2be   :  { %767 = vmatpush1.bf16.msra.mxu1 %v1776_v30 }
 0x2bf   :  { %768 = vmatprep.subr.bf16.mxu1 %v1780_v32 }
 0x2c2   :  { %769 = vmatpush1.bf16.msra.mxu1 %v1784_v33 }
 0x2c3   :  { %868 = vmatprep.subr.bf16.mxu1 %v1684_v1 }
 0x358   :  { %v642_v51 = vpop.f32.mrb[4].mxu1 }
 0x359   :  { %v649_v52 = vadd.f32 %v642_v51, %v1896_v35  ;;  %v644_v53 = vpop.f32.mrb[5].mxu1 }
 0x35a   :  { %v650_v54 = vadd.f32 %v644_v53, %v1899_v36  ;;  %v646_v57 = vpop.f32.mrb[6].mxu1 }
 0x35b   :  { %v651_v58 = vmul.f32 %v649_v52, %v649_v52  ;;  %v647_v59 = vpop.f32.mrb[7].mxu1 }
 0x35c   :  { %v652_v60 = vmul.f32 %v650_v54, %v650_v54 }
 0x35e   :  { %v653_v61 = vadd.f32 %v652_v60, %v651_v58 }
 0x360   :  { %v654_v62 = vadd.f32 1e-12, %v653_v61 }
 0x362   :  { %1411 = vrsqrt.f32 %v654_v62 }
 0x36c   :  { %v1412_v63 = vpop.eup %1411 }
 0x36d   :  { %v656_v9 = vmul.f32 %v1412_v63, %v653_v61 }
 0x36f   :  { %v657_v11 = vadd.f32 %v1856_v0, %v656_v9 }
 0x371   :  { %v658_v16 = vmax.f32 %v657_v11, 0.0 }
 0x373   :  { %v659_v18 = vmul.f32 %v1412_v63, %v658_v16 }
 0x375   :  { %v1967_v23 = vmul.f32 %v659_v18, %v649_v52  ;;  %v1969_v34 = vmul.f32 %v659_v18, %v650_v54 }
 0x377   :  { %v672_v35 = vpack.c.bf16 %v1969_v34, %v1969_v34  ;;  %v671_v36 = vpack.c.bf16 %v1967_v23, %v1967_v23 }
 0x379   :  { %705 = vmatprep.mubr.bf16.mxu0 %v672_v35 }
 0x37a   :  { %706 = vmatmul.mubr.bf16.vlgmr.msra.gmra.mrb[20].mxu0 %v671_v36 }
 0x37b   :  { %804 = vmatpush1.bf16.msra.mxu0 %v1686_v2 }
 0x37c   :  { %805 = vmatprep.subr.bf16.mxu0 %v1689_v3 }
 0x37f   :  { %806 = vmatpush1.bf16.msra.mxu0 %v1692_v4 }
 0x380   :  { %807 = vmatprep.subr.bf16.mxu0 %v1695_v5 }
 0x383   :  { %808 = vmatpush1.bf16.msra.mxu0 %v1698_v6 }
 0x384   :  { %809 = vmatprep.subr.bf16.mxu0 %v1701_v7 }
 0x387   :  { %810 = vmatpush1.bf16.msra.mxu0 %v1703_v8 }
 0x388   :  { %811 = vmatprep.subr.bf16.mxu0 %v1707_v13 }
 0x38b   :  { %812 = vmatpush1.bf16.msra.mxu0 %v1710_v21 }
 0x38c   :  { %813 = vmatprep.subr.bf16.mxu0 %v1712_v22 }
 0x38f   :  { %814 = vmatpush1.bf16.msra.mxu0 %v1715_v29 }
 0x390   :  { %815 = vmatprep.subr.bf16.mxu0 %v1718_v31 }
 0x393   :  { %816 = vmatpush1.bf16.msra.mxu0 %v1722_v39 }
 0x394   :  { %817 = vmatprep.subr.bf16.mxu0 %v1724_v40 }
 0x397   :  { %818 = vmatpush1.bf16.msra.mxu0 %v1728_v47 }
 0x398   :  { %819 = vmatprep.subr.bf16.mxu0 %v1730_v48 }
 0x39b   :  { %820 = vmatpush1.bf16.msra.mxu0 %v1734_v55 }
 0x39c   :  { %821 = vmatprep.subr.bf16.mxu0 %v1736_v56 }
 0x39f   :  { %822 = vmatpush1.bf16.msra.mxu0 %v1740_v10 }
 0x3a0   :  { %823 = vmatprep.subr.bf16.mxu0 %v1743_v12 }
 0x3a3   :  { %824 = vmatpush1.bf16.msra.mxu0 %v1746_v17 }
 0x3a4   :  { %825 = vmatprep.subr.bf16.mxu0 %v1749_v19 }
 0x3a7   :  { %826 = vmatpush1.bf16.msra.mxu0 %v1752_v20 }
 0x3a8   :  { %827 = vmatprep.subr.bf16.mxu0 %v1755_v24 }
 0x3ab   :  { %828 = vmatpush1.bf16.msra.mxu0 %v1759_v25 }
 0x3ac   :  { %829 = vmatprep.subr.bf16.mxu0 %v1763_v26 }
 0x3af   :  { %830 = vmatpush1.bf16.msra.mxu0 %v1768_v27 }
 0x3b0   :  { %831 = vmatprep.subr.bf16.mxu0 %v1772_v28 }
 0x3b3   :  { %832 = vmatpush1.bf16.msra.mxu0 %v1776_v30 }
 0x3b4   :  { %833 = vmatprep.subr.bf16.mxu0 %v1780_v32 }
 0x3b7   :  { %834 = vmatpush1.bf16.msra.mxu0 %v1784_v33 }
 0x3b8   :  { %933 = vmatprep.subr.bf16.mxu0 %v1684_v1 }
 0x44d   :  { %v707_v51 = vpop.f32.mrb[20].mxu0 }
 0x44e   :  { %v714_v52 = vadd.f32 %v707_v51, %v1902_v37  ;;  %v709_v53 = vpop.f32.mrb[21].mxu0 }
 0x44f   :  { %v715_v54 = vadd.f32 %v709_v53, %v1905_v38  ;;  %v711_v57 = vpop.f32.mrb[22].mxu0 }
 0x450   :  { %v716_v58 = vmul.f32 %v714_v52, %v714_v52  ;;  %v712_v59 = vpop.f32.mrb[23].mxu0 }
 0x451   :  { %v717_v60 = vmul.f32 %v715_v54, %v715_v54 }
 0x453   :  { %v718_v61 = vadd.f32 %v717_v60, %v716_v58 }
 0x455   :  { %v719_v62 = vadd.f32 1e-12, %v718_v61 }
 0x457   :  { %1413 = vrsqrt.f32 %v719_v62 }
 0x461   :  { %v1414_v63 = vpop.eup %1413 }
 0x462   :  { %v721_v9 = vmul.f32 %v1414_v63, %v718_v61 }
 0x464   :  { %v722_v11 = vadd.f32 %v1856_v0, %v721_v9 }
 0x466   :  { %v723_v16 = vmax.f32 %v722_v11, 0.0 }
 0x468   :  { %v724_v18 = vmul.f32 %v1414_v63, %v723_v16 }
 0x46a   :  { %v2010_v1 = vmul.f32 %v724_v18, %v714_v52  ;;  %v2012_v35 = vmul.f32 %v724_v18, %v715_v54 }
 0x46c   :  { %v737_v37 = vpack.c.bf16 %v2012_v35, %v2012_v35  ;;  %v736_v38 = vpack.c.bf16 %v2010_v1, %v2010_v1 }
 0x46e   :  { %770 = vmatprep.mubr.bf16.mxu1 %v737_v37 }
 0x46f   :  { %771 = vmatmul.mubr.bf16.vlgmr.msra.gmra.mrb[8].mxu1 %v736_v38 }
 0x470   :  { %869 = vmatpush1.bf16.msra.mxu1 %v1686_v2 }
 0x471   :  { %870 = vmatprep.subr.bf16.mxu1 %v1689_v3 }
 0x474   :  { %871 = vmatpush1.bf16.msra.mxu1 %v1692_v4 }
 0x475   :  { %872 = vmatprep.subr.bf16.mxu1 %v1695_v5 }
 0x478   :  { %873 = vmatpush1.bf16.msra.mxu1 %v1698_v6 }
 0x479   :  { %874 = vmatprep.subr.bf16.mxu1 %v1701_v7 }
 0x47c   :  { %875 = vmatpush1.bf16.msra.mxu1 %v1703_v8 }
 0x47d   :  { %876 = vmatprep.subr.bf16.mxu1 %v1707_v13 }
 0x480   :  { %877 = vmatpush1.bf16.msra.mxu1 %v1710_v21 }
 0x481   :  { %878 = vmatprep.subr.bf16.mxu1 %v1712_v22 }
 0x484   :  { %879 = vmatpush1.bf16.msra.mxu1 %v1715_v29 }
 0x485   :  { %880 = vmatprep.subr.bf16.mxu1 %v1718_v31 }
 0x488   :  { %881 = vmatpush1.bf16.msra.mxu1 %v1722_v39 }
 0x489   :  { %882 = vmatprep.subr.bf16.mxu1 %v1724_v40 }
 0x48c   :  { %883 = vmatpush1.bf16.msra.mxu1 %v1728_v47 }
 0x48d   :  { %884 = vmatprep.subr.bf16.mxu1 %v1730_v48 }
 0x490   :  { %885 = vmatpush1.bf16.msra.mxu1 %v1734_v55 }
 0x491   :  { %886 = vmatprep.subr.bf16.mxu1 %v1736_v56 }
 0x494   :  { %887 = vmatpush1.bf16.msra.mxu1 %v1740_v10 }
 0x495   :  { %888 = vmatprep.subr.bf16.mxu1 %v1743_v12 }
 0x498   :  { %889 = vmatpush1.bf16.msra.mxu1 %v1746_v17 }
 0x499   :  { %890 = vmatprep.subr.bf16.mxu1 %v1749_v19 }
 0x49c   :  { %891 = vmatpush1.bf16.msra.mxu1 %v1752_v20 }
 0x49d   :  { %892 = vmatprep.subr.bf16.mxu1 %v1755_v24 }
 0x4a0   :  { %893 = vmatpush1.bf16.msra.mxu1 %v1759_v25 }
 0x4a1   :  { %894 = vmatprep.subr.bf16.mxu1 %v1763_v26 }
 0x4a4   :  { %895 = vmatpush1.bf16.msra.mxu1 %v1768_v27 }
 0x4a5   :  { %896 = vmatprep.subr.bf16.mxu1 %v1772_v28 }
 0x4a8   :  { %897 = vmatpush1.bf16.msra.mxu1 %v1776_v30 }
 0x4a9   :  { %898 = vmatprep.subr.bf16.mxu1 %v1780_v32 }
 0x4ac   :  { %899 = vmatpush1.bf16.msra.mxu1 %v1784_v33 }
 0x542   :  { %v772_v36 = vpop.f32.mrb[8].mxu1 }
 0x543   :  { %v779_v51 = vadd.f32 %v772_v36, %v1907_v41  ;;  %v774_v52 = vpop.f32.mrb[9].mxu1  ;;  %v1013_v36 = vld [vmem:[#allocation13 + $0x20] sm:$0xff] }
 0x544   :  { %v780_v53 = vadd.f32 %v774_v52, %v1909_v42  ;;  %v776_v54 = vpop.f32.mrb[10].mxu1  ;;  %v1031_v52 = vld [vmem:[#allocation13 + $0xb0] sm:$0xff] }
 0x545   :  { %v781_v57 = vmul.f32 %v779_v51, %v779_v51  ;;  %v777_v58 = vpop.f32.mrb[11].mxu1 }
 0x546   :  { %v782_v59 = vmul.f32 %v780_v53, %v780_v53  ;;  %v1015_v58 = vld [vmem:[#allocation13 + $0x30] sm:$0xff] }
 0x548   :  { %v783_v60 = vadd.f32 %v782_v59, %v781_v57  ;;  %v1016_v59 = vld [vmem:[#allocation13 + $0x38] sm:$0xff] }
 0x54a   :  { %v784_v61 = vadd.f32 1e-12, %v783_v60 }
 0x54c   :  { %1415 = vrsqrt.f32 %v784_v61  ;;  %v1034_v61 = vld [vmem:[#allocation13 + $0xc8] sm:$0xff] }
 0x556   :  { %v1416_v62 = vpop.eup %1415 }
 0x557   :  { %v786_v63 = vmul.f32 %v1416_v62, %v783_v60  ;;  %v1033_v60 = vld [vmem:[#allocation13 + $0xc0] sm:$0xff] }
 0x559   :  { %v787_v9 = vadd.f32 %v1856_v0, %v786_v63  ;;  %v1332_v63 = vpack.c.bf16 %v1034_v61, %v1033_v60 }
 0x55b   :  { %v788_v11 = vmax.f32 %v787_v9, 0.0  ;;  %v1018_v9 = vld [vmem:[#allocation13 + $0x48] sm:$0xff] }
 0x55d   :  { %v789_v16 = vmul.f32 %v1416_v62, %v788_v11  ;;  %v1330_v62 = vpack.c.bf16 %v1016_v59, %v1015_v58  ;;  %v1035_v11 = vld [vmem:[#allocation13 + $0xd0] sm:$0xff] }
 0x55f   :  { %v2052_v18 = vmul.f32 %v789_v16, %v779_v51  ;;  %v2054_v37 = vmul.f32 %v789_v16, %v780_v53  ;;  %v1014_v51 = vld [vmem:[#allocation13 + $0x28] sm:$0xff]  ;;  %v1032_v53 = vld [vmem:[#allocation13 + $0xb8] sm:$0xff] }
 0x560   :  { %v1326_v54 = vpack.c.bf16 %v1014_v51, %v1013_v36  ;;  %v1328_v57 = vpack.c.bf16 %v1032_v53, %v1031_v52  ;;  %v1036_v16 = vld [vmem:[#allocation13 + $0xd8] sm:$0xff] }
 0x561   :  { %v802_v41 = vpack.c.bf16 %v2054_v37, %v2054_v37  ;;  %v801_v42 = vpack.c.bf16 %v2052_v18, %v2052_v18 }
 0x563   :  { %835 = vmatprep.mubr.bf16.mxu0 %v802_v41 }
 0x564   :  { %836 = vmatmul.mubr.bf16.vlgmr.msra.gmra.mrb[24].mxu0 %v801_v42  ;;  %v1336_v42 = vpack.c.bf16 %v1036_v16, %v1035_v11 }
 0x565   :  { %934 = vmatpush1.bf16.msra.mxu0 %v1686_v2  ;;  %v1025_v2 = vld [vmem:[#allocation13 + $0x80] sm:$0xff] }
 0x566   :  { %935 = vmatprep.subr.bf16.mxu0 %v1689_v3  ;;  %v1026_v3 = vld [vmem:[#allocation13 + $0x88] sm:$0xff] }
 0x569   :  { %936 = vmatpush1.bf16.msra.mxu0 %v1692_v4  ;;  %v1316_v4 = vpack.c.bf16 %v1026_v3, %v1025_v2  ;;  %v1019_v2 = vld [vmem:[#allocation13 + $0x50] sm:$0xff]  ;;  %v1020_v3 = vld [vmem:[#allocation13 + $0x58] sm:$0xff] }
 0x56a   :  { %937 = vmatprep.subr.bf16.mxu0 %v1695_v5 }
 0x56b   :  { %1317 = vmatprep.subr.bf16.mxu1 %v1316_v4  ;;  %v1037_v4 = vld [vmem:[#allocation13 + $0xe0] sm:$0xff] }
 0x56d   :  { %938 = vmatpush1.bf16.msra.mxu0 %v1698_v6 }
 0x56e   :  { %939 = vmatprep.subr.bf16.mxu0 %v1701_v7 }
 0x571   :  { %940 = vmatpush1.bf16.msra.mxu0 %v1703_v8 }
 0x572   :  { %941 = vmatprep.subr.bf16.mxu0 %v1707_v13 }
 0x575   :  { %942 = vmatpush1.bf16.msra.mxu0 %v1710_v21 }
 0x576   :  { %943 = vmatprep.subr.bf16.mxu0 %v1712_v22 }
 0x579   :  { %944 = vmatpush1.bf16.msra.mxu0 %v1715_v29 }
 0x57a   :  { %945 = vmatprep.subr.bf16.mxu0 %v1718_v31 }
 0x57d   :  { %946 = vmatpush1.bf16.msra.mxu0 %v1722_v39 }
 0x57e   :  { %947 = vmatprep.subr.bf16.mxu0 %v1724_v40 }
 0x581   :  { %948 = vmatpush1.bf16.msra.mxu0 %v1728_v47 }
 0x582   :  { %949 = vmatprep.subr.bf16.mxu0 %v1730_v48 }
 0x585   :  { %950 = vmatpush1.bf16.msra.mxu0 %v1734_v55 }
 0x586   :  { %951 = vmatprep.subr.bf16.mxu0 %v1736_v56 }
 0x589   :  { %952 = vmatpush1.bf16.msra.mxu0 %v1740_v10  ;;  %v1009_v10 = vld [vmem:[#allocation13] sm:$0xff] }
 0x58a   :  { %953 = vmatprep.subr.bf16.mxu0 %v1743_v12  ;;  %v1010_v12 = vld [vmem:[#allocation13 + $0x8] sm:$0xff] }
 0x58d   :  { %954 = vmatpush1.bf16.msra.mxu0 %v1746_v17 }
 0x58e   :  { %955 = vmatprep.subr.bf16.mxu0 %v1749_v19 }
 0x591   :  { %956 = vmatpush1.bf16.msra.mxu0 %v1752_v20  ;;  %v1027_v20 = vld [vmem:[#allocation13 + $0x90] sm:$0xff] }
 0x592   :  { %957 = vmatprep.subr.bf16.mxu0 %v1755_v24  ;;  %v1028_v24 = vld [vmem:[#allocation13 + $0x98] sm:$0xff] }
 0x595   :  { %958 = vmatpush1.bf16.msra.mxu0 %v1759_v25 }
 0x596   :  { %959 = vmatprep.subr.bf16.mxu0 %v1763_v26 }
 0x599   :  { %960 = vmatpush1.bf16.msra.mxu0 %v1768_v27  ;;  %v1318_v27 = vpack.c.bf16 %v1010_v12, %v1009_v10 }
 0x59a   :  { %961 = vmatprep.subr.bf16.mxu0 %v1772_v28  ;;  %v1320_v28 = vpack.c.bf16 %v1028_v24, %v1027_v20 }
 0x59d   :  { %962 = vmatpush1.bf16.msra.mxu0 %v1776_v30  ;;  %v1011_v30 = vld [vmem:[#allocation13 + $0x10] sm:$0xff] }
 0x59e   :  { %963 = vmatprep.subr.bf16.mxu0 %v1780_v32  ;;  %v1012_v32 = vld [vmem:[#allocation13 + $0x18] sm:$0xff] }
 0x5a1   :  { %964 = vmatpush1.bf16.msra.mxu0 %v1784_v33  ;;  %v1029_v33 = vld [vmem:[#allocation13 + $0xa0] sm:$0xff] }
 0x637   :  { %v837_v5 = vpop.f32.mrb[24].mxu0 }
 0x638   :  { %v844_v6 = vadd.f32 %v837_v5, %v1911_v43  ;;  %v839_v7 = vpop.f32.mrb[25].mxu0  ;;  %v1030_v43 = vld [vmem:[#allocation13 + $0xa8] sm:$0xff] }
 0x639   :  { %v845_v8 = vadd.f32 %v839_v7, %v1913_v44  ;;  %v841_v13 = vpop.f32.mrb[26].mxu0  ;;  %v1322_v44 = vpack.c.bf16 %v1012_v32, %v1011_v30  ;;  %v1324_v38 = vpack.c.bf16 %v1030_v43, %v1029_v33  ;;  %v1038_v5 = vld [vmem:[#allocation13 + $0xe8] sm:$0xff] }
 0x63a   :  { %v846_v21 = vmul.f32 %v844_v6, %v844_v6  ;;  %v842_v22 = vpop.f32.mrb[27].mxu0  ;;  %v1340_v7 = vpack.c.bf16 %v1038_v5, %v1037_v4  ;;  %v1022_v13 = vld [vmem:[#allocation13 + $0x68] sm:$0xff] }
 0x63b   :  { %v847_v29 = vmul.f32 %v845_v8, %v845_v8  ;;  %v1040_v22 = vld [vmem:[#allocation13 + $0xf8] sm:$0xff] }
 0x63d   :  { %v848_v31 = vadd.f32 %v847_v29, %v846_v21  ;;  %v1039_v21 = vld [vmem:[#allocation13 + $0xf0] sm:$0xff] }
 0x63f   :  { %v849_v39 = vadd.f32 1e-12, %v848_v31 }
 0x641   :  { %1417 = vrsqrt.f32 %v849_v39  ;;  %v1023_v39 = vld [vmem:[#allocation13 + $0x70] sm:$0xff] }
 0x64b   :  { %v1418_v40 = vpop.eup %1417 }
 0x64c   :  { %v851_v47 = vmul.f32 %v1418_v40, %v848_v31  ;;  %v1344_v31 = vpack.c.bf16 %v1040_v22, %v1039_v21 }
 0x64e   :  { %v852_v48 = vadd.f32 %v1856_v0, %v851_v47 }
 0x650   :  { %v853_v55 = vmax.f32 %v852_v48, 0.0 }
 0x652   :  { %v854_v56 = vmul.f32 %v1418_v40, %v853_v55  ;;  %v1024_v40 = vld [vmem:[#allocation13 + $0x78] sm:$0xff] }
 0x653   :  { %v1346_v47 = vpack.c.bf16 %v1024_v40, %v1023_v39 }
 0x654   :  { %v2094_v17 = vmul.f32 %v854_v56, %v844_v6  ;;  %v2096_v19 = vmul.f32 %v854_v56, %v845_v8  ;;  %v1338_v6 = vpack.c.bf16 %v1020_v3, %v1019_v2  ;;  %v1021_v8 = vld [vmem:[#allocation13 + $0x60] sm:$0xff] }
 0x655   :  { %v1342_v29 = vpack.c.bf16 %v1022_v13, %v1021_v8  ;;  %v2148_v2 = vld [vmem:[#allocation19_spill] sm:$0xff] }
 0x656   :  { %v867_v25 = vpack.c.bf16 %v2096_v19, %v2096_v19  ;;  %v866_v26 = vpack.c.bf16 %v2094_v17, %v2094_v17 }
 0x658   :  { %900 = vmatprep.mubr.bf16.mxu1 %v867_v25 }
 0x659   :  { %901 = vmatmul.mubr.bf16.vlgmr.msra.gmra.mrb[12].mxu1 %v866_v26 }
 0x65a   :  { %1319 = vmatpush3.bf16.msra.mxu1 %v1318_v27  ;;  %1112 = vmatprep.mubr.f32.mxu1 %v1861_v15  ;;  %v1017_v15 = vld [vmem:[#allocation13 + $0x40] sm:$0xff] }
 0x65b   :  { %1321 = vmatprep.subr.bf16.mxu1 %v1320_v28  ;;  %v1334_v41 = vpack.c.bf16 %v1018_v9, %v1017_v15 }
 0x65e   :  { %1323 = vmatpush3.bf16.msra.mxu1 %v1322_v44 }
 0x65f   :  { %1325 = vmatprep.subr.bf16.mxu1 %v1324_v38 }
 0x662   :  { %1327 = vmatpush3.bf16.msra.mxu1 %v1326_v54 }
 0x663   :  { %1329 = vmatprep.subr.bf16.mxu1 %v1328_v57 }
 0x666   :  { %1331 = vmatpush3.bf16.msra.mxu1 %v1330_v62 }
 0x667   :  { %1333 = vmatprep.subr.bf16.mxu1 %v1332_v63 }
 0x66a   :  { %1335 = vmatpush3.bf16.msra.mxu1 %v1334_v41 }
 0x66b   :  { %1337 = vmatprep.subr.bf16.mxu1 %v1336_v42 }
 0x66e   :  { %1339 = vmatpush3.bf16.msra.mxu1 %v1338_v6  ;;  %v2149_v6 = vld [vmem:[#allocation20_spill] sm:$0xff] }
 0x66f   :  { %1341 = vmatprep.subr.bf16.mxu1 %v1340_v7 }
 0x672   :  { %1343 = vmatpush3.bf16.msra.mxu1 %v1342_v29 }
 0x673   :  { %1345 = vmatprep.subr.bf16.mxu1 %v1344_v31 }
 0x676   :  { %1347 = vmatpush3.bf16.msra.mxu1 %v1346_v47 }
 0x679   :  { %1113 = vmatmul.mubr.f32.vlgmr.msra.gmra.mrb[16].mxu1 %v1859_v14 }
 0x67a   :  { %1117 = vmatprep.mubr.f32.mxu1 %v1926_v50 }
 0x67d   :  { %1118 = vmatmul.mubr.f32.gmra.mrb[18].mxu1 %v1924_v49 }
 0x67e   :  { %1122 = vmatprep.mubr.f32.mxu1 %v1969_v34 }
 0x681   :  { %1123 = vmatmul.mubr.f32.gmra.mrb[20].mxu1 %v1967_v23 }
 0x682   :  { %1127 = vmatprep.mubr.f32.mxu1 %v2012_v35 }
 0x685   :  { %1128 = vmatmul.mubr.f32.gmra.mrb[22].mxu1 %v2010_v1 }
 0x686   :  { %1132 = vmatprep.mubr.f32.mxu1 %v2054_v37 }
 0x689   :  { %1133 = vmatmul.mubr.f32.gmra.mrb[24].mxu1 %v2052_v18 }
 0x68a   :  { %1137 = vmatprep.mubr.f32.mxu1 %v2096_v19 }
 0x68d   :  { %1138 = vmatmul.mubr.f32.gmra.mrb[26].mxu1 %v2094_v17 }
 0x72c   :  { %v902_v14 = vpop.f32.mrb[12].mxu1 }
 0x72d   :  { %v909_v50 = vadd.f32 %v902_v14, %v1915_v45  ;;  %v904_v49 = vpop.f32.mrb[13].mxu1 }
 0x72e   :  { %v910_v34 = vadd.f32 %v904_v49, %v1917_v46  ;;  %v906_v48 = vpop.f32.mrb[14].mxu1  ;;  %v1227_v46 = vld [vmem:[%s2144_s6] ss:$0 sm:$0xff]  ;;  %s1573_s6 = smov [#allocation14]  }
 0x72f   :  { %v911_v23 = vmul.f32 %v909_v50, %v909_v50  ;;  %v907_v55 = vpop.f32.mrb[15].mxu1  ;;  %s1166_s18 = sshll.u32 %s1573_s6, 4  ;;  %s1167_s18 = int_to_ptr.vmem [resolvable:$true] %s1166_s18 }
 0x730   :  { %v912_v35 = vmul.f32 %v910_v34, %v910_v34  ;;  %s1533_s19 = scalar_lea.vmem %s1167_s18, 1024  ;;  %p1538_p13 = scmp.lt.s32.totalorder %s1167_s18, %s1167_s18 }
 0x731   :  { %p1534_p12 = scmp.ne.s32.totalorder %s1167_s18, %s1533_s19  ;;  %p1539_p0 = scmp.lt.s32.totalorder %s1533_s19, %s1533_s19 }
 0x732   :  { %v913_v56 = vadd.f32 %v912_v35, %v911_v23 }
 0x733   :  { %p1540_p1 = por %p1539_p0, %p1538_p13 }
 0x734   :  { %v914_v1 = vadd.f32 1e-12, %v913_v56 }
 0x735   :  { %p1541_p2 = pnand %p1540_p1, %p1534_p12 }
 0x736   :  { %1419 = vrsqrt.f32 %v914_v1 }
 0x740   :  { %v1420_v37 = vpop.eup %1419 }
 0x741   :  { %v916_v10 = vmul.f32 %v1420_v37, %v913_v56 }
 0x743   :  { %v917_v18 = vadd.f32 %v1856_v0, %v916_v10 }
 0x745   :  { %v918_v12 = vmax.f32 %v917_v18, 0.0 }
 0x747   :  { %v919_v19 = vmul.f32 %v1420_v37, %v918_v12 }
 0x749   :  { %v921_v17 = vmul.f32 %v919_v19, %v910_v34  ;;  %v920_v20 = vmul.f32 %v919_v19, %v909_v50 }
 0x74b   :  { %1142 = vmatprep.mubr.f32.mxu1 %v921_v17  ;;  %v931_v45 = vpack.c.bf16 %v920_v20, %v920_v20  ;;  %v932_v24 = vpack.c.bf16 %v921_v17, %v921_v17 }
 0x74c   :  { %v1260_v25 = vpop.f32.mrb[16].mxu1  ;;  %1143 = vmatmul.mubr.f32.gmra.mrb[28].mxu1 %v920_v20 }
 0x74d   :  { %v1261_v26 = vpop.f32.mrb[17].mxu1  ;;  %965 = vmatprep.mubr.bf16.mxu0 %v932_v24 }
 0x74e   :  { %v1262_v27 = vadd.f32 %v1261_v26, %v1260_v25  ;;  %966 = vmatmul.mubr.bf16.vlgmr.msra.gmra.mrb[28].mxu0 %v931_v45 }
 0x750   :  { %v1115_v28 = vadd.f32 %v1262_v27, %v1227_v46  ;;  %v1263_v30 = vpop.f32.mrb[18].mxu1 }
 0x751   :  { %v1264_v32 = vpop.f32.mrb[19].mxu1 }
 0x752   :  { %1153 = vst [vmem:[#allocation14] sm:$0xff] %v1115_v28  ;;  %v1265_v33 = vadd.f32 %v1264_v32, %v1263_v30 }
 0x754   :  { %v1120_v43 = vadd.f32 %v1265_v33, %v1227_v46  ;;  %v1266_v44 = vpop.f32.mrb[20].mxu1 }
 0x755   :  { %v1267_v38 = vpop.f32.mrb[21].mxu1 }
 0x756   :  { %1154 = vst [vmem:[#allocation14 + $0x8] sm:$0xff] %v1120_v43  ;;  %v1268_v36 = vadd.f32 %v1267_v38, %v1266_v44 }
 0x758   :  { %v1125_v51 = vadd.f32 %v1268_v36, %v1227_v46  ;;  %v1269_v52 = vpop.f32.mrb[22].mxu1 }
 0x759   :  { %v1270_v53 = vpop.f32.mrb[23].mxu1 }
 0x75a   :  { %1155 = vst [vmem:[#allocation14 + $0x10] sm:$0xff] %v1125_v51  ;;  %v1271_v54 = vadd.f32 %v1270_v53, %v1269_v52 }
 0x75c   :  { %v1130_v57 = vadd.f32 %v1271_v54, %v1227_v46  ;;  %v1272_v58 = vpop.f32.mrb[24].mxu1 }
 0x75d   :  { %v1273_v59 = vpop.f32.mrb[25].mxu1 }
 0x75e   :  { %1156 = vst [vmem:[#allocation14 + $0x18] sm:$0xff] %v1130_v57  ;;  %v1274_v60 = vadd.f32 %v1273_v59, %v1272_v58 }
 0x760   :  { %v1135_v61 = vadd.f32 %v1274_v60, %v1227_v46  ;;  %v1275_v62 = vpop.f32.mrb[26].mxu1 }
 0x761   :  { %v1276_v63 = vpop.f32.mrb[27].mxu1 }
 0x762   :  { %1157 = vst [vmem:[#allocation14 + $0x20] sm:$0xff] %v1135_v61  ;;  %v1277_v15 = vadd.f32 %v1276_v63, %v1275_v62 }
 0x764   :  { %v1140_v9 = vadd.f32 %v1277_v15, %v1227_v46 }
 0x766   :  { %1158 = vst [vmem:[#allocation14 + $0x28] sm:$0xff] %v1140_v9 }
 0x81f   :  { %v1278_v11 = vpop.f32.mrb[28].mxu1 }
 0x820   :  { %v1279_v16 = vpop.f32.mrb[29].mxu1 }
 0x821   :  { %v1280_v41 = vadd.f32 %v1279_v16, %v1278_v11  ;;  %v967_v42 = vpop.f32.mrb[28].mxu0 }
 0x822   :  { %v974_v3 = vadd.f32 %v967_v42, %v2148_v2  ;;  %v969_v4 = vpop.f32.mrb[29].mxu0 }
 0x823   :  { %v1145_v5 = vadd.f32 %v1280_v41, %v1227_v46  ;;  %v975_v7 = vadd.f32 %v969_v4, %v2149_v6  ;;  %v971_v8 = vpop.f32.mrb[30].mxu0 }
 0x824   :  { %v976_v13 = vmul.f32 %v974_v3, %v974_v3  ;;  %v972_v21 = vpop.f32.mrb[31].mxu0 }
 0x825   :  { %1159 = vst [vmem:[#allocation14 + $0x30] sm:$0xff] %v1145_v5  ;;  %v977_v22 = vmul.f32 %v975_v7, %v975_v7 }
 0x827   :  { %v978_v29 = vadd.f32 %v977_v22, %v976_v13 }
 0x829   :  { %v979_v31 = vadd.f32 1e-12, %v978_v29 }
 0x82b   :  { %1421 = vrsqrt.f32 %v979_v31 }
 0x835   :  { %v1422_v39 = vpop.eup %1421 }
 0x836   :  { %v981_v40 = vmul.f32 %v1422_v39, %v978_v29 }
 0x838   :  { %v982_v47 = vadd.f32 %v1856_v0, %v981_v40 }
 0x83a   :  { %v983_v14 = vmax.f32 %v982_v47, 0.0 }
 0x83c   :  { %v984_v50 = vmul.f32 %v1422_v39, %v983_v14 }
 0x83e   :  { %v986_v49 = vmul.f32 %v984_v50, %v975_v7  ;;  %v985_v34 = vmul.f32 %v984_v50, %v974_v3 }
 0x840   :  { %1147 = vmatprep.mubr.f32.mxu1 %v986_v49 }
 0x841   :  { %1148 = vmatmul.mubr.f32.gmra.mrb[30].mxu1 %v985_v34 }
 0x914   :  { %v1281_v48 = vpop.f32.mrb[30].mxu1 }
 0x915   :  { %v1282_v23 = vpop.f32.mrb[31].mxu1 }
 0x916   :  { %v1283_v55 = vadd.f32 %v1282_v23, %v1281_v48 }
 0x918   :  { %v1150_v35 = vadd.f32 %v1283_v55, %v1227_v46 }
 0x91a   :  { %1160 = vst [vmem:[#allocation14 + $0x38] sm:$0xff] %v1150_v35 }
 0x91b   :  { %1544 = shalt.err (!%p1541_p2)
}
 0x91c   :  { %s1545_s22 = scalar_lea.hbm %s2145_s7, 1024 }
 0x91d   :  { %p1546_p3 = scmp.ne.s32.totalorder %s2145_s7, %s1545_s22  ;;  %p1549_p4 = scmp.lt.u32.totalorder %s1545_s22, %s2145_s7 }
 0x91f   :  { %p1551_p5 = pnand %p1549_p4, %p1546_p3 }
 0x921   :  { %1554 = shalt.err (!%p1551_p5)
}
 0x922   :  { %1172 = dma.vmem_to_hbm [thread:$0]  %s1167_s18, 1024, %s2145_s7, [#allocation7], %s1566_s24, %s1566_s24, %s1567_s25  }
 0x923   :  { %1561 = dma.done.wait [#allocation7], 1024  }
 0x924   :  { %1562 = vsyncadd [#allocation7], 4294966272 }
 0x925   :  { %1176 = vsyncpa [#allocation6], 1 }
 0x926   :  { %1177 = vsyncpa [#allocation9], 1 }
 0x927   :  { %1178 = vsyncpa [#allocation12], 1 }
 0x928   :  { %1179 = vsyncpa [#allocation7], 1 }

</bundles_post_ra>
